<compile_context>
chip_gen: v6e
topology: v6e:2x2x1
jax: 0.10.0
libtpu: 0.0.40
codegen_flags: <defaults>
</compile_context>

<pallas_src>
import math

import jax
import jax.numpy as jnp
from jax.experimental import pallas as pl
from jax.experimental.pallas import tpu as pltpu

# ---------------- model config (small synthetic BERT shard) ----------------
VOCAB = 100
HIDDEN = 32
NUM_HEADS = 4
HEAD_DIM = HIDDEN // NUM_HEADS
INTERMEDIATE = 64
NUM_LAYERS = 2          # shard 1 holds the first NUM_LAYERS encoder layers
MAX_POS = 64
LN_EPS = 1e-12

# NOTE: at real BERT sizes (H>=768, S=512, I=3072) weights/activations should
# be bf16 with f32 MXU accumulation and the FFN tiled over a reduction grid
# axis (VMEM limits, esp. v7x's 64 MiB); at the toy sizes here everything
# fits VMEM untiled and a single fused invocation is optimal.


# ----------------------------- shared helpers ------------------------------
def _layer_norm(x, gamma, beta):
    mu = jnp.mean(x, axis=-1, keepdims=True)
    var = jnp.mean((x - mu) ** 2, axis=-1, keepdims=True)
    return (x - mu) * jax.lax.rsqrt(var + LN_EPS) * gamma + beta


def _gelu(x):
    # original BERT tanh approximation of GELU
    return 0.5 * x * (1.0 + jnp.tanh(0.7978845608028654 * (x + 0.044715 * x * x * x)))


# -------------------- single fused encoder-stack kernel ---------------------
def bert_shard_kernel(x_ref, mask_ref, embg_ref, embb_ref,
                      wq_ref, bq_ref, wk_ref, bk_ref, wv_ref, bv_ref,
                      wo_ref, bo_ref, ln1g_ref, ln1b_ref,
                      w1_ref, b1_ref, w2_ref, b2_ref, ln2g_ref, ln2b_ref,
                      out_ref):
    T, H = x_ref.shape                     # T = B*S tokens, hidden H
    B = mask_ref.shape[0]
    S = mask_ref.shape[2]
    NL = w1_ref.shape[0]                   # layers
    NH = wq_ref.shape[0] // NL             # heads
    HD = wq_ref.shape[2]                   # head dim

    # Hoisted once: additive attention mask broadcast to full [B, S, S].
    # (JAX does not CSE broadcast_in_dim; doing it per head would re-emit it
    #  NUM_LAYERS*NUM_HEADS times.)
    mask_add = jnp.broadcast_to(mask_ref[...], (B, S, S))

    # embedding LayerNorm fused in (x_ref holds the raw embedding sum)
    x = _layer_norm(x_ref[...].astype(jnp.float32), embg_ref[...], embb_ref[...])

    for l in range(NL):                    # static unroll: weights stay in VMEM
        # ---- multi-head self attention (head-split weights, no lane slices) ----
        attn = jnp.zeros((T, H), jnp.float32)
        for h in range(NH):                # static unroll over heads
            i = l * NH + h
            # 1/sqrt(HD) scale is pre-folded into wq/bq on the host.
            q = jnp.dot(x, wq_ref[i], preferred_element_type=jnp.float32) + bq_ref[i]
            k = jnp.dot(x, wk_ref[i], preferred_element_type=jnp.float32) + bk_ref[i]
            v = jnp.dot(x, wv_ref[i], preferred_element_type=jnp.float32) + bv_ref[i]
            # sublane-only reshapes (minor dim unchanged)
            q3 = q.reshape(B, S, HD)
            k3 = k.reshape(B, S, HD)
            v3 = v.reshape(B, S, HD)
            s = jnp.einsum('bqd,bkd->bqk', q3, k3,
                           preferred_element_type=jnp.float32)
            s = s + mask_add
            s = s - jnp.max(s, axis=-1, keepdims=True)
            p = jnp.exp(s)
            # un-normalized P.V, then normalize the (narrower) context instead
            # of the [B,S,S] probabilities; reciprocal goes to the EUP slot.
            ctx = jnp.einsum('bqk,bkd->bqd', p, v3,
                             preferred_element_type=jnp.float32)
            ctx = ctx * pl.reciprocal(jnp.sum(p, axis=-1, keepdims=True),
                                      approx=True)
            # per-head output projection accumulate (replaces lane-axis concat)
            attn = attn + jnp.dot(ctx.reshape(T, HD), wo_ref[i],
                                  preferred_element_type=jnp.float32)
        attn = attn + bo_ref[l]
        y = _layer_norm(x + attn, ln1g_ref[l], ln1b_ref[l])

        # ---- feed forward ----
        h1 = _gelu(jnp.dot(y, w1_ref[l], preferred_element_type=jnp.float32)
                   + b1_ref[l])
        h2 = jnp.dot(h1, w2_ref[l], preferred_element_type=jnp.float32) + b2_ref[l]
        x = _layer_norm(y + h2, ln2g_ref[l], ln2b_ref[l])

    out_ref[...] = x.astype(out_ref.dtype)     # lane-dense [B*S, H] slab


# ------------------------------- full forward -------------------------------
@jax.jit
def bert_shard1_forward(packed, context, mask):
    """Equivalent of Model1.forward((context, mask)).

    Returns (last_hidden_states [B,S,H], extended_attention_mask [B,1,1,S])."""
    B, S = context.shape
    maskf = mask.astype(jnp.float32)

    # extended attention mask, exactly as BERT: (1 - mask) * -10000, f32
    ext_mask = (1.0 - maskf)[:, None, None, :] * -10000.0
    mask_add = ((1.0 - maskf) * -10000.0).reshape(B, 1, S)

    # glue: embedding gathers stay in plain JAX (token_type_ids == 0)
    emb = (packed['word_emb'][context]
           + packed['pos_emb'][:S][None, :, :]
           + packed['type_emb'][0][None, None, :])
    x2 = emb.reshape(B * S, HIDDEN).astype(jnp.float32)

    hidden2d = pl.pallas_call(
        bert_shard_kernel,
        out_shape=jax.ShapeDtypeStruct((B * S, HIDDEN), jnp.float32),
        in_specs=[pl.BlockSpec(memory_space=pltpu.MemorySpace.VMEM)] * 20,
        out_specs=pl.BlockSpec(memory_space=pltpu.MemorySpace.VMEM),
    )(x2, mask_add,
      packed['emb_ln_g'], packed['emb_ln_b'],
      packed['wq'], packed['bq'], packed['wk'], packed['bk'],
      packed['wv'], packed['bv'], packed['wo'], packed['bo'],
      packed['ln1_g'], packed['ln1_b'],
      packed['w1'], packed['b1'], packed['w2'], packed['b2'],
      packed['ln2_g'], packed['ln2_b'])

    return hidden2d.reshape(B, S, HIDDEN), ext_mask


# ----------------------------- parameter setup ------------------------------
def init_params(key):
    keys = iter(jax.random.split(key, 8 + NUM_LAYERS * 8))
    std = 0.02
    p = {
        'word_emb': jax.random.normal(next(keys), (VOCAB, HIDDEN), jnp.float32) * std,
        'pos_emb':  jax.random.normal(next(keys), (MAX_POS, HIDDEN), jnp.float32) * std,
        'type_emb': jax.random.normal(next(keys), (2, HIDDEN), jnp.float32) * std,
        'emb_ln_g': jnp.ones((HIDDEN,), jnp.float32),
        'emb_ln_b': jnp.zeros((HIDDEN,), jnp.float32),
        'layers': [],
    }
    for _ in range(NUM_LAYERS):
        lp = {
            'wq': jax.random.normal(next(keys), (HIDDEN, HIDDEN), jnp.float32) * std,
            'bq': jnp.zeros((HIDDEN,), jnp.float32),
            'wk': jax.random.normal(next(keys), (HIDDEN, HIDDEN), jnp.float32) * std,
            'bk': jnp.zeros((HIDDEN,), jnp.float32),
            'wv': jax.random.normal(next(keys), (HIDDEN, HIDDEN), jnp.float32) * std,
            'bv': jnp.zeros((HIDDEN,), jnp.float32),
            'wo': jax.random.normal(next(keys), (HIDDEN, HIDDEN), jnp.float32) * std,
            'bo': jnp.zeros((HIDDEN,), jnp.float32),
            'ln1_g': jnp.ones((HIDDEN,), jnp.float32),
            'ln1_b': jnp.zeros((HIDDEN,), jnp.float32),
            'w1': jax.random.normal(next(keys), (HIDDEN, INTERMEDIATE), jnp.float32) * std,
            'b1': jnp.zeros((INTERMEDIATE,), jnp.float32),
            'w2': jax.random.normal(next(keys), (INTERMEDIATE, HIDDEN), jnp.float32) * std,
            'b2': jnp.zeros((HIDDEN,), jnp.float32),
            'ln2_g': jnp.ones((HIDDEN,), jnp.float32),
            'ln2_b': jnp.zeros((HIDDEN,), jnp.float32),
        }
        p['layers'].append(lp)
    return p


def pack_params(params):
    """Stack per-layer weights into [NUM_LAYERS(*NUM_HEADS), ...] arrays so one
    fused kernel can index them statically with all weights VMEM-resident.
    The 1/sqrt(HEAD_DIM) attention scale is folded into Wq/bq here."""
    L = params['layers']
    scale = 1.0 / math.sqrt(HEAD_DIM)

    def hsplit_w(w):       # [H,H] -> [NH,H,HD]: head h uses columns h*HD:(h+1)*HD
        return w.reshape(HIDDEN, NUM_HEADS, HEAD_DIM).transpose(1, 0, 2)

    def hsplit_b(b):       # [H] -> [NH,1,HD]
        return b.reshape(NUM_HEADS, 1, HEAD_DIM)

    return {
        'word_emb': params['word_emb'],
        'pos_emb': params['pos_emb'],
        'type_emb': params['type_emb'],
        'emb_ln_g': params['emb_ln_g'].reshape(1, HIDDEN),
        'emb_ln_b': params['emb_ln_b'].reshape(1, HIDDEN),
        # attention scale pre-folded into the query projection
        'wq': jnp.concatenate([hsplit_w(l['wq'] * scale) for l in L], axis=0),
        'bq': jnp.concatenate([hsplit_b(l['bq'] * scale) for l in L], axis=0),
        'wk': jnp.concatenate([hsplit_w(l['wk']) for l in L], axis=0),
        'bk': jnp.concatenate([hsplit_b(l['bk']) for l in L], axis=0),
        'wv': jnp.concatenate([hsplit_w(l['wv']) for l in L], axis=0),
        'bv': jnp.concatenate([hsplit_b(l['bv']) for l in L], axis=0),
        # Wo rows h*HD:(h+1)*HD act on head h's context
        'wo': jnp.concatenate(
            [l['wo'].reshape(NUM_HEADS, HEAD_DIM, HIDDEN) for l in L], axis=0),
        'bo': jnp.stack([l['bo'].reshape(1, HIDDEN) for l in L]),
        'ln1_g': jnp.stack([l['ln1_g'].reshape(1, HIDDEN) for l in L]),
        'ln1_b': jnp.stack([l['ln1_b'].reshape(1, HIDDEN) for l in L]),
        'w1': jnp.stack([l['w1'] for l in L]),
        'b1': jnp.stack([l['b1'].reshape(1, INTERMEDIATE) for l in L]),
        'w2': jnp.stack([l['w2'] for l in L]),
        'b2': jnp.stack([l['b2'].reshape(1, HIDDEN) for l in L]),
        'ln2_g': jnp.stack([l['ln2_g'].reshape(1, HIDDEN) for l in L]),
        'ln2_b': jnp.stack([l['ln2_b'].reshape(1, HIDDEN) for l in L]),
    }


# ------------------------- pure-JAX reference (check) ------------------------
def _attention_ref(x, lp, mask_add):
    B, S, H = x.shape
    q = (x @ lp['wq'] + lp['bq']).reshape(B, S, NUM_HEADS, HEAD_DIM)
    k = (x @ lp['wk'] + lp['bk']).reshape(B, S, NUM_HEADS, HEAD_DIM)
    v = (x @ lp['wv'] + lp['bv']).reshape(B, S, NUM_HEADS, HEAD_DIM)
    s = jnp.einsum('bqhd,bkhd->bhqk', q, k) / math.sqrt(HEAD_DIM)
    s = s + mask_add[:, None, None, :]
    p = jax.nn.softmax(s, axis=-1)
    ctx = jnp.einsum('bhqk,bkhd->bqhd', p, v).reshape(B, S, H)
    return ctx @ lp['wo'] + lp['bo']


def reference_forward(params, context, mask):
    B, S = context.shape
    maskf = mask.astype(jnp.float32)
    ext_mask = (1.0 - maskf)[:, None, None, :] * -10000.0
    emb = (params['word_emb'][context]
           + params['pos_emb'][:S][None, :, :]
           + params['type_emb'][0][None, None, :])
    x = _layer_norm(emb, params['emb_ln_g'], params['emb_ln_b'])
    mask_add = (1.0 - maskf) * -10000.0
    for lp in params['layers']:
        attn = _attention_ref(x, lp, mask_add)
        y = _layer_norm(x + attn, lp['ln1_g'], lp['ln1_b'])
        h1 = _gelu(y @ lp['w1'] + lp['b1'])
        x = _layer_norm(y + h1 @ lp['w2'] + lp['b2'], lp['ln2_g'], lp['ln2_b'])
    return x, ext_mask


if __name__ == "__main__":
    key = jax.random.PRNGKey(0)
    k_param, k_ids = jax.random.split(key)

    B, S = 2, 8
    params = init_params(k_param)
    packed = pack_params(params)

    context = jax.random.randint(k_ids, (B, S), 0, VOCAB, dtype=jnp.int32)
    mask = jnp.ones((B, S), jnp.float32).at[1, 6:].set(0.0)   # pad tail of example 1

    hidden, ext_mask = bert_shard1_forward(packed, context, mask)
    jax.block_until_ready((hidden, ext_mask))

    assert hidden.shape == (B, S, HIDDEN)
    assert ext_mask.shape == (B, 1, 1, S)

    # correctness check vs. plain-JAX reference (generous tol: approx reciprocal)
    ref_h, ref_m = reference_forward(params, context, mask)
    max_diff = float(jnp.max(jnp.abs(hidden - ref_h)))
    assert max_diff < 1e-2, f"kernel/reference mismatch: {max_diff}"
    assert bool(jnp.allclose(ext_mask, ref_m))

    print("KERNEL_OK")
</pallas_src>

<mosaic_0001>
module attributes {stable_mosaic.version = 11 : i64} {
  func.func @bert_shard_kernel(%arg0: memref<16x32xf32, #tpu.memory_space<vmem>>, %arg1: memref<2x1x8xf32, #tpu.memory_space<vmem>>, %arg2: memref<1x32xf32, #tpu.memory_space<vmem>>, %arg3: memref<1x32xf32, #tpu.memory_space<vmem>>, %arg4: memref<8x32x8xf32, #tpu.memory_space<vmem>>, %arg5: memref<8x1x8xf32, #tpu.memory_space<vmem>>, %arg6: memref<8x32x8xf32, #tpu.memory_space<vmem>>, %arg7: memref<8x1x8xf32, #tpu.memory_space<vmem>>, %arg8: memref<8x32x8xf32, #tpu.memory_space<vmem>>, %arg9: memref<8x1x8xf32, #tpu.memory_space<vmem>>, %arg10: memref<8x8x32xf32, #tpu.memory_space<vmem>>, %arg11: memref<2x1x32xf32, #tpu.memory_space<vmem>>, %arg12: memref<2x1x32xf32, #tpu.memory_space<vmem>>, %arg13: memref<2x1x32xf32, #tpu.memory_space<vmem>>, %arg14: memref<2x32x64xf32, #tpu.memory_space<vmem>>, %arg15: memref<2x1x64xf32, #tpu.memory_space<vmem>>, %arg16: memref<2x64x32xf32, #tpu.memory_space<vmem>>, %arg17: memref<2x1x32xf32, #tpu.memory_space<vmem>>, %arg18: memref<2x1x32xf32, #tpu.memory_space<vmem>>, %arg19: memref<2x1x32xf32, #tpu.memory_space<vmem>>, %arg20: memref<16x32xf32, #tpu.memory_space<vmem>>) attributes {dimension_semantics = [], scalar_prefetch = 0 : i64, scratch_operands = 0 : i64, tpu.core_type = #tpu.core_type<tc>} {
    %c0 = arith.constant 0 : index
    %c0_0 = arith.constant 0 : index
    %c0_1 = arith.constant 0 : index
    %0 = vector.load %arg1[%c0, %c0_0, %c0_1] : memref<2x1x8xf32, #tpu.memory_space<vmem>>, vector<2x1x8xf32>
    %1 = vector.shape_cast %0 : vector<2x1x8xf32> to vector<2x1x8xf32>
    %2 = vector.broadcast %1 : vector<2x1x8xf32> to vector<2x8x8xf32>
    %c0_2 = arith.constant 0 : index
    %c0_3 = arith.constant 0 : index
    %3 = vector.load %arg0[%c0_2, %c0_3] : memref<16x32xf32, #tpu.memory_space<vmem>>, vector<16x32xf32>
    %c0_4 = arith.constant 0 : index
    %c0_5 = arith.constant 0 : index
    %4 = vector.load %arg2[%c0_4, %c0_5] : memref<1x32xf32, #tpu.memory_space<vmem>>, vector<1x32xf32>
    %c0_6 = arith.constant 0 : index
    %c0_7 = arith.constant 0 : index
    %5 = vector.load %arg3[%c0_6, %c0_7] : memref<1x32xf32, #tpu.memory_space<vmem>>, vector<1x32xf32>
    %cst = arith.constant dense<0.000000e+00> : vector<16xf32>
    %6 = vector.multi_reduction <add>, %3, %cst [1] : vector<16x32xf32> to vector<16xf32>
    %7 = vector.shape_cast %6 : vector<16xf32> to vector<16x1xf32>
    %cst_8 = arith.constant 3.200000e+01 : f32
    %8 = vector.broadcast %cst_8 : f32 to vector<16x1xf32>
    %9 = arith.divf %7, %8 : vector<16x1xf32>
    %10 = vector.broadcast %9 : vector<16x1xf32> to vector<16x32xf32>
    %11 = arith.subf %3, %10 : vector<16x32xf32>
    %12 = arith.mulf %11, %11 : vector<16x32xf32>
    %cst_9 = arith.constant dense<0.000000e+00> : vector<16xf32>
    %13 = vector.multi_reduction <add>, %12, %cst_9 [1] : vector<16x32xf32> to vector<16xf32>
    %14 = vector.shape_cast %13 : vector<16xf32> to vector<16x1xf32>
    %cst_10 = arith.constant 3.200000e+01 : f32
    %15 = vector.broadcast %cst_10 : f32 to vector<16x1xf32>
    %16 = arith.divf %14, %15 : vector<16x1xf32>
    %17 = vector.broadcast %9 : vector<16x1xf32> to vector<16x32xf32>
    %18 = arith.subf %3, %17 : vector<16x32xf32>
    %cst_11 = arith.constant 9.99999996E-13 : f32
    %19 = vector.broadcast %cst_11 : f32 to vector<16x1xf32>
    %20 = arith.addf %16, %19 : vector<16x1xf32>
    %21 = math.rsqrt %20 : vector<16x1xf32>
    %22 = vector.broadcast %21 : vector<16x1xf32> to vector<16x32xf32>
    %23 = arith.mulf %18, %22 : vector<16x32xf32>
    %24 = vector.broadcast %4 : vector<1x32xf32> to vector<16x32xf32>
    %25 = arith.mulf %23, %24 : vector<16x32xf32>
    %26 = vector.broadcast %5 : vector<1x32xf32> to vector<16x32xf32>
    %27 = arith.addf %25, %26 : vector<16x32xf32>
    %cst_12 = arith.constant 0.000000e+00 : f32
    %28 = vector.broadcast %cst_12 : f32 to vector<16x32xf32>
    %c0_13 = arith.constant 0 : index
    %c0_14 = arith.constant 0 : index
    %c0_15 = arith.constant 0 : index
    %29 = vector.load %arg4[%c0_13, %c0_14, %c0_15] : memref<8x32x8xf32, #tpu.memory_space<vmem>>, vector<1x32x8xf32>
    %30 = vector.shape_cast %29 : vector<1x32x8xf32> to vector<32x8xf32>
    %cst_16 = arith.constant dense<0.000000e+00> : vector<16x8xf32>
    %31 = tpu.matmul %27, %30, %cst_16 {dimension_numbers = #tpu.dot_dimension_numbers<[1], [0], [0], [1], [0, 0, 1, 1], [], []>} : vector<16x32xf32>, vector<32x8xf32>, vector<16x8xf32> -> vector<16x8xf32>
    %c0_17 = arith.constant 0 : index
    %c0_18 = arith.constant 0 : index
    %c0_19 = arith.constant 0 : index
    %32 = vector.load %arg5[%c0_17, %c0_18, %c0_19] : memref<8x1x8xf32, #tpu.memory_space<vmem>>, vector<1x1x8xf32>
    %33 = vector.shape_cast %32 : vector<1x1x8xf32> to vector<1x8xf32>
    %34 = vector.broadcast %33 : vector<1x8xf32> to vector<16x8xf32>
    %35 = arith.addf %31, %34 : vector<16x8xf32>
    %c0_20 = arith.constant 0 : index
    %c0_21 = arith.constant 0 : index
    %c0_22 = arith.constant 0 : index
    %36 = vector.load %arg6[%c0_20, %c0_21, %c0_22] : memref<8x32x8xf32, #tpu.memory_space<vmem>>, vector<1x32x8xf32>
    %37 = vector.shape_cast %36 : vector<1x32x8xf32> to vector<32x8xf32>
    %cst_23 = arith.constant dense<0.000000e+00> : vector<16x8xf32>
    %38 = tpu.matmul %27, %37, %cst_23 {dimension_numbers = #tpu.dot_dimension_numbers<[1], [0], [0], [1], [0, 0, 1, 1], [], []>} : vector<16x32xf32>, vector<32x8xf32>, vector<16x8xf32> -> vector<16x8xf32>
    %c0_24 = arith.constant 0 : index
    %c0_25 = arith.constant 0 : index
    %c0_26 = arith.constant 0 : index
    %39 = vector.load %arg7[%c0_24, %c0_25, %c0_26] : memref<8x1x8xf32, #tpu.memory_space<vmem>>, vector<1x1x8xf32>
    %40 = vector.shape_cast %39 : vector<1x1x8xf32> to vector<1x8xf32>
    %41 = vector.broadcast %40 : vector<1x8xf32> to vector<16x8xf32>
    %42 = arith.addf %38, %41 : vector<16x8xf32>
    %c0_27 = arith.constant 0 : index
    %c0_28 = arith.constant 0 : index
    %c0_29 = arith.constant 0 : index
    %43 = vector.load %arg8[%c0_27, %c0_28, %c0_29] : memref<8x32x8xf32, #tpu.memory_space<vmem>>, vector<1x32x8xf32>
    %44 = vector.shape_cast %43 : vector<1x32x8xf32> to vector<32x8xf32>
    %cst_30 = arith.constant dense<0.000000e+00> : vector<16x8xf32>
    %45 = tpu.matmul %27, %44, %cst_30 {dimension_numbers = #tpu.dot_dimension_numbers<[1], [0], [0], [1], [0, 0, 1, 1], [], []>} : vector<16x32xf32>, vector<32x8xf32>, vector<16x8xf32> -> vector<16x8xf32>
    %c0_31 = arith.constant 0 : index
    %c0_32 = arith.constant 0 : index
    %c0_33 = arith.constant 0 : index
    %46 = vector.load %arg9[%c0_31, %c0_32, %c0_33] : memref<8x1x8xf32, #tpu.memory_space<vmem>>, vector<1x1x8xf32>
    %47 = vector.shape_cast %46 : vector<1x1x8xf32> to vector<1x8xf32>
    %48 = vector.broadcast %47 : vector<1x8xf32> to vector<16x8xf32>
    %49 = arith.addf %45, %48 : vector<16x8xf32>
    %50 = vector.shape_cast %35 : vector<16x8xf32> to vector<2x8x8xf32>
    %51 = vector.shape_cast %42 : vector<16x8xf32> to vector<2x8x8xf32>
    %52 = vector.shape_cast %49 : vector<16x8xf32> to vector<2x8x8xf32>
    "tpu.trace_start"() <{level = 10 : i32, message = "bqd,bkd->bqk"}> : () -> ()
    %cst_34 = arith.constant dense<0.000000e+00> : vector<2x8x8xf32>
    %53 = tpu.matmul %50, %51, %cst_34 {dimension_numbers = #tpu.dot_dimension_numbers<[2], [2], [1], [1], [0, 0, 0, 1, 1, 1], [0], [0]>} : vector<2x8x8xf32>, vector<2x8x8xf32>, vector<2x8x8xf32> -> vector<2x8x8xf32>
    "tpu.trace_stop"() : () -> ()
    %54 = arith.addf %53, %2 : vector<2x8x8xf32>
    %cst_35 = arith.constant dense<0xFF800000> : vector<2x8xf32>
    %55 = vector.multi_reduction <maximumf>, %54, %cst_35 [2] : vector<2x8x8xf32> to vector<2x8xf32>
    %56 = vector.shape_cast %55 : vector<2x8xf32> to vector<2x8x1xf32>
    %57 = vector.broadcast %56 : vector<2x8x1xf32> to vector<2x8x8xf32>
    %58 = arith.subf %54, %57 : vector<2x8x8xf32>
    %59 = math.exp %58 : vector<2x8x8xf32>
    "tpu.trace_start"() <{level = 10 : i32, message = "bqk,bkd->bqd"}> : () -> ()
    %cst_36 = arith.constant dense<0.000000e+00> : vector<2x8x8xf32>
    %60 = tpu.matmul %59, %52, %cst_36 {dimension_numbers = #tpu.dot_dimension_numbers<[2], [1], [1], [2], [0, 0, 0, 1, 1, 2], [0], [0]>} : vector<2x8x8xf32>, vector<2x8x8xf32>, vector<2x8x8xf32> -> vector<2x8x8xf32>
    "tpu.trace_stop"() : () -> ()
    %cst_37 = arith.constant dense<0.000000e+00> : vector<2x8xf32>
    %61 = vector.multi_reduction <add>, %59, %cst_37 [2] : vector<2x8x8xf32> to vector<2x8xf32>
    %62 = vector.shape_cast %61 : vector<2x8xf32> to vector<2x8x1xf32>
    %63 = tpu.reciprocal %62 {approx = true} : vector<2x8x1xf32> -> vector<2x8x1xf32>
    %64 = vector.broadcast %63 : vector<2x8x1xf32> to vector<2x8x8xf32>
    %65 = arith.mulf %60, %64 : vector<2x8x8xf32>
    %66 = vector.shape_cast %65 : vector<2x8x8xf32> to vector<16x8xf32>
    %c0_38 = arith.constant 0 : index
    %c0_39 = arith.constant 0 : index
    %c0_40 = arith.constant 0 : index
    %67 = vector.load %arg10[%c0_38, %c0_39, %c0_40] : memref<8x8x32xf32, #tpu.memory_space<vmem>>, vector<1x8x32xf32>
    %68 = vector.shape_cast %67 : vector<1x8x32xf32> to vector<8x32xf32>
    %cst_41 = arith.constant dense<0.000000e+00> : vector<16x32xf32>
    %69 = tpu.matmul %66, %68, %cst_41 {dimension_numbers = #tpu.dot_dimension_numbers<[1], [0], [0], [1], [0, 0, 1, 1], [], []>} : vector<16x8xf32>, vector<8x32xf32>, vector<16x32xf32> -> vector<16x32xf32>
    %70 = arith.addf %28, %69 : vector<16x32xf32>
    %c1 = arith.constant 1 : index
    %c0_42 = arith.constant 0 : index
    %c0_43 = arith.constant 0 : index
    %71 = vector.load %arg4[%c1, %c0_42, %c0_43] : memref<8x32x8xf32, #tpu.memory_space<vmem>>, vector<1x32x8xf32>
    %72 = vector.shape_cast %71 : vector<1x32x8xf32> to vector<32x8xf32>
    %cst_44 = arith.constant dense<0.000000e+00> : vector<16x8xf32>
    %73 = tpu.matmul %27, %72, %cst_44 {dimension_numbers = #tpu.dot_dimension_numbers<[1], [0], [0], [1], [0, 0, 1, 1], [], []>} : vector<16x32xf32>, vector<32x8xf32>, vector<16x8xf32> -> vector<16x8xf32>
    %c1_45 = arith.constant 1 : index
    %c0_46 = arith.constant 0 : index
    %c0_47 = arith.constant 0 : index
    %74 = vector.load %arg5[%c1_45, %c0_46, %c0_47] : memref<8x1x8xf32, #tpu.memory_space<vmem>>, vector<1x1x8xf32>
    %75 = vector.shape_cast %74 : vector<1x1x8xf32> to vector<1x8xf32>
    %76 = vector.broadcast %75 : vector<1x8xf32> to vector<16x8xf32>
    %77 = arith.addf %73, %76 : vector<16x8xf32>
    %c1_48 = arith.constant 1 : index
    %c0_49 = arith.constant 0 : index
    %c0_50 = arith.constant 0 : index
    %78 = vector.load %arg6[%c1_48, %c0_49, %c0_50] : memref<8x32x8xf32, #tpu.memory_space<vmem>>, vector<1x32x8xf32>
    %79 = vector.shape_cast %78 : vector<1x32x8xf32> to vector<32x8xf32>
    %cst_51 = arith.constant dense<0.000000e+00> : vector<16x8xf32>
    %80 = tpu.matmul %27, %79, %cst_51 {dimension_numbers = #tpu.dot_dimension_numbers<[1], [0], [0], [1], [0, 0, 1, 1], [], []>} : vector<16x32xf32>, vector<32x8xf32>, vector<16x8xf32> -> vector<16x8xf32>
    %c1_52 = arith.constant 1 : index
    %c0_53 = arith.constant 0 : index
    %c0_54 = arith.constant 0 : index
    %81 = vector.load %arg7[%c1_52, %c0_53, %c0_54] : memref<8x1x8xf32, #tpu.memory_space<vmem>>, vector<1x1x8xf32>
    %82 = vector.shape_cast %81 : vector<1x1x8xf32> to vector<1x8xf32>
    %83 = vector.broadcast %82 : vector<1x8xf32> to vector<16x8xf32>
    %84 = arith.addf %80, %83 : vector<16x8xf32>
    %c1_55 = arith.constant 1 : index
    %c0_56 = arith.constant 0 : index
    %c0_57 = arith.constant 0 : index
    %85 = vector.load %arg8[%c1_55, %c0_56, %c0_57] : memref<8x32x8xf32, #tpu.memory_space<vmem>>, vector<1x32x8xf32>
    %86 = vector.shape_cast %85 : vector<1x32x8xf32> to vector<32x8xf32>
    %cst_58 = arith.constant dense<0.000000e+00> : vector<16x8xf32>
    %87 = tpu.matmul %27, %86, %cst_58 {dimension_numbers = #tpu.dot_dimension_numbers<[1], [0], [0], [1], [0, 0, 1, 1], [], []>} : vector<16x32xf32>, vector<32x8xf32>, vector<16x8xf32> -> vector<16x8xf32>
    %c1_59 = arith.constant 1 : index
    %c0_60 = arith.constant 0 : index
    %c0_61 = arith.constant 0 : index
    %88 = vector.load %arg9[%c1_59, %c0_60, %c0_61] : memref<8x1x8xf32, #tpu.memory_space<vmem>>, vector<1x1x8xf32>
    %89 = vector.shape_cast %88 : vector<1x1x8xf32> to vector<1x8xf32>
    %90 = vector.broadcast %89 : vector<1x8xf32> to vector<16x8xf32>
    %91 = arith.addf %87, %90 : vector<16x8xf32>
    %92 = vector.shape_cast %77 : vector<16x8xf32> to vector<2x8x8xf32>
    %93 = vector.shape_cast %84 : vector<16x8xf32> to vector<2x8x8xf32>
    %94 = vector.shape_cast %91 : vector<16x8xf32> to vector<2x8x8xf32>
    "tpu.trace_start"() <{level = 10 : i32, message = "bqd,bkd->bqk"}> : () -> ()
    %cst_62 = arith.constant dense<0.000000e+00> : vector<2x8x8xf32>
    %95 = tpu.matmul %92, %93, %cst_62 {dimension_numbers = #tpu.dot_dimension_numbers<[2], [2], [1], [1], [0, 0, 0, 1, 1, 1], [0], [0]>} : vector<2x8x8xf32>, vector<2x8x8xf32>, vector<2x8x8xf32> -> vector<2x8x8xf32>
    "tpu.trace_stop"() : () -> ()
    %96 = arith.addf %95, %2 : vector<2x8x8xf32>
    %cst_63 = arith.constant dense<0xFF800000> : vector<2x8xf32>
    %97 = vector.multi_reduction <maximumf>, %96, %cst_63 [2] : vector<2x8x8xf32> to vector<2x8xf32>
    %98 = vector.shape_cast %97 : vector<2x8xf32> to vector<2x8x1xf32>
    %99 = vector.broadcast %98 : vector<2x8x1xf32> to vector<2x8x8xf32>
    %100 = arith.subf %96, %99 : vector<2x8x8xf32>
    %101 = math.exp %100 : vector<2x8x8xf32>
    "tpu.trace_start"() <{level = 10 : i32, message = "bqk,bkd->bqd"}> : () -> ()
    %cst_64 = arith.constant dense<0.000000e+00> : vector<2x8x8xf32>
    %102 = tpu.matmul %101, %94, %cst_64 {dimension_numbers = #tpu.dot_dimension_numbers<[2], [1], [1], [2], [0, 0, 0, 1, 1, 2], [0], [0]>} : vector<2x8x8xf32>, vector<2x8x8xf32>, vector<2x8x8xf32> -> vector<2x8x8xf32>
    "tpu.trace_stop"() : () -> ()
    %cst_65 = arith.constant dense<0.000000e+00> : vector<2x8xf32>
    %103 = vector.multi_reduction <add>, %101, %cst_65 [2] : vector<2x8x8xf32> to vector<2x8xf32>
    %104 = vector.shape_cast %103 : vector<2x8xf32> to vector<2x8x1xf32>
    %105 = tpu.reciprocal %104 {approx = true} : vector<2x8x1xf32> -> vector<2x8x1xf32>
    %106 = vector.broadcast %105 : vector<2x8x1xf32> to vector<2x8x8xf32>
    %107 = arith.mulf %102, %106 : vector<2x8x8xf32>
    %108 = vector.shape_cast %107 : vector<2x8x8xf32> to vector<16x8xf32>
    %c1_66 = arith.constant 1 : index
    %c0_67 = arith.constant 0 : index
    %c0_68 = arith.constant 0 : index
    %109 = vector.load %arg10[%c1_66, %c0_67, %c0_68] : memref<8x8x32xf32, #tpu.memory_space<vmem>>, vector<1x8x32xf32>
    %110 = vector.shape_cast %109 : vector<1x8x32xf32> to vector<8x32xf32>
    %cst_69 = arith.constant dense<0.000000e+00> : vector<16x32xf32>
    %111 = tpu.matmul %108, %110, %cst_69 {dimension_numbers = #tpu.dot_dimension_numbers<[1], [0], [0], [1], [0, 0, 1, 1], [], []>} : vector<16x8xf32>, vector<8x32xf32>, vector<16x32xf32> -> vector<16x32xf32>
    %112 = arith.addf %70, %111 : vector<16x32xf32>
    %c2 = arith.constant 2 : index
    %c0_70 = arith.constant 0 : index
    %c0_71 = arith.constant 0 : index
    %113 = vector.load %arg4[%c2, %c0_70, %c0_71] : memref<8x32x8xf32, #tpu.memory_space<vmem>>, vector<1x32x8xf32>
    %114 = vector.shape_cast %113 : vector<1x32x8xf32> to vector<32x8xf32>
    %cst_72 = arith.constant dense<0.000000e+00> : vector<16x8xf32>
    %115 = tpu.matmul %27, %114, %cst_72 {dimension_numbers = #tpu.dot_dimension_numbers<[1], [0], [0], [1], [0, 0, 1, 1], [], []>} : vector<16x32xf32>, vector<32x8xf32>, vector<16x8xf32> -> vector<16x8xf32>
    %c2_73 = arith.constant 2 : index
    %c0_74 = arith.constant 0 : index
    %c0_75 = arith.constant 0 : index
    %116 = vector.load %arg5[%c2_73, %c0_74, %c0_75] : memref<8x1x8xf32, #tpu.memory_space<vmem>>, vector<1x1x8xf32>
    %117 = vector.shape_cast %116 : vector<1x1x8xf32> to vector<1x8xf32>
    %118 = vector.broadcast %117 : vector<1x8xf32> to vector<16x8xf32>
    %119 = arith.addf %115, %118 : vector<16x8xf32>
    %c2_76 = arith.constant 2 : index
    %c0_77 = arith.constant 0 : index
    %c0_78 = arith.constant 0 : index
    %120 = vector.load %arg6[%c2_76, %c0_77, %c0_78] : memref<8x32x8xf32, #tpu.memory_space<vmem>>, vector<1x32x8xf32>
    %121 = vector.shape_cast %120 : vector<1x32x8xf32> to vector<32x8xf32>
    %cst_79 = arith.constant dense<0.000000e+00> : vector<16x8xf32>
    %122 = tpu.matmul %27, %121, %cst_79 {dimension_numbers = #tpu.dot_dimension_numbers<[1], [0], [0], [1], [0, 0, 1, 1], [], []>} : vector<16x32xf32>, vector<32x8xf32>, vector<16x8xf32> -> vector<16x8xf32>
    %c2_80 = arith.constant 2 : index
    %c0_81 = arith.constant 0 : index
    %c0_82 = arith.constant 0 : index
    %123 = vector.load %arg7[%c2_80, %c0_81, %c0_82] : memref<8x1x8xf32, #tpu.memory_space<vmem>>, vector<1x1x8xf32>
    %124 = vector.shape_cast %123 : vector<1x1x8xf32> to vector<1x8xf32>
    %125 = vector.broadcast %124 : vector<1x8xf32> to vector<16x8xf32>
    %126 = arith.addf %122, %125 : vector<16x8xf32>
    %c2_83 = arith.constant 2 : index
    %c0_84 = arith.constant 0 : index
    %c0_85 = arith.constant 0 : index
    %127 = vector.load %arg8[%c2_83, %c0_84, %c0_85] : memref<8x32x8xf32, #tpu.memory_space<vmem>>, vector<1x32x8xf32>
    %128 = vector.shape_cast %127 : vector<1x32x8xf32> to vector<32x8xf32>
    %cst_86 = arith.constant dense<0.000000e+00> : vector<16x8xf32>
    %129 = tpu.matmul %27, %128, %cst_86 {dimension_numbers = #tpu.dot_dimension_numbers<[1], [0], [0], [1], [0, 0, 1, 1], [], []>} : vector<16x32xf32>, vector<32x8xf32>, vector<16x8xf32> -> vector<16x8xf32>
    %c2_87 = arith.constant 2 : index
    %c0_88 = arith.constant 0 : index
    %c0_89 = arith.constant 0 : index
    %130 = vector.load %arg9[%c2_87, %c0_88, %c0_89] : memref<8x1x8xf32, #tpu.memory_space<vmem>>, vector<1x1x8xf32>
    %131 = vector.shape_cast %130 : vector<1x1x8xf32> to vector<1x8xf32>
    %132 = vector.broadcast %131 : vector<1x8xf32> to vector<16x8xf32>
    %133 = arith.addf %129, %132 : vector<16x8xf32>
    %134 = vector.shape_cast %119 : vector<16x8xf32> to vector<2x8x8xf32>
    %135 = vector.shape_cast %126 : vector<16x8xf32> to vector<2x8x8xf32>
    %136 = vector.shape_cast %133 : vector<16x8xf32> to vector<2x8x8xf32>
    "tpu.trace_start"() <{level = 10 : i32, message = "bqd,bkd->bqk"}> : () -> ()
    %cst_90 = arith.constant dense<0.000000e+00> : vector<2x8x8xf32>
    %137 = tpu.matmul %134, %135, %cst_90 {dimension_numbers = #tpu.dot_dimension_numbers<[2], [2], [1], [1], [0, 0, 0, 1, 1, 1], [0], [0]>} : vector<2x8x8xf32>, vector<2x8x8xf32>, vector<2x8x8xf32> -> vector<2x8x8xf32>
    "tpu.trace_stop"() : () -> ()
    %138 = arith.addf %137, %2 : vector<2x8x8xf32>
    %cst_91 = arith.constant dense<0xFF800000> : vector<2x8xf32>
    %139 = vector.multi_reduction <maximumf>, %138, %cst_91 [2] : vector<2x8x8xf32> to vector<2x8xf32>
    %140 = vector.shape_cast %139 : vector<2x8xf32> to vector<2x8x1xf32>
    %141 = vector.broadcast %140 : vector<2x8x1xf32> to vector<2x8x8xf32>
    %142 = arith.subf %138, %141 : vector<2x8x8xf32>
    %143 = math.exp %142 : vector<2x8x8xf32>
    "tpu.trace_start"() <{level = 10 : i32, message = "bqk,bkd->bqd"}> : () -> ()
    %cst_92 = arith.constant dense<0.000000e+00> : vector<2x8x8xf32>
    %144 = tpu.matmul %143, %136, %cst_92 {dimension_numbers = #tpu.dot_dimension_numbers<[2], [1], [1], [2], [0, 0, 0, 1, 1, 2], [0], [0]>} : vector<2x8x8xf32>, vector<2x8x8xf32>, vector<2x8x8xf32> -> vector<2x8x8xf32>
    "tpu.trace_stop"() : () -> ()
    %cst_93 = arith.constant dense<0.000000e+00> : vector<2x8xf32>
    %145 = vector.multi_reduction <add>, %143, %cst_93 [2] : vector<2x8x8xf32> to vector<2x8xf32>
    %146 = vector.shape_cast %145 : vector<2x8xf32> to vector<2x8x1xf32>
    %147 = tpu.reciprocal %146 {approx = true} : vector<2x8x1xf32> -> vector<2x8x1xf32>
    %148 = vector.broadcast %147 : vector<2x8x1xf32> to vector<2x8x8xf32>
    %149 = arith.mulf %144, %148 : vector<2x8x8xf32>
    %150 = vector.shape_cast %149 : vector<2x8x8xf32> to vector<16x8xf32>
    %c2_94 = arith.constant 2 : index
    %c0_95 = arith.constant 0 : index
    %c0_96 = arith.constant 0 : index
    %151 = vector.load %arg10[%c2_94, %c0_95, %c0_96] : memref<8x8x32xf32, #tpu.memory_space<vmem>>, vector<1x8x32xf32>
    %152 = vector.shape_cast %151 : vector<1x8x32xf32> to vector<8x32xf32>
    %cst_97 = arith.constant dense<0.000000e+00> : vector<16x32xf32>
    %153 = tpu.matmul %150, %152, %cst_97 {dimension_numbers = #tpu.dot_dimension_numbers<[1], [0], [0], [1], [0, 0, 1, 1], [], []>} : vector<16x8xf32>, vector<8x32xf32>, vector<16x32xf32> -> vector<16x32xf32>
    %154 = arith.addf %112, %153 : vector<16x32xf32>
    %c3 = arith.constant 3 : index
    %c0_98 = arith.constant 0 : index
    %c0_99 = arith.constant 0 : index
    %155 = vector.load %arg4[%c3, %c0_98, %c0_99] : memref<8x32x8xf32, #tpu.memory_space<vmem>>, vector<1x32x8xf32>
    %156 = vector.shape_cast %155 : vector<1x32x8xf32> to vector<32x8xf32>
    %cst_100 = arith.constant dense<0.000000e+00> : vector<16x8xf32>
    %157 = tpu.matmul %27, %156, %cst_100 {dimension_numbers = #tpu.dot_dimension_numbers<[1], [0], [0], [1], [0, 0, 1, 1], [], []>} : vector<16x32xf32>, vector<32x8xf32>, vector<16x8xf32> -> vector<16x8xf32>
    %c3_101 = arith.constant 3 : index
    %c0_102 = arith.constant 0 : index
    %c0_103 = arith.constant 0 : index
    %158 = vector.load %arg5[%c3_101, %c0_102, %c0_103] : memref<8x1x8xf32, #tpu.memory_space<vmem>>, vector<1x1x8xf32>
    %159 = vector.shape_cast %158 : vector<1x1x8xf32> to vector<1x8xf32>
    %160 = vector.broadcast %159 : vector<1x8xf32> to vector<16x8xf32>
    %161 = arith.addf %157, %160 : vector<16x8xf32>
    %c3_104 = arith.constant 3 : index
    %c0_105 = arith.constant 0 : index
    %c0_106 = arith.constant 0 : index
    %162 = vector.load %arg6[%c3_104, %c0_105, %c0_106] : memref<8x32x8xf32, #tpu.memory_space<vmem>>, vector<1x32x8xf32>
    %163 = vector.shape_cast %162 : vector<1x32x8xf32> to vector<32x8xf32>
    %cst_107 = arith.constant dense<0.000000e+00> : vector<16x8xf32>
    %164 = tpu.matmul %27, %163, %cst_107 {dimension_numbers = #tpu.dot_dimension_numbers<[1], [0], [0], [1], [0, 0, 1, 1], [], []>} : vector<16x32xf32>, vector<32x8xf32>, vector<16x8xf32> -> vector<16x8xf32>
    %c3_108 = arith.constant 3 : index
    %c0_109 = arith.constant 0 : index
    %c0_110 = arith.constant 0 : index
    %165 = vector.load %arg7[%c3_108, %c0_109, %c0_110] : memref<8x1x8xf32, #tpu.memory_space<vmem>>, vector<1x1x8xf32>
    %166 = vector.shape_cast %165 : vector<1x1x8xf32> to vector<1x8xf32>
    %167 = vector.broadcast %166 : vector<1x8xf32> to vector<16x8xf32>
    %168 = arith.addf %164, %167 : vector<16x8xf32>
    %c3_111 = arith.constant 3 : index
    %c0_112 = arith.constant 0 : index
    %c0_113 = arith.constant 0 : index
    %169 = vector.load %arg8[%c3_111, %c0_112, %c0_113] : memref<8x32x8xf32, #tpu.memory_space<vmem>>, vector<1x32x8xf32>
    %170 = vector.shape_cast %169 : vector<1x32x8xf32> to vector<32x8xf32>
    %cst_114 = arith.constant dense<0.000000e+00> : vector<16x8xf32>
    %171 = tpu.matmul %27, %170, %cst_114 {dimension_numbers = #tpu.dot_dimension_numbers<[1], [0], [0], [1], [0, 0, 1, 1], [], []>} : vector<16x32xf32>, vector<32x8xf32>, vector<16x8xf32> -> vector<16x8xf32>
    %c3_115 = arith.constant 3 : index
    %c0_116 = arith.constant 0 : index
    %c0_117 = arith.constant 0 : index
    %172 = vector.load %arg9[%c3_115, %c0_116, %c0_117] : memref<8x1x8xf32, #tpu.memory_space<vmem>>, vector<1x1x8xf32>
    %173 = vector.shape_cast %172 : vector<1x1x8xf32> to vector<1x8xf32>
    %174 = vector.broadcast %173 : vector<1x8xf32> to vector<16x8xf32>
    %175 = arith.addf %171, %174 : vector<16x8xf32>
    %176 = vector.shape_cast %161 : vector<16x8xf32> to vector<2x8x8xf32>
    %177 = vector.shape_cast %168 : vector<16x8xf32> to vector<2x8x8xf32>
    %178 = vector.shape_cast %175 : vector<16x8xf32> to vector<2x8x8xf32>
    "tpu.trace_start"() <{level = 10 : i32, message = "bqd,bkd->bqk"}> : () -> ()
    %cst_118 = arith.constant dense<0.000000e+00> : vector<2x8x8xf32>
    %179 = tpu.matmul %176, %177, %cst_118 {dimension_numbers = #tpu.dot_dimension_numbers<[2], [2], [1], [1], [0, 0, 0, 1, 1, 1], [0], [0]>} : vector<2x8x8xf32>, vector<2x8x8xf32>, vector<2x8x8xf32> -> vector<2x8x8xf32>
    "tpu.trace_stop"() : () -> ()
    %180 = arith.addf %179, %2 : vector<2x8x8xf32>
    %cst_119 = arith.constant dense<0xFF800000> : vector<2x8xf32>
    %181 = vector.multi_reduction <maximumf>, %180, %cst_119 [2] : vector<2x8x8xf32> to vector<2x8xf32>
    %182 = vector.shape_cast %181 : vector<2x8xf32> to vector<2x8x1xf32>
    %183 = vector.broadcast %182 : vector<2x8x1xf32> to vector<2x8x8xf32>
    %184 = arith.subf %180, %183 : vector<2x8x8xf32>
    %185 = math.exp %184 : vector<2x8x8xf32>
    "tpu.trace_start"() <{level = 10 : i32, message = "bqk,bkd->bqd"}> : () -> ()
    %cst_120 = arith.constant dense<0.000000e+00> : vector<2x8x8xf32>
    %186 = tpu.matmul %185, %178, %cst_120 {dimension_numbers = #tpu.dot_dimension_numbers<[2], [1], [1], [2], [0, 0, 0, 1, 1, 2], [0], [0]>} : vector<2x8x8xf32>, vector<2x8x8xf32>, vector<2x8x8xf32> -> vector<2x8x8xf32>
    "tpu.trace_stop"() : () -> ()
    %cst_121 = arith.constant dense<0.000000e+00> : vector<2x8xf32>
    %187 = vector.multi_reduction <add>, %185, %cst_121 [2] : vector<2x8x8xf32> to vector<2x8xf32>
    %188 = vector.shape_cast %187 : vector<2x8xf32> to vector<2x8x1xf32>
    %189 = tpu.reciprocal %188 {approx = true} : vector<2x8x1xf32> -> vector<2x8x1xf32>
    %190 = vector.broadcast %189 : vector<2x8x1xf32> to vector<2x8x8xf32>
    %191 = arith.mulf %186, %190 : vector<2x8x8xf32>
    %192 = vector.shape_cast %191 : vector<2x8x8xf32> to vector<16x8xf32>
    %c3_122 = arith.constant 3 : index
    %c0_123 = arith.constant 0 : index
    %c0_124 = arith.constant 0 : index
    %193 = vector.load %arg10[%c3_122, %c0_123, %c0_124] : memref<8x8x32xf32, #tpu.memory_space<vmem>>, vector<1x8x32xf32>
    %194 = vector.shape_cast %193 : vector<1x8x32xf32> to vector<8x32xf32>
    %cst_125 = arith.constant dense<0.000000e+00> : vector<16x32xf32>
    %195 = tpu.matmul %192, %194, %cst_125 {dimension_numbers = #tpu.dot_dimension_numbers<[1], [0], [0], [1], [0, 0, 1, 1], [], []>} : vector<16x8xf32>, vector<8x32xf32>, vector<16x32xf32> -> vector<16x32xf32>
    %196 = arith.addf %154, %195 : vector<16x32xf32>
    %c0_126 = arith.constant 0 : index
    %c0_127 = arith.constant 0 : index
    %c0_128 = arith.constant 0 : index
    %197 = vector.load %arg11[%c0_126, %c0_127, %c0_128] : memref<2x1x32xf32, #tpu.memory_space<vmem>>, vector<1x1x32xf32>
    %198 = vector.shape_cast %197 : vector<1x1x32xf32> to vector<1x32xf32>
    %199 = vector.broadcast %198 : vector<1x32xf32> to vector<16x32xf32>
    %200 = arith.addf %196, %199 : vector<16x32xf32>
    %201 = arith.addf %27, %200 : vector<16x32xf32>
    %c0_129 = arith.constant 0 : index
    %c0_130 = arith.constant 0 : index
    %c0_131 = arith.constant 0 : index
    %202 = vector.load %arg12[%c0_129, %c0_130, %c0_131] : memref<2x1x32xf32, #tpu.memory_space<vmem>>, vector<1x1x32xf32>
    %203 = vector.shape_cast %202 : vector<1x1x32xf32> to vector<1x32xf32>
    %c0_132 = arith.constant 0 : index
    %c0_133 = arith.constant 0 : index
    %c0_134 = arith.constant 0 : index
    %204 = vector.load %arg13[%c0_132, %c0_133, %c0_134] : memref<2x1x32xf32, #tpu.memory_space<vmem>>, vector<1x1x32xf32>
    %205 = vector.shape_cast %204 : vector<1x1x32xf32> to vector<1x32xf32>
    %cst_135 = arith.constant dense<0.000000e+00> : vector<16xf32>
    %206 = vector.multi_reduction <add>, %201, %cst_135 [1] : vector<16x32xf32> to vector<16xf32>
    %207 = vector.shape_cast %206 : vector<16xf32> to vector<16x1xf32>
    %cst_136 = arith.constant 3.200000e+01 : f32
    %208 = vector.broadcast %cst_136 : f32 to vector<16x1xf32>
    %209 = arith.divf %207, %208 : vector<16x1xf32>
    %210 = vector.broadcast %209 : vector<16x1xf32> to vector<16x32xf32>
    %211 = arith.subf %201, %210 : vector<16x32xf32>
    %212 = arith.mulf %211, %211 : vector<16x32xf32>
    %cst_137 = arith.constant dense<0.000000e+00> : vector<16xf32>
    %213 = vector.multi_reduction <add>, %212, %cst_137 [1] : vector<16x32xf32> to vector<16xf32>
    %214 = vector.shape_cast %213 : vector<16xf32> to vector<16x1xf32>
    %cst_138 = arith.constant 3.200000e+01 : f32
    %215 = vector.broadcast %cst_138 : f32 to vector<16x1xf32>
    %216 = arith.divf %214, %215 : vector<16x1xf32>
    %217 = vector.broadcast %209 : vector<16x1xf32> to vector<16x32xf32>
    %218 = arith.subf %201, %217 : vector<16x32xf32>
    %cst_139 = arith.constant 9.99999996E-13 : f32
    %219 = vector.broadcast %cst_139 : f32 to vector<16x1xf32>
    %220 = arith.addf %216, %219 : vector<16x1xf32>
    %221 = math.rsqrt %220 : vector<16x1xf32>
    %222 = vector.broadcast %221 : vector<16x1xf32> to vector<16x32xf32>
    %223 = arith.mulf %218, %222 : vector<16x32xf32>
    %224 = vector.broadcast %203 : vector<1x32xf32> to vector<16x32xf32>
    %225 = arith.mulf %223, %224 : vector<16x32xf32>
    %226 = vector.broadcast %205 : vector<1x32xf32> to vector<16x32xf32>
    %227 = arith.addf %225, %226 : vector<16x32xf32>
    %c0_140 = arith.constant 0 : index
    %c0_141 = arith.constant 0 : index
    %c0_142 = arith.constant 0 : index
    %228 = vector.load %arg14[%c0_140, %c0_141, %c0_142] : memref<2x32x64xf32, #tpu.memory_space<vmem>>, vector<1x32x64xf32>
    %229 = vector.shape_cast %228 : vector<1x32x64xf32> to vector<32x64xf32>
    %cst_143 = arith.constant dense<0.000000e+00> : vector<16x64xf32>
    %230 = tpu.matmul %227, %229, %cst_143 {dimension_numbers = #tpu.dot_dimension_numbers<[1], [0], [0], [1], [0, 0, 1, 1], [], []>} : vector<16x32xf32>, vector<32x64xf32>, vector<16x64xf32> -> vector<16x64xf32>
    %c0_144 = arith.constant 0 : index
    %c0_145 = arith.constant 0 : index
    %c0_146 = arith.constant 0 : index
    %231 = vector.load %arg15[%c0_144, %c0_145, %c0_146] : memref<2x1x64xf32, #tpu.memory_space<vmem>>, vector<1x1x64xf32>
    %232 = vector.shape_cast %231 : vector<1x1x64xf32> to vector<1x64xf32>
    %233 = vector.broadcast %232 : vector<1x64xf32> to vector<16x64xf32>
    %234 = arith.addf %230, %233 : vector<16x64xf32>
    %cst_147 = arith.constant 5.000000e-01 : f32
    %235 = vector.broadcast %cst_147 : f32 to vector<16x64xf32>
    %236 = arith.mulf %235, %234 : vector<16x64xf32>
    %cst_148 = arith.constant 4.471500e-02 : f32
    %237 = vector.broadcast %cst_148 : f32 to vector<16x64xf32>
    %238 = arith.mulf %237, %234 : vector<16x64xf32>
    %239 = arith.mulf %238, %234 : vector<16x64xf32>
    %240 = arith.mulf %239, %234 : vector<16x64xf32>
    %241 = arith.addf %234, %240 : vector<16x64xf32>
    %cst_149 = arith.constant 0.797884583 : f32
    %242 = vector.broadcast %cst_149 : f32 to vector<16x64xf32>
    %243 = arith.mulf %242, %241 : vector<16x64xf32>
    %244 = math.tanh %243 : vector<16x64xf32>
    %cst_150 = arith.constant 1.000000e+00 : f32
    %245 = vector.broadcast %cst_150 : f32 to vector<16x64xf32>
    %246 = arith.addf %245, %244 : vector<16x64xf32>
    %247 = arith.mulf %236, %246 : vector<16x64xf32>
    %c0_151 = arith.constant 0 : index
    %c0_152 = arith.constant 0 : index
    %c0_153 = arith.constant 0 : index
    %248 = vector.load %arg16[%c0_151, %c0_152, %c0_153] : memref<2x64x32xf32, #tpu.memory_space<vmem>>, vector<1x64x32xf32>
    %249 = vector.shape_cast %248 : vector<1x64x32xf32> to vector<64x32xf32>
    %cst_154 = arith.constant dense<0.000000e+00> : vector<16x32xf32>
    %250 = tpu.matmul %247, %249, %cst_154 {dimension_numbers = #tpu.dot_dimension_numbers<[1], [0], [0], [1], [0, 0, 1, 1], [], []>} : vector<16x64xf32>, vector<64x32xf32>, vector<16x32xf32> -> vector<16x32xf32>
    %c0_155 = arith.constant 0 : index
    %c0_156 = arith.constant 0 : index
    %c0_157 = arith.constant 0 : index
    %251 = vector.load %arg17[%c0_155, %c0_156, %c0_157] : memref<2x1x32xf32, #tpu.memory_space<vmem>>, vector<1x1x32xf32>
    %252 = vector.shape_cast %251 : vector<1x1x32xf32> to vector<1x32xf32>
    %253 = vector.broadcast %252 : vector<1x32xf32> to vector<16x32xf32>
    %254 = arith.addf %250, %253 : vector<16x32xf32>
    %255 = arith.addf %227, %254 : vector<16x32xf32>
    %c0_158 = arith.constant 0 : index
    %c0_159 = arith.constant 0 : index
    %c0_160 = arith.constant 0 : index
    %256 = vector.load %arg18[%c0_158, %c0_159, %c0_160] : memref<2x1x32xf32, #tpu.memory_space<vmem>>, vector<1x1x32xf32>
    %257 = vector.shape_cast %256 : vector<1x1x32xf32> to vector<1x32xf32>
    %c0_161 = arith.constant 0 : index
    %c0_162 = arith.constant 0 : index
    %c0_163 = arith.constant 0 : index
    %258 = vector.load %arg19[%c0_161, %c0_162, %c0_163] : memref<2x1x32xf32, #tpu.memory_space<vmem>>, vector<1x1x32xf32>
    %259 = vector.shape_cast %258 : vector<1x1x32xf32> to vector<1x32xf32>
    %cst_164 = arith.constant dense<0.000000e+00> : vector<16xf32>
    %260 = vector.multi_reduction <add>, %255, %cst_164 [1] : vector<16x32xf32> to vector<16xf32>
    %261 = vector.shape_cast %260 : vector<16xf32> to vector<16x1xf32>
    %cst_165 = arith.constant 3.200000e+01 : f32
    %262 = vector.broadcast %cst_165 : f32 to vector<16x1xf32>
    %263 = arith.divf %261, %262 : vector<16x1xf32>
    %264 = vector.broadcast %263 : vector<16x1xf32> to vector<16x32xf32>
    %265 = arith.subf %255, %264 : vector<16x32xf32>
    %266 = arith.mulf %265, %265 : vector<16x32xf32>
    %cst_166 = arith.constant dense<0.000000e+00> : vector<16xf32>
    %267 = vector.multi_reduction <add>, %266, %cst_166 [1] : vector<16x32xf32> to vector<16xf32>
    %268 = vector.shape_cast %267 : vector<16xf32> to vector<16x1xf32>
    %cst_167 = arith.constant 3.200000e+01 : f32
    %269 = vector.broadcast %cst_167 : f32 to vector<16x1xf32>
    %270 = arith.divf %268, %269 : vector<16x1xf32>
    %271 = vector.broadcast %263 : vector<16x1xf32> to vector<16x32xf32>
    %272 = arith.subf %255, %271 : vector<16x32xf32>
    %cst_168 = arith.constant 9.99999996E-13 : f32
    %273 = vector.broadcast %cst_168 : f32 to vector<16x1xf32>
    %274 = arith.addf %270, %273 : vector<16x1xf32>
    %275 = math.rsqrt %274 : vector<16x1xf32>
    %276 = vector.broadcast %275 : vector<16x1xf32> to vector<16x32xf32>
    %277 = arith.mulf %272, %276 : vector<16x32xf32>
    %278 = vector.broadcast %257 : vector<1x32xf32> to vector<16x32xf32>
    %279 = arith.mulf %277, %278 : vector<16x32xf32>
    %280 = vector.broadcast %259 : vector<1x32xf32> to vector<16x32xf32>
    %281 = arith.addf %279, %280 : vector<16x32xf32>
    %cst_169 = arith.constant 0.000000e+00 : f32
    %282 = vector.broadcast %cst_169 : f32 to vector<16x32xf32>
    %c4 = arith.constant 4 : index
    %c0_170 = arith.constant 0 : index
    %c0_171 = arith.constant 0 : index
    %283 = vector.load %arg4[%c4, %c0_170, %c0_171] : memref<8x32x8xf32, #tpu.memory_space<vmem>>, vector<1x32x8xf32>
    %284 = vector.shape_cast %283 : vector<1x32x8xf32> to vector<32x8xf32>
    %cst_172 = arith.constant dense<0.000000e+00> : vector<16x8xf32>
    %285 = tpu.matmul %281, %284, %cst_172 {dimension_numbers = #tpu.dot_dimension_numbers<[1], [0], [0], [1], [0, 0, 1, 1], [], []>} : vector<16x32xf32>, vector<32x8xf32>, vector<16x8xf32> -> vector<16x8xf32>
    %c4_173 = arith.constant 4 : index
    %c0_174 = arith.constant 0 : index
    %c0_175 = arith.constant 0 : index
    %286 = vector.load %arg5[%c4_173, %c0_174, %c0_175] : memref<8x1x8xf32, #tpu.memory_space<vmem>>, vector<1x1x8xf32>
    %287 = vector.shape_cast %286 : vector<1x1x8xf32> to vector<1x8xf32>
    %288 = vector.broadcast %287 : vector<1x8xf32> to vector<16x8xf32>
    %289 = arith.addf %285, %288 : vector<16x8xf32>
    %c4_176 = arith.constant 4 : index
    %c0_177 = arith.constant 0 : index
    %c0_178 = arith.constant 0 : index
    %290 = vector.load %arg6[%c4_176, %c0_177, %c0_178] : memref<8x32x8xf32, #tpu.memory_space<vmem>>, vector<1x32x8xf32>
    %291 = vector.shape_cast %290 : vector<1x32x8xf32> to vector<32x8xf32>
    %cst_179 = arith.constant dense<0.000000e+00> : vector<16x8xf32>
    %292 = tpu.matmul %281, %291, %cst_179 {dimension_numbers = #tpu.dot_dimension_numbers<[1], [0], [0], [1], [0, 0, 1, 1], [], []>} : vector<16x32xf32>, vector<32x8xf32>, vector<16x8xf32> -> vector<16x8xf32>
    %c4_180 = arith.constant 4 : index
    %c0_181 = arith.constant 0 : index
    %c0_182 = arith.constant 0 : index
    %293 = vector.load %arg7[%c4_180, %c0_181, %c0_182] : memref<8x1x8xf32, #tpu.memory_space<vmem>>, vector<1x1x8xf32>
    %294 = vector.shape_cast %293 : vector<1x1x8xf32> to vector<1x8xf32>
    %295 = vector.broadcast %294 : vector<1x8xf32> to vector<16x8xf32>
    %296 = arith.addf %292, %295 : vector<16x8xf32>
    %c4_183 = arith.constant 4 : index
    %c0_184 = arith.constant 0 : index
    %c0_185 = arith.constant 0 : index
    %297 = vector.load %arg8[%c4_183, %c0_184, %c0_185] : memref<8x32x8xf32, #tpu.memory_space<vmem>>, vector<1x32x8xf32>
    %298 = vector.shape_cast %297 : vector<1x32x8xf32> to vector<32x8xf32>
    %cst_186 = arith.constant dense<0.000000e+00> : vector<16x8xf32>
    %299 = tpu.matmul %281, %298, %cst_186 {dimension_numbers = #tpu.dot_dimension_numbers<[1], [0], [0], [1], [0, 0, 1, 1], [], []>} : vector<16x32xf32>, vector<32x8xf32>, vector<16x8xf32> -> vector<16x8xf32>
    %c4_187 = arith.constant 4 : index
    %c0_188 = arith.constant 0 : index
    %c0_189 = arith.constant 0 : index
    %300 = vector.load %arg9[%c4_187, %c0_188, %c0_189] : memref<8x1x8xf32, #tpu.memory_space<vmem>>, vector<1x1x8xf32>
    %301 = vector.shape_cast %300 : vector<1x1x8xf32> to vector<1x8xf32>
    %302 = vector.broadcast %301 : vector<1x8xf32> to vector<16x8xf32>
    %303 = arith.addf %299, %302 : vector<16x8xf32>
    %304 = vector.shape_cast %289 : vector<16x8xf32> to vector<2x8x8xf32>
    %305 = vector.shape_cast %296 : vector<16x8xf32> to vector<2x8x8xf32>
    %306 = vector.shape_cast %303 : vector<16x8xf32> to vector<2x8x8xf32>
    "tpu.trace_start"() <{level = 10 : i32, message = "bqd,bkd->bqk"}> : () -> ()
    %cst_190 = arith.constant dense<0.000000e+00> : vector<2x8x8xf32>
    %307 = tpu.matmul %304, %305, %cst_190 {dimension_numbers = #tpu.dot_dimension_numbers<[2], [2], [1], [1], [0, 0, 0, 1, 1, 1], [0], [0]>} : vector<2x8x8xf32>, vector<2x8x8xf32>, vector<2x8x8xf32> -> vector<2x8x8xf32>
    "tpu.trace_stop"() : () -> ()
    %308 = arith.addf %307, %2 : vector<2x8x8xf32>
    %cst_191 = arith.constant dense<0xFF800000> : vector<2x8xf32>
    %309 = vector.multi_reduction <maximumf>, %308, %cst_191 [2] : vector<2x8x8xf32> to vector<2x8xf32>
    %310 = vector.shape_cast %309 : vector<2x8xf32> to vector<2x8x1xf32>
    %311 = vector.broadcast %310 : vector<2x8x1xf32> to vector<2x8x8xf32>
    %312 = arith.subf %308, %311 : vector<2x8x8xf32>
    %313 = math.exp %312 : vector<2x8x8xf32>
    "tpu.trace_start"() <{level = 10 : i32, message = "bqk,bkd->bqd"}> : () -> ()
    %cst_192 = arith.constant dense<0.000000e+00> : vector<2x8x8xf32>
    %314 = tpu.matmul %313, %306, %cst_192 {dimension_numbers = #tpu.dot_dimension_numbers<[2], [1], [1], [2], [0, 0, 0, 1, 1, 2], [0], [0]>} : vector<2x8x8xf32>, vector<2x8x8xf32>, vector<2x8x8xf32> -> vector<2x8x8xf32>
    "tpu.trace_stop"() : () -> ()
    %cst_193 = arith.constant dense<0.000000e+00> : vector<2x8xf32>
    %315 = vector.multi_reduction <add>, %313, %cst_193 [2] : vector<2x8x8xf32> to vector<2x8xf32>
    %316 = vector.shape_cast %315 : vector<2x8xf32> to vector<2x8x1xf32>
    %317 = tpu.reciprocal %316 {approx = true} : vector<2x8x1xf32> -> vector<2x8x1xf32>
    %318 = vector.broadcast %317 : vector<2x8x1xf32> to vector<2x8x8xf32>
    %319 = arith.mulf %314, %318 : vector<2x8x8xf32>
    %320 = vector.shape_cast %319 : vector<2x8x8xf32> to vector<16x8xf32>
    %c4_194 = arith.constant 4 : index
    %c0_195 = arith.constant 0 : index
    %c0_196 = arith.constant 0 : index
    %321 = vector.load %arg10[%c4_194, %c0_195, %c0_196] : memref<8x8x32xf32, #tpu.memory_space<vmem>>, vector<1x8x32xf32>
    %322 = vector.shape_cast %321 : vector<1x8x32xf32> to vector<8x32xf32>
    %cst_197 = arith.constant dense<0.000000e+00> : vector<16x32xf32>
    %323 = tpu.matmul %320, %322, %cst_197 {dimension_numbers = #tpu.dot_dimension_numbers<[1], [0], [0], [1], [0, 0, 1, 1], [], []>} : vector<16x8xf32>, vector<8x32xf32>, vector<16x32xf32> -> vector<16x32xf32>
    %324 = arith.addf %282, %323 : vector<16x32xf32>
    %c5 = arith.constant 5 : index
    %c0_198 = arith.constant 0 : index
    %c0_199 = arith.constant 0 : index
    %325 = vector.load %arg4[%c5, %c0_198, %c0_199] : memref<8x32x8xf32, #tpu.memory_space<vmem>>, vector<1x32x8xf32>
    %326 = vector.shape_cast %325 : vector<1x32x8xf32> to vector<32x8xf32>
    %cst_200 = arith.constant dense<0.000000e+00> : vector<16x8xf32>
    %327 = tpu.matmul %281, %326, %cst_200 {dimension_numbers = #tpu.dot_dimension_numbers<[1], [0], [0], [1], [0, 0, 1, 1], [], []>} : vector<16x32xf32>, vector<32x8xf32>, vector<16x8xf32> -> vector<16x8xf32>
    %c5_201 = arith.constant 5 : index
    %c0_202 = arith.constant 0 : index
    %c0_203 = arith.constant 0 : index
    %328 = vector.load %arg5[%c5_201, %c0_202, %c0_203] : memref<8x1x8xf32, #tpu.memory_space<vmem>>, vector<1x1x8xf32>
    %329 = vector.shape_cast %328 : vector<1x1x8xf32> to vector<1x8xf32>
    %330 = vector.broadcast %329 : vector<1x8xf32> to vector<16x8xf32>
    %331 = arith.addf %327, %330 : vector<16x8xf32>
    %c5_204 = arith.constant 5 : index
    %c0_205 = arith.constant 0 : index
    %c0_206 = arith.constant 0 : index
    %332 = vector.load %arg6[%c5_204, %c0_205, %c0_206] : memref<8x32x8xf32, #tpu.memory_space<vmem>>, vector<1x32x8xf32>
    %333 = vector.shape_cast %332 : vector<1x32x8xf32> to vector<32x8xf32>
    %cst_207 = arith.constant dense<0.000000e+00> : vector<16x8xf32>
    %334 = tpu.matmul %281, %333, %cst_207 {dimension_numbers = #tpu.dot_dimension_numbers<[1], [0], [0], [1], [0, 0, 1, 1], [], []>} : vector<16x32xf32>, vector<32x8xf32>, vector<16x8xf32> -> vector<16x8xf32>
    %c5_208 = arith.constant 5 : index
    %c0_209 = arith.constant 0 : index
    %c0_210 = arith.constant 0 : index
    %335 = vector.load %arg7[%c5_208, %c0_209, %c0_210] : memref<8x1x8xf32, #tpu.memory_space<vmem>>, vector<1x1x8xf32>
    %336 = vector.shape_cast %335 : vector<1x1x8xf32> to vector<1x8xf32>
    %337 = vector.broadcast %336 : vector<1x8xf32> to vector<16x8xf32>
    %338 = arith.addf %334, %337 : vector<16x8xf32>
    %c5_211 = arith.constant 5 : index
    %c0_212 = arith.constant 0 : index
    %c0_213 = arith.constant 0 : index
    %339 = vector.load %arg8[%c5_211, %c0_212, %c0_213] : memref<8x32x8xf32, #tpu.memory_space<vmem>>, vector<1x32x8xf32>
    %340 = vector.shape_cast %339 : vector<1x32x8xf32> to vector<32x8xf32>
    %cst_214 = arith.constant dense<0.000000e+00> : vector<16x8xf32>
    %341 = tpu.matmul %281, %340, %cst_214 {dimension_numbers = #tpu.dot_dimension_numbers<[1], [0], [0], [1], [0, 0, 1, 1], [], []>} : vector<16x32xf32>, vector<32x8xf32>, vector<16x8xf32> -> vector<16x8xf32>
    %c5_215 = arith.constant 5 : index
    %c0_216 = arith.constant 0 : index
    %c0_217 = arith.constant 0 : index
    %342 = vector.load %arg9[%c5_215, %c0_216, %c0_217] : memref<8x1x8xf32, #tpu.memory_space<vmem>>, vector<1x1x8xf32>
    %343 = vector.shape_cast %342 : vector<1x1x8xf32> to vector<1x8xf32>
    %344 = vector.broadcast %343 : vector<1x8xf32> to vector<16x8xf32>
    %345 = arith.addf %341, %344 : vector<16x8xf32>
    %346 = vector.shape_cast %331 : vector<16x8xf32> to vector<2x8x8xf32>
    %347 = vector.shape_cast %338 : vector<16x8xf32> to vector<2x8x8xf32>
    %348 = vector.shape_cast %345 : vector<16x8xf32> to vector<2x8x8xf32>
    "tpu.trace_start"() <{level = 10 : i32, message = "bqd,bkd->bqk"}> : () -> ()
    %cst_218 = arith.constant dense<0.000000e+00> : vector<2x8x8xf32>
    %349 = tpu.matmul %346, %347, %cst_218 {dimension_numbers = #tpu.dot_dimension_numbers<[2], [2], [1], [1], [0, 0, 0, 1, 1, 1], [0], [0]>} : vector<2x8x8xf32>, vector<2x8x8xf32>, vector<2x8x8xf32> -> vector<2x8x8xf32>
    "tpu.trace_stop"() : () -> ()
    %350 = arith.addf %349, %2 : vector<2x8x8xf32>
    %cst_219 = arith.constant dense<0xFF800000> : vector<2x8xf32>
    %351 = vector.multi_reduction <maximumf>, %350, %cst_219 [2] : vector<2x8x8xf32> to vector<2x8xf32>
    %352 = vector.shape_cast %351 : vector<2x8xf32> to vector<2x8x1xf32>
    %353 = vector.broadcast %352 : vector<2x8x1xf32> to vector<2x8x8xf32>
    %354 = arith.subf %350, %353 : vector<2x8x8xf32>
    %355 = math.exp %354 : vector<2x8x8xf32>
    "tpu.trace_start"() <{level = 10 : i32, message = "bqk,bkd->bqd"}> : () -> ()
    %cst_220 = arith.constant dense<0.000000e+00> : vector<2x8x8xf32>
    %356 = tpu.matmul %355, %348, %cst_220 {dimension_numbers = #tpu.dot_dimension_numbers<[2], [1], [1], [2], [0, 0, 0, 1, 1, 2], [0], [0]>} : vector<2x8x8xf32>, vector<2x8x8xf32>, vector<2x8x8xf32> -> vector<2x8x8xf32>
    "tpu.trace_stop"() : () -> ()
    %cst_221 = arith.constant dense<0.000000e+00> : vector<2x8xf32>
    %357 = vector.multi_reduction <add>, %355, %cst_221 [2] : vector<2x8x8xf32> to vector<2x8xf32>
    %358 = vector.shape_cast %357 : vector<2x8xf32> to vector<2x8x1xf32>
    %359 = tpu.reciprocal %358 {approx = true} : vector<2x8x1xf32> -> vector<2x8x1xf32>
    %360 = vector.broadcast %359 : vector<2x8x1xf32> to vector<2x8x8xf32>
    %361 = arith.mulf %356, %360 : vector<2x8x8xf32>
    %362 = vector.shape_cast %361 : vector<2x8x8xf32> to vector<16x8xf32>
    %c5_222 = arith.constant 5 : index
    %c0_223 = arith.constant 0 : index
    %c0_224 = arith.constant 0 : index
    %363 = vector.load %arg10[%c5_222, %c0_223, %c0_224] : memref<8x8x32xf32, #tpu.memory_space<vmem>>, vector<1x8x32xf32>
    %364 = vector.shape_cast %363 : vector<1x8x32xf32> to vector<8x32xf32>
    %cst_225 = arith.constant dense<0.000000e+00> : vector<16x32xf32>
    %365 = tpu.matmul %362, %364, %cst_225 {dimension_numbers = #tpu.dot_dimension_numbers<[1], [0], [0], [1], [0, 0, 1, 1], [], []>} : vector<16x8xf32>, vector<8x32xf32>, vector<16x32xf32> -> vector<16x32xf32>
    %366 = arith.addf %324, %365 : vector<16x32xf32>
    %c6 = arith.constant 6 : index
    %c0_226 = arith.constant 0 : index
    %c0_227 = arith.constant 0 : index
    %367 = vector.load %arg4[%c6, %c0_226, %c0_227] : memref<8x32x8xf32, #tpu.memory_space<vmem>>, vector<1x32x8xf32>
    %368 = vector.shape_cast %367 : vector<1x32x8xf32> to vector<32x8xf32>
    %cst_228 = arith.constant dense<0.000000e+00> : vector<16x8xf32>
    %369 = tpu.matmul %281, %368, %cst_228 {dimension_numbers = #tpu.dot_dimension_numbers<[1], [0], [0], [1], [0, 0, 1, 1], [], []>} : vector<16x32xf32>, vector<32x8xf32>, vector<16x8xf32> -> vector<16x8xf32>
    %c6_229 = arith.constant 6 : index
    %c0_230 = arith.constant 0 : index
    %c0_231 = arith.constant 0 : index
    %370 = vector.load %arg5[%c6_229, %c0_230, %c0_231] : memref<8x1x8xf32, #tpu.memory_space<vmem>>, vector<1x1x8xf32>
    %371 = vector.shape_cast %370 : vector<1x1x8xf32> to vector<1x8xf32>
    %372 = vector.broadcast %371 : vector<1x8xf32> to vector<16x8xf32>
    %373 = arith.addf %369, %372 : vector<16x8xf32>
    %c6_232 = arith.constant 6 : index
    %c0_233 = arith.constant 0 : index
    %c0_234 = arith.constant 0 : index
    %374 = vector.load %arg6[%c6_232, %c0_233, %c0_234] : memref<8x32x8xf32, #tpu.memory_space<vmem>>, vector<1x32x8xf32>
    %375 = vector.shape_cast %374 : vector<1x32x8xf32> to vector<32x8xf32>
    %cst_235 = arith.constant dense<0.000000e+00> : vector<16x8xf32>
    %376 = tpu.matmul %281, %375, %cst_235 {dimension_numbers = #tpu.dot_dimension_numbers<[1], [0], [0], [1], [0, 0, 1, 1], [], []>} : vector<16x32xf32>, vector<32x8xf32>, vector<16x8xf32> -> vector<16x8xf32>
    %c6_236 = arith.constant 6 : index
    %c0_237 = arith.constant 0 : index
    %c0_238 = arith.constant 0 : index
    %377 = vector.load %arg7[%c6_236, %c0_237, %c0_238] : memref<8x1x8xf32, #tpu.memory_space<vmem>>, vector<1x1x8xf32>
    %378 = vector.shape_cast %377 : vector<1x1x8xf32> to vector<1x8xf32>
    %379 = vector.broadcast %378 : vector<1x8xf32> to vector<16x8xf32>
    %380 = arith.addf %376, %379 : vector<16x8xf32>
    %c6_239 = arith.constant 6 : index
    %c0_240 = arith.constant 0 : index
    %c0_241 = arith.constant 0 : index
    %381 = vector.load %arg8[%c6_239, %c0_240, %c0_241] : memref<8x32x8xf32, #tpu.memory_space<vmem>>, vector<1x32x8xf32>
    %382 = vector.shape_cast %381 : vector<1x32x8xf32> to vector<32x8xf32>
    %cst_242 = arith.constant dense<0.000000e+00> : vector<16x8xf32>
    %383 = tpu.matmul %281, %382, %cst_242 {dimension_numbers = #tpu.dot_dimension_numbers<[1], [0], [0], [1], [0, 0, 1, 1], [], []>} : vector<16x32xf32>, vector<32x8xf32>, vector<16x8xf32> -> vector<16x8xf32>
    %c6_243 = arith.constant 6 : index
    %c0_244 = arith.constant 0 : index
    %c0_245 = arith.constant 0 : index
    %384 = vector.load %arg9[%c6_243, %c0_244, %c0_245] : memref<8x1x8xf32, #tpu.memory_space<vmem>>, vector<1x1x8xf32>
    %385 = vector.shape_cast %384 : vector<1x1x8xf32> to vector<1x8xf32>
    %386 = vector.broadcast %385 : vector<1x8xf32> to vector<16x8xf32>
    %387 = arith.addf %383, %386 : vector<16x8xf32>
    %388 = vector.shape_cast %373 : vector<16x8xf32> to vector<2x8x8xf32>
    %389 = vector.shape_cast %380 : vector<16x8xf32> to vector<2x8x8xf32>
    %390 = vector.shape_cast %387 : vector<16x8xf32> to vector<2x8x8xf32>
    "tpu.trace_start"() <{level = 10 : i32, message = "bqd,bkd->bqk"}> : () -> ()
    %cst_246 = arith.constant dense<0.000000e+00> : vector<2x8x8xf32>
    %391 = tpu.matmul %388, %389, %cst_246 {dimension_numbers = #tpu.dot_dimension_numbers<[2], [2], [1], [1], [0, 0, 0, 1, 1, 1], [0], [0]>} : vector<2x8x8xf32>, vector<2x8x8xf32>, vector<2x8x8xf32> -> vector<2x8x8xf32>
    "tpu.trace_stop"() : () -> ()
    %392 = arith.addf %391, %2 : vector<2x8x8xf32>
    %cst_247 = arith.constant dense<0xFF800000> : vector<2x8xf32>
    %393 = vector.multi_reduction <maximumf>, %392, %cst_247 [2] : vector<2x8x8xf32> to vector<2x8xf32>
    %394 = vector.shape_cast %393 : vector<2x8xf32> to vector<2x8x1xf32>
    %395 = vector.broadcast %394 : vector<2x8x1xf32> to vector<2x8x8xf32>
    %396 = arith.subf %392, %395 : vector<2x8x8xf32>
    %397 = math.exp %396 : vector<2x8x8xf32>
    "tpu.trace_start"() <{level = 10 : i32, message = "bqk,bkd->bqd"}> : () -> ()
    %cst_248 = arith.constant dense<0.000000e+00> : vector<2x8x8xf32>
    %398 = tpu.matmul %397, %390, %cst_248 {dimension_numbers = #tpu.dot_dimension_numbers<[2], [1], [1], [2], [0, 0, 0, 1, 1, 2], [0], [0]>} : vector<2x8x8xf32>, vector<2x8x8xf32>, vector<2x8x8xf32> -> vector<2x8x8xf32>
    "tpu.trace_stop"() : () -> ()
    %cst_249 = arith.constant dense<0.000000e+00> : vector<2x8xf32>
    %399 = vector.multi_reduction <add>, %397, %cst_249 [2] : vector<2x8x8xf32> to vector<2x8xf32>
    %400 = vector.shape_cast %399 : vector<2x8xf32> to vector<2x8x1xf32>
    %401 = tpu.reciprocal %400 {approx = true} : vector<2x8x1xf32> -> vector<2x8x1xf32>
    %402 = vector.broadcast %401 : vector<2x8x1xf32> to vector<2x8x8xf32>
    %403 = arith.mulf %398, %402 : vector<2x8x8xf32>
    %404 = vector.shape_cast %403 : vector<2x8x8xf32> to vector<16x8xf32>
    %c6_250 = arith.constant 6 : index
    %c0_251 = arith.constant 0 : index
    %c0_252 = arith.constant 0 : index
    %405 = vector.load %arg10[%c6_250, %c0_251, %c0_252] : memref<8x8x32xf32, #tpu.memory_space<vmem>>, vector<1x8x32xf32>
    %406 = vector.shape_cast %405 : vector<1x8x32xf32> to vector<8x32xf32>
    %cst_253 = arith.constant dense<0.000000e+00> : vector<16x32xf32>
    %407 = tpu.matmul %404, %406, %cst_253 {dimension_numbers = #tpu.dot_dimension_numbers<[1], [0], [0], [1], [0, 0, 1, 1], [], []>} : vector<16x8xf32>, vector<8x32xf32>, vector<16x32xf32> -> vector<16x32xf32>
    %408 = arith.addf %366, %407 : vector<16x32xf32>
    %c7 = arith.constant 7 : index
    %c0_254 = arith.constant 0 : index
    %c0_255 = arith.constant 0 : index
    %409 = vector.load %arg4[%c7, %c0_254, %c0_255] : memref<8x32x8xf32, #tpu.memory_space<vmem>>, vector<1x32x8xf32>
    %410 = vector.shape_cast %409 : vector<1x32x8xf32> to vector<32x8xf32>
    %cst_256 = arith.constant dense<0.000000e+00> : vector<16x8xf32>
    %411 = tpu.matmul %281, %410, %cst_256 {dimension_numbers = #tpu.dot_dimension_numbers<[1], [0], [0], [1], [0, 0, 1, 1], [], []>} : vector<16x32xf32>, vector<32x8xf32>, vector<16x8xf32> -> vector<16x8xf32>
    %c7_257 = arith.constant 7 : index
    %c0_258 = arith.constant 0 : index
    %c0_259 = arith.constant 0 : index
    %412 = vector.load %arg5[%c7_257, %c0_258, %c0_259] : memref<8x1x8xf32, #tpu.memory_space<vmem>>, vector<1x1x8xf32>
    %413 = vector.shape_cast %412 : vector<1x1x8xf32> to vector<1x8xf32>
    %414 = vector.broadcast %413 : vector<1x8xf32> to vector<16x8xf32>
    %415 = arith.addf %411, %414 : vector<16x8xf32>
    %c7_260 = arith.constant 7 : index
    %c0_261 = arith.constant 0 : index
    %c0_262 = arith.constant 0 : index
    %416 = vector.load %arg6[%c7_260, %c0_261, %c0_262] : memref<8x32x8xf32, #tpu.memory_space<vmem>>, vector<1x32x8xf32>
    %417 = vector.shape_cast %416 : vector<1x32x8xf32> to vector<32x8xf32>
    %cst_263 = arith.constant dense<0.000000e+00> : vector<16x8xf32>
    %418 = tpu.matmul %281, %417, %cst_263 {dimension_numbers = #tpu.dot_dimension_numbers<[1], [0], [0], [1], [0, 0, 1, 1], [], []>} : vector<16x32xf32>, vector<32x8xf32>, vector<16x8xf32> -> vector<16x8xf32>
    %c7_264 = arith.constant 7 : index
    %c0_265 = arith.constant 0 : index
    %c0_266 = arith.constant 0 : index
    %419 = vector.load %arg7[%c7_264, %c0_265, %c0_266] : memref<8x1x8xf32, #tpu.memory_space<vmem>>, vector<1x1x8xf32>
    %420 = vector.shape_cast %419 : vector<1x1x8xf32> to vector<1x8xf32>
    %421 = vector.broadcast %420 : vector<1x8xf32> to vector<16x8xf32>
    %422 = arith.addf %418, %421 : vector<16x8xf32>
    %c7_267 = arith.constant 7 : index
    %c0_268 = arith.constant 0 : index
    %c0_269 = arith.constant 0 : index
    %423 = vector.load %arg8[%c7_267, %c0_268, %c0_269] : memref<8x32x8xf32, #tpu.memory_space<vmem>>, vector<1x32x8xf32>
    %424 = vector.shape_cast %423 : vector<1x32x8xf32> to vector<32x8xf32>
    %cst_270 = arith.constant dense<0.000000e+00> : vector<16x8xf32>
    %425 = tpu.matmul %281, %424, %cst_270 {dimension_numbers = #tpu.dot_dimension_numbers<[1], [0], [0], [1], [0, 0, 1, 1], [], []>} : vector<16x32xf32>, vector<32x8xf32>, vector<16x8xf32> -> vector<16x8xf32>
    %c7_271 = arith.constant 7 : index
    %c0_272 = arith.constant 0 : index
    %c0_273 = arith.constant 0 : index
    %426 = vector.load %arg9[%c7_271, %c0_272, %c0_273] : memref<8x1x8xf32, #tpu.memory_space<vmem>>, vector<1x1x8xf32>
    %427 = vector.shape_cast %426 : vector<1x1x8xf32> to vector<1x8xf32>
    %428 = vector.broadcast %427 : vector<1x8xf32> to vector<16x8xf32>
    %429 = arith.addf %425, %428 : vector<16x8xf32>
    %430 = vector.shape_cast %415 : vector<16x8xf32> to vector<2x8x8xf32>
    %431 = vector.shape_cast %422 : vector<16x8xf32> to vector<2x8x8xf32>
    %432 = vector.shape_cast %429 : vector<16x8xf32> to vector<2x8x8xf32>
    "tpu.trace_start"() <{level = 10 : i32, message = "bqd,bkd->bqk"}> : () -> ()
    %cst_274 = arith.constant dense<0.000000e+00> : vector<2x8x8xf32>
    %433 = tpu.matmul %430, %431, %cst_274 {dimension_numbers = #tpu.dot_dimension_numbers<[2], [2], [1], [1], [0, 0, 0, 1, 1, 1], [0], [0]>} : vector<2x8x8xf32>, vector<2x8x8xf32>, vector<2x8x8xf32> -> vector<2x8x8xf32>
    "tpu.trace_stop"() : () -> ()
    %434 = arith.addf %433, %2 : vector<2x8x8xf32>
    %cst_275 = arith.constant dense<0xFF800000> : vector<2x8xf32>
    %435 = vector.multi_reduction <maximumf>, %434, %cst_275 [2] : vector<2x8x8xf32> to vector<2x8xf32>
    %436 = vector.shape_cast %435 : vector<2x8xf32> to vector<2x8x1xf32>
    %437 = vector.broadcast %436 : vector<2x8x1xf32> to vector<2x8x8xf32>
    %438 = arith.subf %434, %437 : vector<2x8x8xf32>
    %439 = math.exp %438 : vector<2x8x8xf32>
    "tpu.trace_start"() <{level = 10 : i32, message = "bqk,bkd->bqd"}> : () -> ()
    %cst_276 = arith.constant dense<0.000000e+00> : vector<2x8x8xf32>
    %440 = tpu.matmul %439, %432, %cst_276 {dimension_numbers = #tpu.dot_dimension_numbers<[2], [1], [1], [2], [0, 0, 0, 1, 1, 2], [0], [0]>} : vector<2x8x8xf32>, vector<2x8x8xf32>, vector<2x8x8xf32> -> vector<2x8x8xf32>
    "tpu.trace_stop"() : () -> ()
    %cst_277 = arith.constant dense<0.000000e+00> : vector<2x8xf32>
    %441 = vector.multi_reduction <add>, %439, %cst_277 [2] : vector<2x8x8xf32> to vector<2x8xf32>
    %442 = vector.shape_cast %441 : vector<2x8xf32> to vector<2x8x1xf32>
    %443 = tpu.reciprocal %442 {approx = true} : vector<2x8x1xf32> -> vector<2x8x1xf32>
    %444 = vector.broadcast %443 : vector<2x8x1xf32> to vector<2x8x8xf32>
    %445 = arith.mulf %440, %444 : vector<2x8x8xf32>
    %446 = vector.shape_cast %445 : vector<2x8x8xf32> to vector<16x8xf32>
    %c7_278 = arith.constant 7 : index
    %c0_279 = arith.constant 0 : index
    %c0_280 = arith.constant 0 : index
    %447 = vector.load %arg10[%c7_278, %c0_279, %c0_280] : memref<8x8x32xf32, #tpu.memory_space<vmem>>, vector<1x8x32xf32>
    %448 = vector.shape_cast %447 : vector<1x8x32xf32> to vector<8x32xf32>
    %cst_281 = arith.constant dense<0.000000e+00> : vector<16x32xf32>
    %449 = tpu.matmul %446, %448, %cst_281 {dimension_numbers = #tpu.dot_dimension_numbers<[1], [0], [0], [1], [0, 0, 1, 1], [], []>} : vector<16x8xf32>, vector<8x32xf32>, vector<16x32xf32> -> vector<16x32xf32>
    %450 = arith.addf %408, %449 : vector<16x32xf32>
    %c1_282 = arith.constant 1 : index
    %c0_283 = arith.constant 0 : index
    %c0_284 = arith.constant 0 : index
    %451 = vector.load %arg11[%c1_282, %c0_283, %c0_284] : memref<2x1x32xf32, #tpu.memory_space<vmem>>, vector<1x1x32xf32>
    %452 = vector.shape_cast %451 : vector<1x1x32xf32> to vector<1x32xf32>
    %453 = vector.broadcast %452 : vector<1x32xf32> to vector<16x32xf32>
    %454 = arith.addf %450, %453 : vector<16x32xf32>
    %455 = arith.addf %281, %454 : vector<16x32xf32>
    %c1_285 = arith.constant 1 : index
    %c0_286 = arith.constant 0 : index
    %c0_287 = arith.constant 0 : index
    %456 = vector.load %arg12[%c1_285, %c0_286, %c0_287] : memref<2x1x32xf32, #tpu.memory_space<vmem>>, vector<1x1x32xf32>
    %457 = vector.shape_cast %456 : vector<1x1x32xf32> to vector<1x32xf32>
    %c1_288 = arith.constant 1 : index
    %c0_289 = arith.constant 0 : index
    %c0_290 = arith.constant 0 : index
    %458 = vector.load %arg13[%c1_288, %c0_289, %c0_290] : memref<2x1x32xf32, #tpu.memory_space<vmem>>, vector<1x1x32xf32>
    %459 = vector.shape_cast %458 : vector<1x1x32xf32> to vector<1x32xf32>
    %cst_291 = arith.constant dense<0.000000e+00> : vector<16xf32>
    %460 = vector.multi_reduction <add>, %455, %cst_291 [1] : vector<16x32xf32> to vector<16xf32>
    %461 = vector.shape_cast %460 : vector<16xf32> to vector<16x1xf32>
    %cst_292 = arith.constant 3.200000e+01 : f32
    %462 = vector.broadcast %cst_292 : f32 to vector<16x1xf32>
    %463 = arith.divf %461, %462 : vector<16x1xf32>
    %464 = vector.broadcast %463 : vector<16x1xf32> to vector<16x32xf32>
    %465 = arith.subf %455, %464 : vector<16x32xf32>
    %466 = arith.mulf %465, %465 : vector<16x32xf32>
    %cst_293 = arith.constant dense<0.000000e+00> : vector<16xf32>
    %467 = vector.multi_reduction <add>, %466, %cst_293 [1] : vector<16x32xf32> to vector<16xf32>
    %468 = vector.shape_cast %467 : vector<16xf32> to vector<16x1xf32>
    %cst_294 = arith.constant 3.200000e+01 : f32
    %469 = vector.broadcast %cst_294 : f32 to vector<16x1xf32>
    %470 = arith.divf %468, %469 : vector<16x1xf32>
    %471 = vector.broadcast %463 : vector<16x1xf32> to vector<16x32xf32>
    %472 = arith.subf %455, %471 : vector<16x32xf32>
    %cst_295 = arith.constant 9.99999996E-13 : f32
    %473 = vector.broadcast %cst_295 : f32 to vector<16x1xf32>
    %474 = arith.addf %470, %473 : vector<16x1xf32>
    %475 = math.rsqrt %474 : vector<16x1xf32>
    %476 = vector.broadcast %475 : vector<16x1xf32> to vector<16x32xf32>
    %477 = arith.mulf %472, %476 : vector<16x32xf32>
    %478 = vector.broadcast %457 : vector<1x32xf32> to vector<16x32xf32>
    %479 = arith.mulf %477, %478 : vector<16x32xf32>
    %480 = vector.broadcast %459 : vector<1x32xf32> to vector<16x32xf32>
    %481 = arith.addf %479, %480 : vector<16x32xf32>
    %c1_296 = arith.constant 1 : index
    %c0_297 = arith.constant 0 : index
    %c0_298 = arith.constant 0 : index
    %482 = vector.load %arg14[%c1_296, %c0_297, %c0_298] : memref<2x32x64xf32, #tpu.memory_space<vmem>>, vector<1x32x64xf32>
    %483 = vector.shape_cast %482 : vector<1x32x64xf32> to vector<32x64xf32>
    %cst_299 = arith.constant dense<0.000000e+00> : vector<16x64xf32>
    %484 = tpu.matmul %481, %483, %cst_299 {dimension_numbers = #tpu.dot_dimension_numbers<[1], [0], [0], [1], [0, 0, 1, 1], [], []>} : vector<16x32xf32>, vector<32x64xf32>, vector<16x64xf32> -> vector<16x64xf32>
    %c1_300 = arith.constant 1 : index
    %c0_301 = arith.constant 0 : index
    %c0_302 = arith.constant 0 : index
    %485 = vector.load %arg15[%c1_300, %c0_301, %c0_302] : memref<2x1x64xf32, #tpu.memory_space<vmem>>, vector<1x1x64xf32>
    %486 = vector.shape_cast %485 : vector<1x1x64xf32> to vector<1x64xf32>
    %487 = vector.broadcast %486 : vector<1x64xf32> to vector<16x64xf32>
    %488 = arith.addf %484, %487 : vector<16x64xf32>
    %cst_303 = arith.constant 5.000000e-01 : f32
    %489 = vector.broadcast %cst_303 : f32 to vector<16x64xf32>
    %490 = arith.mulf %489, %488 : vector<16x64xf32>
    %cst_304 = arith.constant 4.471500e-02 : f32
    %491 = vector.broadcast %cst_304 : f32 to vector<16x64xf32>
    %492 = arith.mulf %491, %488 : vector<16x64xf32>
    %493 = arith.mulf %492, %488 : vector<16x64xf32>
    %494 = arith.mulf %493, %488 : vector<16x64xf32>
    %495 = arith.addf %488, %494 : vector<16x64xf32>
    %cst_305 = arith.constant 0.797884583 : f32
    %496 = vector.broadcast %cst_305 : f32 to vector<16x64xf32>
    %497 = arith.mulf %496, %495 : vector<16x64xf32>
    %498 = math.tanh %497 : vector<16x64xf32>
    %cst_306 = arith.constant 1.000000e+00 : f32
    %499 = vector.broadcast %cst_306 : f32 to vector<16x64xf32>
    %500 = arith.addf %499, %498 : vector<16x64xf32>
    %501 = arith.mulf %490, %500 : vector<16x64xf32>
    %c1_307 = arith.constant 1 : index
    %c0_308 = arith.constant 0 : index
    %c0_309 = arith.constant 0 : index
    %502 = vector.load %arg16[%c1_307, %c0_308, %c0_309] : memref<2x64x32xf32, #tpu.memory_space<vmem>>, vector<1x64x32xf32>
    %503 = vector.shape_cast %502 : vector<1x64x32xf32> to vector<64x32xf32>
    %cst_310 = arith.constant dense<0.000000e+00> : vector<16x32xf32>
    %504 = tpu.matmul %501, %503, %cst_310 {dimension_numbers = #tpu.dot_dimension_numbers<[1], [0], [0], [1], [0, 0, 1, 1], [], []>} : vector<16x64xf32>, vector<64x32xf32>, vector<16x32xf32> -> vector<16x32xf32>
    %c1_311 = arith.constant 1 : index
    %c0_312 = arith.constant 0 : index
    %c0_313 = arith.constant 0 : index
    %505 = vector.load %arg17[%c1_311, %c0_312, %c0_313] : memref<2x1x32xf32, #tpu.memory_space<vmem>>, vector<1x1x32xf32>
    %506 = vector.shape_cast %505 : vector<1x1x32xf32> to vector<1x32xf32>
    %507 = vector.broadcast %506 : vector<1x32xf32> to vector<16x32xf32>
    %508 = arith.addf %504, %507 : vector<16x32xf32>
    %509 = arith.addf %481, %508 : vector<16x32xf32>
    %c1_314 = arith.constant 1 : index
    %c0_315 = arith.constant 0 : index
    %c0_316 = arith.constant 0 : index
    %510 = vector.load %arg18[%c1_314, %c0_315, %c0_316] : memref<2x1x32xf32, #tpu.memory_space<vmem>>, vector<1x1x32xf32>
    %511 = vector.shape_cast %510 : vector<1x1x32xf32> to vector<1x32xf32>
    %c1_317 = arith.constant 1 : index
    %c0_318 = arith.constant 0 : index
    %c0_319 = arith.constant 0 : index
    %512 = vector.load %arg19[%c1_317, %c0_318, %c0_319] : memref<2x1x32xf32, #tpu.memory_space<vmem>>, vector<1x1x32xf32>
    %513 = vector.shape_cast %512 : vector<1x1x32xf32> to vector<1x32xf32>
    %cst_320 = arith.constant dense<0.000000e+00> : vector<16xf32>
    %514 = vector.multi_reduction <add>, %509, %cst_320 [1] : vector<16x32xf32> to vector<16xf32>
    %515 = vector.shape_cast %514 : vector<16xf32> to vector<16x1xf32>
    %cst_321 = arith.constant 3.200000e+01 : f32
    %516 = vector.broadcast %cst_321 : f32 to vector<16x1xf32>
    %517 = arith.divf %515, %516 : vector<16x1xf32>
    %518 = vector.broadcast %517 : vector<16x1xf32> to vector<16x32xf32>
    %519 = arith.subf %509, %518 : vector<16x32xf32>
    %520 = arith.mulf %519, %519 : vector<16x32xf32>
    %cst_322 = arith.constant dense<0.000000e+00> : vector<16xf32>
    %521 = vector.multi_reduction <add>, %520, %cst_322 [1] : vector<16x32xf32> to vector<16xf32>
    %522 = vector.shape_cast %521 : vector<16xf32> to vector<16x1xf32>
    %cst_323 = arith.constant 3.200000e+01 : f32
    %523 = vector.broadcast %cst_323 : f32 to vector<16x1xf32>
    %524 = arith.divf %522, %523 : vector<16x1xf32>
    %525 = vector.broadcast %517 : vector<16x1xf32> to vector<16x32xf32>
    %526 = arith.subf %509, %525 : vector<16x32xf32>
    %cst_324 = arith.constant 9.99999996E-13 : f32
    %527 = vector.broadcast %cst_324 : f32 to vector<16x1xf32>
    %528 = arith.addf %524, %527 : vector<16x1xf32>
    %529 = math.rsqrt %528 : vector<16x1xf32>
    %530 = vector.broadcast %529 : vector<16x1xf32> to vector<16x32xf32>
    %531 = arith.mulf %526, %530 : vector<16x32xf32>
    %532 = vector.broadcast %511 : vector<1x32xf32> to vector<16x32xf32>
    %533 = arith.mulf %531, %532 : vector<16x32xf32>
    %534 = vector.broadcast %513 : vector<1x32xf32> to vector<16x32xf32>
    %535 = arith.addf %533, %534 : vector<16x32xf32>
    %c0_325 = arith.constant 0 : index
    %c0_326 = arith.constant 0 : index
    %536 = vector.load %arg20[%c0_325, %c0_326] : memref<16x32xf32, #tpu.memory_space<vmem>>, vector<16x32xf32>
    tpu.vector_store %arg20[%c0_325, %c0_326], %535 {strides = array<i32>} : memref<16x32xf32, #tpu.memory_space<vmem>>, vector<16x32xf32>,
    return
  }
}

</mosaic_0001>

<bundles_post_ra>
// kernel: bert_shard1_forward.1
= control target key start
LH: loop header
LB: loop body
LE: loop exit
PB: predicated region body
PF: predicated region fallthrough
CT: control target
= control target key end

     0   :  { %s8373_s0 = inlined_call_operand.vmem [shape: f32[16,32], index: 0, kind: input, shape index: {}]   ;;  %s8374_s1 = inlined_call_operand.vmem [shape: f32[2,1,8], index: 1, kind: input, shape index: {}]   ;;  %s8375_s2 = inlined_call_operand.vmem [shape: f32[1,32], index: 2, kind: input, shape index: {}]   ;;  %s8376_s3 = inlined_call_operand.vmem [shape: f32[1,32], index: 3, kind: input, shape index: {}]   ;;  %s8377_s4 = inlined_call_operand.vmem [shape: f32[8,32,8], index: 4, kind: input, shape index: {}]   ;;  %s8378_s5 = inlined_call_operand.vmem [shape: f32[8,1,8], index: 5, kind: input, shape index: {}]   ;;  %s8379_s6 = inlined_call_operand.vmem [shape: f32[8,32,8], index: 6, kind: input, shape index: {}]   ;;  %s8380_s7 = inlined_call_operand.vmem [shape: f32[8,1,8], index: 7, kind: input, shape index: {}]   ;;  %s8381_s8 = inlined_call_operand.vmem [shape: f32[8,32,8], index: 8, kind: input, shape index: {}]   ;;  %s8382_s9 = inlined_call_operand.vmem [shape: f32[8,1,8], index: 9, kind: input, shape index: {}]   ;;  %s8383_s10 = inlined_call_operand.vmem [shape: f32[8,8,32], index: 10, kind: input, shape index: {}]   ;;  %s8384_s11 = inlined_call_operand.vmem [shape: f32[2,1,32], index: 11, kind: input, shape index: {}]   ;;  %s8385_s12 = inlined_call_operand.vmem [shape: f32[2,1,32], index: 12, kind: input, shape index: {}]   ;;  %s8386_s13 = inlined_call_operand.vmem [shape: f32[2,1,32], index: 13, kind: input, shape index: {}]   ;;  %s8387_s14 = inlined_call_operand.vmem [shape: f32[2,32,64], index: 14, kind: input, shape index: {}]   ;;  %s8388_s15 = inlined_call_operand.vmem [shape: f32[2,1,64], index: 15, kind: input, shape index: {}]   ;;  %s8389_s16 = inlined_call_operand.vmem [shape: f32[2,64,32], index: 16, kind: input, shape index: {}]   ;;  %s8390_s17 = inlined_call_operand.vmem [shape: f32[2,1,32], index: 17, kind: input, shape index: {}]   ;;  %s8391_s18 = inlined_call_operand.vmem [shape: f32[2,1,32], index: 18, kind: input, shape index: {}]   ;;  %s8392_s19 = inlined_call_operand.vmem [shape: f32[2,1,32], index: 19, kind: input, shape index: {}]   ;;  %s8393_s20 = inlined_call_operand.hbm [shape: f32[16,32], index: 20, kind: output, shape index: {}]  }
   0x1   :  { %8397 = sst [smem:[#allocation5_spill]] %s8373_s0 }
   0x2   :  { %8398 = sst [smem:[#allocation6_spill]] %s8374_s1 }
   0x3   :  { %8399 = sst [smem:[#allocation7_spill]] %s8375_s2 }
   0x4   :  { %8400 = sst [smem:[#allocation8_spill]] %s8376_s3 }
   0x5   :  { %8401 = sst [smem:[#allocation9_spill]] %s8377_s4 }
   0x6   :  { %s8402_s23 = sld [smem:[#allocation5_spill]]  ;;  %vm84_vm0 = vcmask 261120  }
   0xc   :  { %v80_v0 = vld [vmem:[%s8402_s23] sm:$0xff]  ;;  %v81_v1 = vld [vmem:[%s8402_s23 + $0x8] sm:$0xff] }
   0xd   :  { %25 = vsyncpa [#allocation3], 0  ;;  %v85_v2 = vsel %vm84_vm0, %v80_v0, 0.0  ;;  %v88_v3 = vsel %vm84_vm0, %v81_v1, 0.0  ;;  %s8403_s26 = sld [smem:[#allocation9_spill]]  ;;  %v223_v15 = vld [vmem:[%s8379_s6 + $0x18] sm:$0xff] }
   0xe   :  { %86 = vadd.xlane.f32.xlu0 %v85_v2  ;;  %6688 = vmatprep.subr.mxu1 %v223_v15  ;;  %v222_v17 = vld [vmem:[%s8379_s6 + $0x10] sm:$0xff]  ;;  %v221_v19 = vld [vmem:[%s8379_s6 + $0x8] sm:$0xff]  ;;  %v220_v21 = vld [vmem:[%s8379_s6] sm:$0xff]  ;;  %s8404_s30 = sld [smem:[#allocation7_spill]]  ;;  %v7322_v42 = vmov 0.0   ;;  %vm7323_vm1 = vmmov 0  }
   0xf   :  { %6689 = vmatpush3.msra.mxu1 %v223_v15  ;;  %v309_v22 = vld [vmem:[%s8381_s8 + $0x18] sm:$0xff]  ;;  %s8405_s1 = sld [smem:[#allocation8_spill]]  ;;  %v308_v39 = vld [vmem:[%s8381_s8 + $0x10] sm:$0xff]  ;;  %v307_v40 = vld [vmem:[%s8381_s8 + $0x8] sm:$0xff]  ;;  %vm392_vm2 = vcmask 64512   ;;  %vm2980_vm3 = vcmask 523264  }
  0x10   :  { %6690 = vmatprep.subr.mxu1 %v222_v17  ;;  %v306_v41 = vld [vmem:[%s8381_s8] sm:$0xff]  ;;  %s8406_s22 = sld [smem:[#allocation6_spill]]  ;;  %s7324_s25 = smov [#allocation2]  }
  0x11   :  { %6691 = vmatpush3.msra.mxu1 %v222_v17  ;;  %v6127_v43 = vld [vmem:[%s8380_s7] ss:$0 sm:$0xff]  ;;  %s6109_s3 = sshll.u32 %s7324_s25, 4  ;;  %s6110_s3 = int_to_ptr.vmem [resolvable:$true] %s6109_s3 }
  0x12   :  { %89 = vadd.xlane.f32.xlu0 %v88_v3  ;;  %6692 = vmatprep.subr.mxu1 %v221_v19  ;;  %v6124_v46 = vld [vmem:[%s8378_s5] ss:$0 sm:$0xff]  ;;  %p7305_p1 = scmp.lt.s32.totalorder %s6110_s3, %s6110_s3 }
  0x13   :  { %v131_v14 = vld [vmem:[%s8403_s26 + $0x18] sm:$0xff]  ;;  %v130_v16 = vld [vmem:[%s8403_s26 + $0x10] sm:$0xff]  ;;  %v129_v18 = vld [vmem:[%s8403_s26 + $0x8] sm:$0xff]  ;;  %6693 = vmatpush3.msra.mxu1 %v221_v19 }
  0x14   :  { %6677 = vmatprep.subr.mxu0 %v131_v14  ;;  %v128_v20 = vld [vmem:[%s8403_s26] sm:$0xff]  ;;  %6694 = vmatprep.subr.mxu1 %v220_v21  ;;  %v6141_v15 = vld [vmem:[%s8403_s26 + $0x30] sm:$0xff]  ;;  %v6140_v17 = vld [vmem:[%s8403_s26 + $0x28] sm:$0xff] }
  0x15   :  { %6678 = vmatpush3.msra.mxu0 %v131_v14  ;;  %6695 = vmatpush3.msra.mxu1 %v220_v21  ;;  %v6122_v30 = vld [vmem:[%s8404_s30] ss:$0 sm:$0xff]  ;;  %v6157_v21 = vld [vmem:[%s8381_s8 + $0x30] sm:$0xff] }
  0x16   :  { %6679 = vmatprep.subr.mxu0 %v130_v16  ;;  %v6123_v32 = vld [vmem:[%s8405_s1] ss:$0 sm:$0xff]  ;;  %6715 = vmatprep.subr.mxu1 %v7322_v42  ;;  %v7528_v58 = vld [vmem:[%s8406_s22 + $0x1] ss:$0 sm:$0xff] }
  0x17   :  { %6680 = vmatpush3.msra.mxu0 %v130_v16  ;;  %v6130_v53 = vld [vmem:[%s8382_s9] ss:$0 sm:$0xff]  ;;  %v6148_v16 = vld [vmem:[%s8379_s6 + $0x28] sm:$0xff] }
  0x18   :  { %6681 = vmatprep.subr.mxu0 %v129_v18  ;;  %v7533_v60 = vld [vmem:[%s8406_s22] ss:$0 sm:$0xff] }
  0x19   :  { %6682 = vmatpush3.msra.mxu0 %v129_v18  ;;  %v6147_v18 = vld [vmem:[%s8379_s6 + $0x20] sm:$0xff] }
  0x1a   :  { %6683 = vmatprep.subr.mxu0 %v128_v20  ;;  %v6139_v19 = vld [vmem:[%s8403_s26 + $0x20] sm:$0xff] }
  0x1b   :  { %6684 = vmatpush3.msra.mxu0 %v128_v20  ;;  %v6158_v20 = vld [vmem:[%s8381_s8 + $0x38] sm:$0xff] }
  0x1c   :  { %6699 = vmatprep.subr.mxu0 %v309_v22 }
  0x97   :  { %v87_v4 = vpop.xlane.xlu0 %86 }
  0x98   :  { %v92_v5 = vmul.f32 0.03125, %v87_v4  ;;  %v6150_v4 = vld [vmem:[%s8379_s6 + $0x38] sm:$0xff] }
  0x9a   :  { %v94_v6 = vsub.f32 %v80_v0, %v92_v5  ;;  %v6142_v5 = vld [vmem:[%s8403_s26 + $0x38] sm:$0xff] }
  0x9b   :  { %v90_v7 = vpop.xlane.xlu0 %89 }
  0x9c   :  { %v93_v8 = vmul.f32 0.03125, %v90_v7  ;;  %v96_v9 = vmul.f32 %v94_v6, %v94_v6 }
  0x9e   :  { %v95_v10 = vsub.f32 %v81_v1, %v93_v8  ;;  %v98_v11 = vsel %vm84_vm0, %v96_v9, 0.0 }
  0x9f   :  { %99 = vadd.xlane.f32.xlu1 %v98_v11 }
  0xa0   :  { %v97_v12 = vmul.f32 %v95_v10, %v95_v10 }
  0xa2   :  { %v101_v13 = vsel %vm84_vm0, %v97_v12, 0.0 }
  0xa3   :  { %102 = vadd.xlane.f32.xlu1 %v101_v13  ;;  %v6149_v13 = vld [vmem:[%s8379_s6 + $0x30] sm:$0xff] }
 0x128   :  { %v100_v23 = vpop.xlane.xlu1 %99 }
 0x129   :  { %v104_v24 = vmul.f32 0.03125, %v100_v23  ;;  %v6155_v23 = vld [vmem:[%s8381_s8 + $0x20] sm:$0xff] }
 0x12b   :  { %v106_v25 = vadd.f32 1e-12, %v104_v24 }
 0x12c   :  { %v103_v26 = vpop.xlane.xlu1 %102 }
 0x12d   :  { %7206 = vrsqrt.f32 %v106_v25  ;;  %v105_v27 = vmul.f32 0.03125, %v103_v26 }
 0x12f   :  { %v107_v28 = vadd.f32 1e-12, %v105_v27 }
 0x131   :  { %7208 = vrsqrt.f32 %v107_v28 }
 0x13a   :  { %v7207_v29 = vpop.eup %7206 }
 0x13b   :  { %v110_v31 = vmul.f32 %v7207_v29, %v94_v6 }
 0x13d   :  { %v118_v33 = vmul.f32 %v6122_v30, %v110_v31 }
 0x13e   :  { %v7209_v34 = vpop.eup %7208 }
 0x13f   :  { %v7475_v35 = vadd.f32 %v6123_v32, %v118_v33  ;;  %v111_v36 = vmul.f32 %v7209_v34, %v95_v10 }
 0x141   :  { %v119_v37 = vmul.f32 %v6122_v30, %v111_v36  ;;  %6685 = vmatprep.mubr.msk.f32.mxu0 %vm84_vm0, %v7475_v35  ;;  %6696 = vmatprep.mubr.msk.f32.mxu1 %vm84_vm0, %v7475_v35  ;;  %v6152_v30 = vld [vmem:[%s8380_s7 + $0x1] ss:$0 sm:$0xff] }
 0x143   :  { %v7481_v38 = vadd.f32 %v6123_v32, %v119_v37  ;;  %v6144_v32 = vld [vmem:[%s8378_s5 + $0x1] ss:$0 sm:$0xff] }
 0x145   :  { %6686 = vmatmul.mubr.msk.f32.vlgmr.msra.gmra.mxu0 %vm84_vm0, %v7481_v38  ;;  %6697 = vmatmul.mubr.msk.f32.vlgmr.msra.gmra.mxu1 %vm84_vm0, %v7481_v38 }
 0x146   :  { %6700 = vmatpush3.msra.mxu0 %v309_v22  ;;  %6707 = vmatprep.mubr.msk.f32.mxu0 %vm84_vm0, %v7475_v35  ;;  %v6156_v22 = vld [vmem:[%s8381_s8 + $0x28] sm:$0xff] }
 0x147   :  { %6701 = vmatprep.subr.mxu0 %v308_v39  ;;  %6717 = vmatprep.mubr.msk.f32.mxu1 %vm7323_vm1, %v7322_v42 }
 0x148   :  { %6702 = vmatpush3.msra.mxu0 %v308_v39  ;;  %v6160_v39 = vld [vmem:[%s8382_s9 + $0x1] ss:$0 sm:$0xff] }
 0x149   :  { %6703 = vmatprep.subr.mxu0 %v307_v40 }
 0x14a   :  { %6704 = vmatpush3.msra.mxu0 %v307_v40 }
 0x14b   :  { %6705 = vmatprep.subr.mxu0 %v306_v41 }
 0x14c   :  { %6706 = vmatpush3.msra.mxu0 %v306_v41 }
 0x14d   :  { %6708 = vmatmul.mubr.msk.f32.vlgmr.msra.gmra.mxu0 %vm84_vm0, %v7481_v38  ;;  %6710 = vmatprep.subr.mxu0 %v7322_v42 }
 0x14e   :  { %6712 = vmatprep.mubr.msk.f32.mxu0 %vm7323_vm1, %v7322_v42 }
 0x205   :  { %v6687_v44 = vpop.f32.mrf.mxu0  ;;  %v6698_v45 = vpop.f32.mrf.mxu1 }
 0x206   :  { %v303_v47 = vadd.f32 %v6698_v45, %v6127_v43  ;;  %v217_v51 = vadd.f32 %v6687_v44, %v6124_v46 }
 0x207   :  { %v297_v48 = vpop.f32.mrf.mxu1  ;;  %v211_v49 = vpop.f32.mrf.mxu0 }
 0x208   :  { %v298_v50 = vadd.f32 %v6127_v43, %v297_v48  ;;  %6716 = vmatpush3.xpose.msk.msra.mxu1 %vm392_vm2, %v303_v47  ;;  %v212_v52 = vadd.f32 %v6124_v46, %v211_v49 }
 0x209   :  { %6725 = vmatprep.subr.mxu1 %v7322_v42 }
 0x20a   :  { %6711 = vmatpush3.xpose.msk.msra.mxu0 %vm392_vm2, %v298_v50 }
 0x20b   :  { %6718 = vmatmul.mubr.msk.f32.vlgmr.msra.gmra.mxu1 %vm392_vm2, %v217_v51  ;;  %6720 = vmatprep.subr.mxu0 %v7322_v42 }
 0x20c   :  { %6727 = vmatprep.mubr.msk.f32.mxu1 %vm7323_vm1, %v7322_v42 }
 0x20d   :  { %v6709_v54 = vpop.f32.mrf.mxu0  ;;  %6713 = vmatmul.mubr.msk.f32.vlgmr.msra.gmra.mxu0 %vm392_vm2, %v212_v52 }
 0x20e   :  { %v389_v55 = vadd.f32 %v6709_v54, %v6130_v53  ;;  %6722 = vmatprep.mubr.msk.f32.mxu0 %vm7323_vm1, %v7322_v42 }
 0x20f   :  { %v383_v56 = vpop.f32.mrf.mxu0 }
 0x210   :  { %v384_v57 = vadd.f32 %v6130_v53, %v383_v56  ;;  %6726 = vmatpush3.msra.mxu1 %v389_v55  ;;  %v713_v56 = vld [vmem:[%s8383_s10] sm:$0xff] }
 0x211   :  { %6741 = vmatprep.subr.mxu1 %v6150_v4 }
 0x212   :  { %6721 = vmatpush3.msra.mxu0 %v384_v57 }
 0x213   :  { %6730 = vmatprep.subr.mxu0 %v6142_v5 }
 0x2cb   :  { %v541_v59 = vpop.f32.mrf.mxu1 }
 0x2cc   :  { %v542_v61 = vadd.f32 %v7528_v58, %v541_v59 }
 0x2cd   :  { %v465_v62 = vpop.f32.mrf.mxu0  ;;  %v6719_v63 = vpop.f32.mrf.mxu1 }
 0x2ce   :  { %v466_v0 = vadd.f32 %v7533_v60, %v465_v62  ;;  %v548_v1 = vsel %vm392_vm2, %v542_v61, -inf }
 0x2cf   :  { %v6714_v2 = vpop.f32.mrf.mxu0  ;;  %549 = vmax.xlane.f32.xlu0 %v548_v1 }
 0x2d0   :  { %v545_v3 = vsel %vm392_vm2, %v466_v0, -inf }
 0x2d1   :  { %546 = vmax.xlane.f32.xlu1 %v545_v3 }
 0x358   :  { %v550_v6 = vpop.xlane.xlu0 %549 }
 0x359   :  { %v552_v7 = vsub.f32 %v542_v61, %v550_v6 }
 0x35a   :  { %v547_v8 = vpop.xlane.xlu1 %546 }
 0x35b   :  { %v555_v9 = vmul.f32 1.442695, %v552_v7  ;;  %v551_v10 = vsub.f32 %v466_v0, %v547_v8 }
 0x35d   :  { %7210 = vpow2.f32 %v555_v9  ;;  %v553_v11 = vmul.f32 1.442695, %v551_v10  ;;  %v6185_v10 = vld [vmem:[%s8379_s6 + $0x58] sm:$0xff] }
 0x35f   :  { %7212 = vpow2.f32 %v553_v11 }
 0x36a   :  { %v7545_v12 = vpop.eup %7210 }
 0x36b   :  { %6728 = vmatmul.mubr.msk.f32.vlgmr.msra.gmra.mxu1 %vm392_vm2, %v7545_v12  ;;  %v706_v55 = vsel %vm392_vm2, %v7545_v12, 0.0  ;;  %v6184_v12 = vld [vmem:[%s8379_s6 + $0x50] sm:$0xff] }
 0x36c   :  { %v7552_v14 = vpop.eup %7212  ;;  %6742 = vmatpush3.msra.mxu1 %v6150_v4  ;;  %6749 = vmatprep.mubr.msk.f32.mxu1 %vm84_vm0, %v7475_v35 }
 0x36d   :  { %6743 = vmatprep.subr.mxu1 %v6149_v13  ;;  %6723 = vmatmul.mubr.msk.f32.vlgmr.msra.gmra.mxu0 %vm392_vm2, %v7552_v14  ;;  %v703_v53 = vsel %vm392_vm2, %v7552_v14, 0.0  ;;  %v6182_v14 = vld [vmem:[%s8379_s6 + $0x40] sm:$0xff] }
 0x36e   :  { %6731 = vmatpush3.msra.mxu0 %v6142_v5  ;;  %6744 = vmatpush3.msra.mxu1 %v6149_v13  ;;  %v6183_v13 = vld [vmem:[%s8379_s6 + $0x48] sm:$0xff] }
 0x36f   :  { %6732 = vmatprep.subr.mxu0 %v6141_v15  ;;  %6738 = vmatprep.mubr.msk.f32.mxu0 %vm84_vm0, %v7475_v35 }
 0x370   :  { %6745 = vmatprep.subr.mxu1 %v6148_v16  ;;  %6733 = vmatpush3.msra.mxu0 %v6141_v15  ;;  %v6169_v15 = vld [vmem:[%s8383_s10 + $0x8] sm:$0xff] }
 0x371   :  { %6746 = vmatpush3.msra.mxu1 %v6148_v16  ;;  %6734 = vmatprep.subr.mxu0 %v6140_v17  ;;  %v6177_v16 = vld [vmem:[%s8403_s26 + $0x58] sm:$0xff] }
 0x372   :  { %6747 = vmatprep.subr.mxu1 %v6147_v18  ;;  %6735 = vmatpush3.msra.mxu0 %v6140_v17 }
 0x373   :  { %6748 = vmatpush3.msra.mxu1 %v6147_v18  ;;  %6736 = vmatprep.subr.mxu0 %v6139_v19 }
 0x374   :  { %6750 = vmatmul.mubr.msk.f32.vlgmr.msra.gmra.mxu1 %vm84_vm0, %v7481_v38  ;;  %6737 = vmatpush3.msra.mxu0 %v6139_v19 }
 0x375   :  { %6739 = vmatmul.mubr.msk.f32.vlgmr.msra.gmra.mxu0 %vm84_vm0, %v7481_v38  ;;  %6752 = vmatprep.subr.mxu0 %v6158_v20 }
 0x376   :  { %6753 = vmatpush3.msra.mxu0 %v6158_v20  ;;  %6760 = vmatprep.mubr.msk.f32.mxu0 %vm84_vm0, %v7475_v35 }
 0x377   :  { %6754 = vmatprep.subr.mxu0 %v6157_v21  ;;  %6763 = vmatprep.subr.mxu1 %v7322_v42 }
 0x378   :  { %6755 = vmatpush3.msra.mxu0 %v6157_v21  ;;  %6765 = vmatprep.mubr.msk.f32.mxu1 %vm7323_vm1, %v7322_v42 }
 0x379   :  { %6756 = vmatprep.subr.mxu0 %v6156_v22 }
 0x37a   :  { %6757 = vmatpush3.msra.mxu0 %v6156_v22 }
 0x37b   :  { %6758 = vmatprep.subr.mxu0 %v6155_v23 }
 0x37c   :  { %6759 = vmatpush3.msra.mxu0 %v6155_v23 }
 0x37d   :  { %6761 = vmatmul.mubr.msk.f32.vlgmr.msra.gmra.mxu0 %vm84_vm0, %v7481_v38  ;;  %6773 = vmatprep.subr.mxu0 %v7322_v42 }
 0x37e   :  { %6775 = vmatprep.mubr.msk.f32.mxu0 %vm7323_vm1, %v7322_v42 }
 0x42b   :  { %v7601_v24 = vpop.f32.mrf.mxu1 }
 0x42d   :  { %v626_v25 = vpop.f32.mrf.mxu0  ;;  %v6729_v26 = vpop.f32.mrf.mxu1 }
 0x42f   :  { %v6724_v27 = vpop.f32.mrf.mxu0 }
 0x430   :  { %v6176_v27 = vld [vmem:[%s8403_s26 + $0x50] sm:$0xff] }
 0x434   :  { %v6751_v28 = vpop.f32.mrf.mxu1 }
 0x435   :  { %v6740_v29 = vpop.f32.mrf.mxu0  ;;  %v887_v37 = vadd.f32 %v6751_v28, %v6152_v30  ;;  %v6175_v28 = vld [vmem:[%s8403_s26 + $0x48] sm:$0xff] }
 0x436   :  { %v881_v31 = vpop.f32.mrf.mxu1  ;;  %v799_v41 = vadd.f32 %v6740_v29, %v6144_v32 }
 0x437   :  { %v882_v33 = vadd.f32 %v6152_v30, %v881_v31  ;;  %v793_v34 = vpop.f32.mrf.mxu0  ;;  %v6174_v30 = vld [vmem:[%s8403_s26 + $0x40] sm:$0xff]  ;;  %v6193_v31 = vld [vmem:[%s8381_s8 + $0x58] sm:$0xff] }
 0x438   :  { %v794_v36 = vadd.f32 %v6144_v32, %v793_v34  ;;  %v6192_v34 = vld [vmem:[%s8381_s8 + $0x50] sm:$0xff] }
 0x439   :  { %6764 = vmatpush3.xpose.msk.msra.mxu1 %vm392_vm2, %v882_v33  ;;  %v6187_v33 = vld [vmem:[%s8380_s7 + $0x2] ss:$0 sm:$0xff] }
 0x43a   :  { %6768 = vmatprep.subr.mxu1 %v7322_v42 }
 0x43c   :  { %6766 = vmatmul.mubr.msk.f32.vlgmr.msra.gmra.mxu1 %vm392_vm2, %v794_v36 }
 0x43d   :  { %6769 = vmatpush3.xpose.msk.msra.mxu1 %vm392_vm2, %v887_v37  ;;  %v6762_v40 = vpop.f32.mrf.mxu0  ;;  %6770 = vmatprep.mubr.msk.f32.mxu1 %vm7323_vm1, %v7322_v42  ;;  %v6191_v37 = vld [vmem:[%s8381_s8 + $0x48] sm:$0xff] }
 0x43e   :  { %v975_v43 = vadd.f32 %v6762_v40, %v6160_v39  ;;  %6778 = vmatprep.subr.mxu1 %v7322_v42 }
 0x43f   :  { %v969_v44 = vpop.f32.mrf.mxu0 }
 0x440   :  { %v970_v45 = vadd.f32 %v6160_v39, %v969_v44  ;;  %6771 = vmatmul.mubr.msk.f32.vlgmr.msra.gmra.mxu1 %vm392_vm2, %v799_v41  ;;  %v6190_v41 = vld [vmem:[%s8381_s8 + $0x40] sm:$0xff] }
 0x441   :  { %6779 = vmatpush3.msra.mxu1 %v975_v43  ;;  %6780 = vmatprep.mubr.msk.f32.mxu1 %vm7323_vm1, %v7322_v42 }
 0x442   :  { %6774 = vmatpush3.msra.mxu0 %v970_v45  ;;  %6788 = vmatprep.subr.mxu1 %v713_v56 }
 0x443   :  { %6783 = vmatprep.subr.mxu0 %v6169_v15 }
 0x4fc   :  { %v1050_v46 = vpop.f32.mrf.mxu1 }
 0x4fd   :  { %v1051_v47 = vadd.f32 %v7533_v60, %v1050_v46 }
 0x4fe   :  { %v6767_v48 = vpop.f32.mrf.mxu1 }
 0x4ff   :  { %v1130_v49 = vsel %vm392_vm2, %v1051_v47, -inf }
 0x500   :  { %1131 = vmax.xlane.f32.xlu0 %v1130_v49  ;;  %v1126_v50 = vpop.f32.mrf.mxu1 }
 0x501   :  { %v1127_v51 = vadd.f32 %v7528_v58, %v1126_v50  ;;  %v6195_v50 = vld [vmem:[%s8382_s9 + $0x2] ss:$0 sm:$0xff] }
 0x502   :  { %v6772_v52 = vpop.f32.mrf.mxu1 }
 0x503   :  { %v1133_v54 = vsel %vm392_vm2, %v1127_v51, -inf }
 0x504   :  { %704 = vadd.xlane.f32.xlu0 %v703_v53  ;;  %1134 = vmax.xlane.f32.xlu1 %v1133_v54 }
 0x508   :  { %707 = vadd.xlane.f32.xlu1 %v706_v55 }
 0x589   :  { %v1132_v57 = vpop.xlane.xlu0 %1131 }
 0x58a   :  { %v1136_v59 = vsub.f32 %v1051_v47, %v1132_v57  ;;  %v6179_v47 = vld [vmem:[%s8378_s5 + $0x2] ss:$0 sm:$0xff] }
 0x58c   :  { %v1138_v61 = vmul.f32 1.442695, %v1136_v59 }
 0x58d   :  { %v705_v62 = vpop.xlane.xlu0 %704  ;;  %v1135_v63 = vpop.xlane.xlu1 %1134 }
 0x58e   :  { %7214 = vpow2.f32 %v1138_v61  ;;  %v1137_v0 = vsub.f32 %v1127_v51, %v1135_v63 }
 0x58f   :  { %7216 = vrcp.f32 %v705_v62 }
 0x590   :  { %v1140_v1 = vmul.f32 1.442695, %v1137_v0 }
 0x591   :  { %v708_v2 = vpop.xlane.xlu1 %707 }
 0x592   :  { %7218 = vpow2.f32 %v1140_v1 }
 0x593   :  { %7220 = vrcp.f32 %v708_v2  ;;  %v6210_v2 = vld [vmem:[%s8403_s26 + $0x78] sm:$0xff] }
 0x59b   :  { %v7215_v3 = vpop.eup %7214 }
 0x59c   :  { %v7217_v4 = vpop.eup %7216  ;;  %6776 = vmatmul.mubr.msk.f32.vlgmr.msra.gmra.mxu0 %vm392_vm2, %v7215_v3  ;;  %v1288_v5 = vsel %vm392_vm2, %v7215_v3, 0.0 }
 0x59d   :  { %1289 = vadd.xlane.f32.xlu0 %v1288_v5  ;;  %v711_v7 = vmul.f32 %v7217_v4, %v626_v25  ;;  %6784 = vmatpush3.msra.mxu0 %v6169_v15  ;;  %v6207_v15 = vld [vmem:[%s8403_s26 + $0x60] sm:$0xff] }
 0x59e   :  { %6793 = vmatprep.subr.mxu0 %v6177_v16 }
 0x59f   :  { %v7219_v6 = vpop.eup %7218 }
 0x5a0   :  { %v7221_v8 = vpop.eup %7220  ;;  %6781 = vmatmul.mubr.msk.f32.vlgmr.msra.gmra.mxu1 %vm392_vm2, %v7219_v6  ;;  %v1291_v9 = vsel %vm392_vm2, %v7219_v6, 0.0 }
 0x5a1   :  { %1292 = vadd.xlane.f32.xlu1 %v1291_v9  ;;  %6790 = vmatprep.mubr.msk.f32.mxu1 %vm392_vm2, %v711_v7  ;;  %v712_v11 = vmul.f32 %v7221_v8, %v7601_v24 }
 0x5a2   :  { %6789 = vmatpush3.msra.mxu1 %v713_v56 }
 0x5a3   :  { %6804 = vmatprep.subr.mxu1 %v6185_v10 }
 0x5a4   :  { %6791 = vmatmul.mubr.msk.f32.vlgmr.msra.gmra.mxu1 %vm392_vm2, %v712_v11 }
 0x5a5   :  { %6805 = vmatpush3.msra.mxu1 %v6185_v10  ;;  %6812 = vmatprep.mubr.msk.f32.mxu1 %vm84_vm0, %v7475_v35 }
 0x5a6   :  { %6806 = vmatprep.subr.mxu1 %v6184_v12 }
 0x5a7   :  { %6807 = vmatpush3.msra.mxu1 %v6184_v12  ;;  %v6209_v12 = vld [vmem:[%s8403_s26 + $0x70] sm:$0xff] }
 0x5a8   :  { %6808 = vmatprep.subr.mxu1 %v6183_v13 }
 0x5a9   :  { %6809 = vmatpush3.msra.mxu1 %v6183_v13 }
 0x5aa   :  { %6810 = vmatprep.subr.mxu1 %v6182_v14 }
 0x5ab   :  { %6811 = vmatpush3.msra.mxu1 %v6182_v14  ;;  %v6208_v14 = vld [vmem:[%s8403_s26 + $0x68] sm:$0xff] }
 0x5ac   :  { %6813 = vmatmul.mubr.msk.f32.vlgmr.msra.gmra.mxu1 %vm84_vm0, %v7481_v38  ;;  %6826 = vmatprep.subr.mxu1 %v7322_v42 }
 0x5ad   :  { %6828 = vmatprep.mubr.msk.f32.mxu1 %vm7323_vm1, %v7322_v42 }
 0x626   :  { %v1290_v17 = vpop.xlane.xlu0 %1289 }
 0x627   :  { %7222 = vrcp.f32 %v1290_v17  ;;  %v6225_v17 = vld [vmem:[%s8381_s8 + $0x70] sm:$0xff] }
 0x62a   :  { %v1293_v18 = vpop.xlane.xlu1 %1292 }
 0x62b   :  { %7224 = vrcp.f32 %v1293_v18  ;;  %v6224_v18 = vld [vmem:[%s8381_s8 + $0x68] sm:$0xff] }
 0x634   :  { %v7223_v19 = vpop.eup %7222 }
 0x638   :  { %v7225_v23 = vpop.eup %7224 }
 0x65c   :  { %v1211_v20 = vpop.f32.mrf.mxu0 }
 0x65d   :  { %v1296_v21 = vmul.f32 %v7223_v19, %v1211_v20  ;;  %v6223_v19 = vld [vmem:[%s8381_s8 + $0x60] sm:$0xff]  ;;  %v6204_v20 = vld [vmem:[%s8383_s10 + $0x10] sm:$0xff] }
 0x65e   :  { %v6777_v22 = vpop.f32.mrf.mxu0 }
 0x65f   :  { %6785 = vmatprep.mubr.msk.f32.mxu0 %vm392_vm2, %v1296_v21  ;;  %v6218_v21 = vld [vmem:[%s8379_s6 + $0x78] sm:$0xff] }
 0x660   :  { %v1284_v24 = vpop.f32.mrf.mxu1 }
 0x661   :  { %v1297_v25 = vmul.f32 %v7225_v23, %v1284_v24 }
 0x662   :  { %v6782_v26 = vpop.f32.mrf.mxu1 }
 0x663   :  { %6786 = vmatmul.mubr.msk.f32.vlgmr.msra.gmra.mxu0 %vm392_vm2, %v1297_v25 }
 0x664   :  { %6794 = vmatpush3.msra.mxu0 %v6177_v16  ;;  %6801 = vmatprep.mubr.msk.f32.mxu0 %vm84_vm0, %v7475_v35  ;;  %v7675_v29 = vpop.f32.mrf.mxu1  ;;  %v6226_v16 = vld [vmem:[%s8381_s8 + $0x78] sm:$0xff] }
 0x665   :  { %6795 = vmatprep.subr.mxu0 %v6176_v27 }
 0x666   :  { %6796 = vmatpush3.msra.mxu0 %v6176_v27  ;;  %v7683_v32 = vpop.f32.mrf.mxu1 }
 0x667   :  { %6797 = vmatprep.subr.mxu0 %v6175_v28 }
 0x668   :  { %6798 = vmatpush3.msra.mxu0 %v6175_v28 }
 0x669   :  { %6799 = vmatprep.subr.mxu0 %v6174_v30 }
 0x66a   :  { %6800 = vmatpush3.msra.mxu0 %v6174_v30 }
 0x66b   :  { %6802 = vmatmul.mubr.msk.f32.vlgmr.msra.gmra.mxu0 %vm84_vm0, %v7481_v38  ;;  %6815 = vmatprep.subr.mxu0 %v6193_v31 }
 0x66c   :  { %v6814_v36 = vpop.f32.mrf.mxu1  ;;  %6816 = vmatpush3.msra.mxu0 %v6193_v31  ;;  %6823 = vmatprep.mubr.msk.f32.mxu0 %vm84_vm0, %v7475_v35 }
 0x66d   :  { %v1635_v39 = vadd.f32 %v6814_v36, %v6187_v33  ;;  %6817 = vmatprep.subr.mxu0 %v6192_v34  ;;  %v6216_v36 = vld [vmem:[%s8379_s6 + $0x68] sm:$0xff] }
 0x66e   :  { %v1629_v40 = vpop.f32.mrf.mxu1  ;;  %6818 = vmatpush3.msra.mxu0 %v6192_v34  ;;  %v6217_v34 = vld [vmem:[%s8379_s6 + $0x70] sm:$0xff] }
 0x66f   :  { %v1630_v43 = vadd.f32 %v6187_v33, %v1629_v40  ;;  %6819 = vmatprep.subr.mxu0 %v6191_v37 }
 0x670   :  { %6820 = vmatpush3.msra.mxu0 %v6191_v37  ;;  %v6215_v37 = vld [vmem:[%s8379_s6 + $0x60] sm:$0xff] }
 0x671   :  { %6821 = vmatprep.subr.mxu0 %v6190_v41  ;;  %6827 = vmatpush3.xpose.msk.msra.mxu1 %vm392_vm2, %v1630_v43 }
 0x672   :  { %6822 = vmatpush3.msra.mxu0 %v6190_v41  ;;  %6831 = vmatprep.subr.mxu1 %v7322_v42  ;;  %v6228_v41 = vld [vmem:[%s8382_s9 + $0x3] ss:$0 sm:$0xff] }
 0x673   :  { %6824 = vmatmul.mubr.msk.f32.vlgmr.msra.gmra.mxu0 %vm84_vm0, %v7481_v38  ;;  %6836 = vmatprep.subr.mxu0 %v7322_v42 }
 0x674   :  { %6838 = vmatprep.mubr.msk.f32.mxu0 %vm7323_vm1, %v7322_v42 }
 0x723   :  { %v7708_v44 = vpop.f32.mrf.mxu0 }
 0x725   :  { %v7710_v45 = vpop.f32.mrf.mxu0 }
 0x72b   :  { %v6803_v46 = vpop.f32.mrf.mxu0 }
 0x72c   :  { %v1547_v51 = vadd.f32 %v6803_v46, %v6179_v47 }
 0x72d   :  { %v1541_v48 = vpop.f32.mrf.mxu0 }
 0x72e   :  { %v1542_v49 = vadd.f32 %v6179_v47, %v1541_v48 }
 0x730   :  { %6829 = vmatmul.mubr.msk.f32.vlgmr.msra.gmra.mxu1 %vm392_vm2, %v1542_v49  ;;  %v1459_v49 = vadd.f32 %v7675_v29, %v7708_v44  ;;  %v6212_v29 = vld [vmem:[%s8378_s5 + $0x3] ss:$0 sm:$0xff] }
 0x731   :  { %6832 = vmatpush3.xpose.msk.msra.mxu1 %vm392_vm2, %v1635_v39  ;;  %6833 = vmatprep.mubr.msk.f32.mxu1 %vm7323_vm1, %v7322_v42 }
 0x732   :  { %6841 = vmatprep.subr.mxu1 %v7322_v42 }
 0x733   :  { %v6825_v52 = vpop.f32.mrf.mxu0 }
 0x734   :  { %v1723_v53 = vadd.f32 %v6825_v52, %v6195_v50  ;;  %6834 = vmatmul.mubr.msk.f32.vlgmr.msra.gmra.mxu1 %vm392_vm2, %v1547_v51  ;;  %v1454_v51 = vadd.f32 %v7683_v32, %v7710_v45 }
 0x735   :  { %v1717_v54 = vpop.f32.mrf.mxu0  ;;  %6843 = vmatprep.mubr.msk.f32.mxu1 %vm7323_vm1, %v7322_v42 }
 0x736   :  { %v1718_v55 = vadd.f32 %v6195_v50, %v1717_v54  ;;  %6842 = vmatpush3.msra.mxu1 %v1723_v53 }
 0x737   :  { %6851 = vmatprep.subr.mxu1 %v6210_v2 }
 0x738   :  { %6837 = vmatpush3.msra.mxu0 %v1718_v55 }
 0x739   :  { %6846 = vmatprep.subr.mxu0 %v6204_v20 }
 0x7f0   :  { %v1798_v56 = vpop.f32.mrf.mxu1 }
 0x7f1   :  { %v1799_v57 = vadd.f32 %v7533_v60, %v1798_v56  ;;  %v6220_v56 = vld [vmem:[%s8380_s7 + $0x3] ss:$0 sm:$0xff] }
 0x7f2   :  { %v6830_v59 = vpop.f32.mrf.mxu1 }
 0x7f3   :  { %v1878_v61 = vsel %vm392_vm2, %v1799_v57, -inf }
 0x7f4   :  { %1879 = vmax.xlane.f32.xlu0 %v1878_v61  ;;  %v1874_v62 = vpop.f32.mrf.mxu1 }
 0x7f5   :  { %v1875_v63 = vadd.f32 %v7528_v58, %v1874_v62 }
 0x7f6   :  { %v6835_v0 = vpop.f32.mrf.mxu1 }
 0x7f7   :  { %v1881_v1 = vsel %vm392_vm2, %v1875_v63, -inf }
 0x7f8   :  { %1882 = vmax.xlane.f32.xlu1 %v1881_v1 }
 0x87d   :  { %v1880_v3 = vpop.xlane.xlu0 %1879 }
 0x87e   :  { %v1884_v4 = vsub.f32 %v1799_v57, %v1880_v3 }
 0x880   :  { %v1886_v5 = vmul.f32 1.442695, %v1884_v4 }
 0x881   :  { %v1883_v6 = vpop.xlane.xlu1 %1882 }
 0x882   :  { %7226 = vpow2.f32 %v1886_v5  ;;  %v1885_v7 = vsub.f32 %v1875_v63, %v1883_v6 }
 0x884   :  { %v1888_v8 = vmul.f32 1.442695, %v1885_v7 }
 0x886   :  { %7228 = vpow2.f32 %v1888_v8 }
 0x88f   :  { %v7227_v9 = vpop.eup %7226 }
 0x890   :  { %6839 = vmatmul.mubr.msk.f32.vlgmr.msra.gmra.mxu0 %vm392_vm2, %v7227_v9  ;;  %v2036_v10 = vsel %vm392_vm2, %v7227_v9, 0.0 }
 0x891   :  { %2037 = vadd.xlane.f32.xlu0 %v2036_v10  ;;  %6847 = vmatpush3.msra.mxu0 %v6204_v20 }
 0x892   :  { %6862 = vmatprep.subr.mxu0 %v6218_v21 }
 0x893   :  { %v7229_v11 = vpop.eup %7228 }
 0x894   :  { %6844 = vmatmul.mubr.msk.f32.vlgmr.msra.gmra.mxu1 %vm392_vm2, %v7229_v11  ;;  %v2039_v13 = vsel %vm392_vm2, %v7229_v11, 0.0 }
 0x895   :  { %6852 = vmatpush3.msra.mxu1 %v6210_v2  ;;  %2040 = vadd.xlane.f32.xlu1 %v2039_v13  ;;  %v6237_v13 = vld [vmem:[%s8383_s10 + $0x18] sm:$0xff] }
 0x896   :  { %6853 = vmatprep.subr.mxu1 %v6209_v12  ;;  %6859 = vmatprep.mubr.msk.f32.mxu1 %vm84_vm0, %v7475_v35 }
 0x897   :  { %6854 = vmatpush3.msra.mxu1 %v6209_v12 }
 0x898   :  { %6855 = vmatprep.subr.mxu1 %v6208_v14 }
 0x899   :  { %6856 = vmatpush3.msra.mxu1 %v6208_v14 }
 0x89a   :  { %6857 = vmatprep.subr.mxu1 %v6207_v15 }
 0x89b   :  { %6858 = vmatpush3.msra.mxu1 %v6207_v15 }
 0x89c   :  { %6860 = vmatmul.mubr.msk.f32.vlgmr.msra.gmra.mxu1 %vm84_vm0, %v7481_v38  ;;  %6873 = vmatprep.subr.mxu1 %v6226_v16 }
 0x89d   :  { %6874 = vmatpush3.msra.mxu1 %v6226_v16  ;;  %6881 = vmatprep.mubr.msk.f32.mxu1 %vm84_vm0, %v7475_v35 }
 0x89e   :  { %6875 = vmatprep.subr.mxu1 %v6225_v17 }
 0x89f   :  { %6876 = vmatpush3.msra.mxu1 %v6225_v17 }
 0x8a0   :  { %6877 = vmatprep.subr.mxu1 %v6224_v18 }
 0x8a1   :  { %6878 = vmatpush3.msra.mxu1 %v6224_v18 }
 0x8a2   :  { %6879 = vmatprep.subr.mxu1 %v6223_v19 }
 0x8a3   :  { %6880 = vmatpush3.msra.mxu1 %v6223_v19 }
 0x8a4   :  { %6882 = vmatmul.mubr.msk.f32.vlgmr.msra.gmra.mxu1 %vm84_vm0, %v7481_v38  ;;  %6894 = vmatprep.subr.mxu1 %v7322_v42 }
 0x8a5   :  { %6896 = vmatprep.mubr.msk.f32.mxu1 %vm7323_vm1, %v7322_v42 }
 0x91a   :  { %v2038_v22 = vpop.xlane.xlu0 %2037 }
 0x91b   :  { %7230 = vrcp.f32 %v2038_v22 }
 0x91e   :  { %v2041_v23 = vpop.xlane.xlu1 %2040 }
 0x91f   :  { %7232 = vrcp.f32 %v2041_v23 }
 0x928   :  { %v7231_v24 = vpop.eup %7230 }
 0x92c   :  { %v7233_v28 = vpop.eup %7232 }
 0x950   :  { %v1959_v25 = vpop.f32.mrf.mxu0 }
 0x951   :  { %v2044_v26 = vmul.f32 %v7231_v24, %v1959_v25  ;;  %v6240_v25 = vld [vmem:[%s8384_s11] ss:$0 sm:$0xff] }
 0x952   :  { %v6840_v27 = vpop.f32.mrf.mxu0 }
 0x953   :  { %6848 = vmatprep.mubr.msk.f32.mxu0 %vm392_vm2, %v2044_v26 }
 0x954   :  { %v2032_v30 = vpop.f32.mrf.mxu1 }
 0x955   :  { %v2045_v31 = vmul.f32 %v7233_v28, %v2032_v30 }
 0x956   :  { %v6845_v33 = vpop.f32.mrf.mxu1 }
 0x957   :  { %6849 = vmatmul.mubr.msk.f32.vlgmr.msra.gmra.mxu0 %vm392_vm2, %v2045_v31 }
 0x958   :  { %6863 = vmatpush3.msra.mxu0 %v6218_v21  ;;  %6870 = vmatprep.mubr.msk.f32.mxu0 %vm84_vm0, %v7475_v35 }
 0x959   :  { %6864 = vmatprep.subr.mxu0 %v6217_v34 }
 0x95a   :  { %6865 = vmatpush3.msra.mxu0 %v6217_v34 }
 0x95b   :  { %6866 = vmatprep.subr.mxu0 %v6216_v36 }
 0x95c   :  { %6867 = vmatpush3.msra.mxu0 %v6216_v36  ;;  %v6861_v39 = vpop.f32.mrf.mxu1 }
 0x95d   :  { %6868 = vmatprep.subr.mxu0 %v6215_v37  ;;  %v2216_v45 = vadd.f32 %v6861_v39, %v6212_v29 }
 0x95e   :  { %6869 = vmatpush3.msra.mxu0 %v6215_v37  ;;  %v2210_v40 = vpop.f32.mrf.mxu1 }
 0x95f   :  { %6871 = vmatmul.mubr.msk.f32.vlgmr.msra.gmra.mxu0 %vm84_vm0, %v7481_v38  ;;  %6884 = vmatprep.subr.mxu0 %v7322_v42  ;;  %v2211_v44 = vadd.f32 %v6212_v29, %v2210_v40 }
 0x960   :  { %6886 = vmatprep.mubr.msk.f32.mxu0 %vm7323_vm1, %v7322_v42 }
 0x964   :  { %v6883_v43 = vpop.f32.mrf.mxu1 }
 0x965   :  { %v2392_v46 = vadd.f32 %v6883_v43, %v6228_v41 }
 0x966   :  { %v2386_v47 = vpop.f32.mrf.mxu1 }
 0x967   :  { %v2387_v48 = vadd.f32 %v6228_v41, %v2386_v47 }
 0x969   :  { %6895 = vmatpush3.msra.mxu1 %v2387_v48 }
 0x96a   :  { %6904 = vmatprep.subr.mxu1 %v6237_v13 }
 0xa17   :  { %v6850_v50 = vpop.f32.mrf.mxu0 }
 0xa18   :  { %v7800_v52 = vadd.f32 %v6850_v50, %v1459_v49 }
 0xa19   :  { %v2120_v53 = vpop.f32.mrf.mxu0 }
 0xa1a   :  { %v7802_v54 = vadd.f32 %v2120_v53, %v1454_v51  ;;  %v2857_v51 = vld [vmem:[%s8387_s14 + $0x10] sm:$0xff]  ;;  %v2855_v53 = vld [vmem:[%s8387_s14] sm:$0xff] }
 0xa1f   :  { %v6872_v55 = vpop.f32.mrf.mxu0 }
 0xa20   :  { %v2304_v32 = vadd.f32 %v6872_v55, %v6220_v56 }
 0xa21   :  { %v2298_v57 = vpop.f32.mrf.mxu0 }
 0xa22   :  { %v2299_v59 = vadd.f32 %v6220_v56, %v2298_v57 }
 0xa24   :  { %6885 = vmatpush3.xpose.msk.msra.mxu0 %vm392_vm2, %v2299_v59 }
 0xa25   :  { %6889 = vmatprep.subr.mxu0 %v7322_v42 }
 0xa27   :  { %6887 = vmatmul.mubr.msk.f32.vlgmr.msra.gmra.mxu0 %vm392_vm2, %v2211_v44 }
 0xa28   :  { %6890 = vmatpush3.xpose.msk.msra.mxu0 %vm392_vm2, %v2304_v32  ;;  %6891 = vmatprep.mubr.msk.f32.mxu0 %vm7323_vm1, %v7322_v42  ;;  %v6241_v32 = vld [vmem:[%s8385_s12] ss:$0 sm:$0xff] }
 0xa29   :  { %6899 = vmatprep.subr.mxu0 %v7322_v42 }
 0xa2b   :  { %6892 = vmatmul.mubr.msk.f32.vlgmr.msra.gmra.mxu0 %vm392_vm2, %v2216_v45 }
 0xa2c   :  { %6900 = vmatpush3.msra.mxu0 %v2392_v46  ;;  %6901 = vmatprep.mubr.msk.f32.mxu0 %vm7323_vm1, %v7322_v42 }
 0xae7   :  { %v2467_v61 = vpop.f32.mrf.mxu0 }
 0xae8   :  { %v2468_v62 = vadd.f32 %v7533_v60, %v2467_v61 }
 0xae9   :  { %v6888_v63 = vpop.f32.mrf.mxu0 }
 0xaea   :  { %v2547_v0 = vsel %vm392_vm2, %v2468_v62, -inf }
 0xaeb   :  { %2548 = vmax.xlane.f32.xlu0 %v2547_v0  ;;  %v2543_v1 = vpop.f32.mrf.mxu0  ;;  %v6242_v0 = vld [vmem:[%s8386_s13] ss:$0 sm:$0xff] }
 0xaec   :  { %v2544_v2 = vadd.f32 %v7528_v58, %v2543_v1 }
 0xaed   :  { %v6893_v3 = vpop.f32.mrf.mxu0 }
 0xaee   :  { %v2550_v4 = vsel %vm392_vm2, %v2544_v2, -inf }
 0xaef   :  { %2551 = vmax.xlane.f32.xlu1 %v2550_v4  ;;  %v2972_v4 = vld [vmem:[%s8389_s16 + $0x38] sm:$0xff] }
 0xb74   :  { %v2549_v5 = vpop.xlane.xlu0 %2548 }
 0xb75   :  { %v2553_v6 = vsub.f32 %v2468_v62, %v2549_v5  ;;  %v2971_v5 = vld [vmem:[%s8389_s16 + $0x30] sm:$0xff] }
 0xb77   :  { %v2555_v7 = vmul.f32 1.442695, %v2553_v6  ;;  %v2970_v6 = vld [vmem:[%s8389_s16 + $0x28] sm:$0xff] }
 0xb78   :  { %v2552_v8 = vpop.xlane.xlu1 %2551 }
 0xb79   :  { %7234 = vpow2.f32 %v2555_v7  ;;  %v2554_v9 = vsub.f32 %v2544_v2, %v2552_v8  ;;  %v2969_v7 = vld [vmem:[%s8389_s16 + $0x20] sm:$0xff]  ;;  %v2968_v8 = vld [vmem:[%s8389_s16 + $0x18] sm:$0xff] }
 0xb7b   :  { %v2557_v10 = vmul.f32 1.442695, %v2554_v9  ;;  %v2967_v9 = vld [vmem:[%s8389_s16 + $0x10] sm:$0xff] }
 0xb7d   :  { %7236 = vpow2.f32 %v2557_v10  ;;  %v2966_v10 = vld [vmem:[%s8389_s16 + $0x8] sm:$0xff] }
 0xb86   :  { %v7235_v60 = vpop.eup %7234 }
 0xb87   :  { %6897 = vmatmul.mubr.msk.f32.vlgmr.msra.gmra.mxu1 %vm392_vm2, %v7235_v60  ;;  %v2705_v11 = vsel %vm392_vm2, %v7235_v60, 0.0  ;;  %v2965_v60 = vld [vmem:[%s8389_s16] sm:$0xff] }
 0xb88   :  { %2706 = vadd.xlane.f32.xlu0 %v2705_v11  ;;  %6905 = vmatpush3.msra.mxu1 %v6237_v13  ;;  %v6243_v11 = vld [vmem:[%s8388_s15] ss:$0 sm:$0xff] }
 0xb89   :  { %6920 = vmatprep.subr.mxu1 %v2972_v4 }
 0xb8a   :  { %v7237_v12 = vpop.eup %7236 }
 0xb8b   :  { %6902 = vmatmul.mubr.msk.f32.vlgmr.msra.gmra.mxu0 %vm392_vm2, %v7237_v12  ;;  %v2708_v58 = vsel %vm392_vm2, %v7237_v12, 0.0 }
 0xb8c   :  { %2709 = vadd.xlane.f32.xlu1 %v2708_v58 }
 0xc11   :  { %v2707_v14 = vpop.xlane.xlu0 %2706 }
 0xc12   :  { %7238 = vrcp.f32 %v2707_v14 }
 0xc15   :  { %v2710_v15 = vpop.xlane.xlu1 %2709 }
 0xc16   :  { %7240 = vrcp.f32 %v2710_v15 }
 0xc1f   :  { %v7239_v16 = vpop.eup %7238 }
 0xc23   :  { %v7241_v20 = vpop.eup %7240 }
 0xc47   :  { %v2628_v17 = vpop.f32.mrf.mxu1 }
 0xc48   :  { %v2713_v18 = vmul.f32 %v7239_v16, %v2628_v17 }
 0xc49   :  { %v6898_v19 = vpop.f32.mrf.mxu1 }
 0xc4a   :  { %6906 = vmatprep.mubr.msk.f32.mxu1 %vm392_vm2, %v2713_v18 }
 0xc4b   :  { %v2701_v21 = vpop.f32.mrf.mxu0 }
 0xc4c   :  { %v2714_v22 = vmul.f32 %v7241_v20, %v2701_v21 }
 0xc4d   :  { %v6903_v23 = vpop.f32.mrf.mxu0 }
 0xc4e   :  { %6907 = vmatmul.mubr.msk.f32.vlgmr.msra.gmra.mxu1 %vm392_vm2, %v2714_v22 }
 0xc4f   :  { %6921 = vmatpush3.msra.mxu1 %v2972_v4 }
 0xc50   :  { %6922 = vmatprep.subr.mxu1 %v2971_v5 }
 0xc51   :  { %6923 = vmatpush3.msra.mxu1 %v2971_v5 }
 0xc52   :  { %6924 = vmatprep.subr.mxu1 %v2970_v6 }
 0xc53   :  { %6925 = vmatpush3.msra.mxu1 %v2970_v6 }
 0xc54   :  { %6926 = vmatprep.subr.mxu1 %v2969_v7 }
 0xc55   :  { %6927 = vmatpush3.msra.mxu1 %v2969_v7  ;;  %v6249_v7 = vld [vmem:[%s8391_s18] ss:$0 sm:$0xff] }
 0xc56   :  { %6928 = vmatprep.subr.mxu1 %v2968_v8 }
 0xc57   :  { %6929 = vmatpush3.msra.mxu1 %v2968_v8 }
 0xc58   :  { %6930 = vmatprep.subr.mxu1 %v2967_v9 }
 0xc59   :  { %6931 = vmatpush3.msra.mxu1 %v2967_v9 }
 0xc5a   :  { %6932 = vmatprep.subr.mxu1 %v2966_v10 }
 0xc5b   :  { %6933 = vmatpush3.msra.mxu1 %v2966_v10 }
 0xc5c   :  { %6934 = vmatprep.subr.mxu1 %v2965_v60 }
 0xc5d   :  { %6935 = vmatpush3.msra.mxu1 %v2965_v60 }
 0xd0e   :  { %v6908_v24 = vpop.f32.mrf.mxu1 }
 0xd0f   :  { %v2799_v26 = vadd.f32 %v6908_v24, %v7800_v52  ;;  %v2856_v52 = vld [vmem:[%s8387_s14 + $0x8] sm:$0xff] }
 0xd10   :  { %v2789_v27 = vpop.f32.mrf.mxu1 }
 0xd11   :  { %v2808_v28 = vadd.f32 %v6240_v25, %v2799_v26  ;;  %v2798_v30 = vadd.f32 %v2789_v27, %v7802_v54 }
 0xd13   :  { %v2807_v31 = vadd.f32 %v6240_v25, %v2798_v30  ;;  %v2810_v33 = vadd.f32 %v2808_v28, %v7481_v38 }
 0xd15   :  { %v2816_v34 = vsel %vm84_vm0, %v2810_v33, 0.0  ;;  %v2809_v36 = vadd.f32 %v2807_v31, %v7475_v35  ;;  %v2858_v35 = vld [vmem:[%s8387_s14 + $0x18] sm:$0xff] }
 0xd16   :  { %2817 = vadd.xlane.f32.xlu1 %v2816_v34  ;;  %6909 = vmatprep.subr.mxu0 %v2858_v35 }
 0xd17   :  { %v2813_v37 = vsel %vm84_vm0, %v2809_v36, 0.0  ;;  %6910 = vmatpush3.msra.mxu0 %v2858_v35 }
 0xd18   :  { %2814 = vadd.xlane.f32.xlu0 %v2813_v37  ;;  %6911 = vmatprep.subr.mxu0 %v2857_v51 }
 0xd19   :  { %6912 = vmatpush3.msra.mxu0 %v2857_v51 }
 0xd1a   :  { %6913 = vmatprep.subr.mxu0 %v2856_v52 }
 0xd1b   :  { %6914 = vmatpush3.msra.mxu0 %v2856_v52 }
 0xd1c   :  { %6915 = vmatprep.subr.mxu0 %v2855_v53 }
 0xd1d   :  { %6916 = vmatpush3.msra.mxu0 %v2855_v53 }
 0xd9f   :  { %v2818_v39 = vpop.xlane.xlu1 %2817 }
 0xda0   :  { %v2820_v40 = vmul.f32 0.03125, %v2818_v39 }
 0xda1   :  { %v2815_v41 = vpop.xlane.xlu0 %2814 }
 0xda2   :  { %v2822_v43 = vsub.f32 %v2810_v33, %v2820_v40  ;;  %v2819_v46 = vmul.f32 0.03125, %v2815_v41 }
 0xda4   :  { %v2821_v47 = vsub.f32 %v2809_v36, %v2819_v46  ;;  %v2824_v48 = vmul.f32 %v2822_v43, %v2822_v43  ;;  %v6246_v36 = vld [vmem:[%s8390_s17] ss:$0 sm:$0xff] }
 0xda6   :  { %v2828_v49 = vsel %vm84_vm0, %v2824_v48, 0.0  ;;  %v2823_v50 = vmul.f32 %v2821_v47, %v2821_v47 }
 0xda7   :  { %2829 = vadd.xlane.f32.xlu1 %v2828_v49 }
 0xda8   :  { %v2825_v38 = vsel %vm84_vm0, %v2823_v50, 0.0 }
 0xda9   :  { %2826 = vadd.xlane.f32.xlu0 %v2825_v38 }
 0xe30   :  { %v2830_v54 = vpop.xlane.xlu1 %2829 }
 0xe31   :  { %v2832_v55 = vmul.f32 0.03125, %v2830_v54 }
 0xe32   :  { %v2827_v56 = vpop.xlane.xlu0 %2826 }
 0xe33   :  { %v2834_v57 = vadd.f32 1e-12, %v2832_v55  ;;  %v2831_v59 = vmul.f32 0.03125, %v2827_v56 }
 0xe35   :  { %7242 = vrsqrt.f32 %v2834_v57  ;;  %v2833_v29 = vadd.f32 1e-12, %v2831_v59  ;;  %v6254_v57 = vld [vmem:[%s8403_s26 + $0x98] sm:$0xff] }
 0xe36   :  { %6939 = vmatprep.subr.mxu0 %v6254_v57  ;;  %v6270_v59 = vld [vmem:[%s8381_s8 + $0x98] sm:$0xff] }
 0xe37   :  { %7244 = vrsqrt.f32 %v2833_v29  ;;  %6961 = vmatprep.subr.mxu1 %v6270_v59  ;;  %v6253_v29 = vld [vmem:[%s8403_s26 + $0x90] sm:$0xff] }
 0xe42   :  { %v7243_v44 = vpop.eup %7242 }
 0xe43   :  { %v2838_v45 = vmul.f32 %v7243_v44, %v2822_v43  ;;  %v6269_v44 = vld [vmem:[%s8381_s8 + $0x90] sm:$0xff] }
 0xe44   :  { %v7245_v61 = vpop.eup %7244 }
 0xe45   :  { %v2837_v62 = vmul.f32 %v7245_v61, %v2821_v47  ;;  %v2846_v63 = vmul.f32 %v6241_v32, %v2838_v45  ;;  %v6268_v45 = vld [vmem:[%s8381_s8 + $0x88] sm:$0xff]  ;;  %v6251_v61 = vld [vmem:[%s8403_s26 + $0x80] sm:$0xff] }
 0xe47   :  { %v2845_v1 = vmul.f32 %v6241_v32, %v2837_v62  ;;  %v2854_v3 = vadd.f32 %v6242_v0, %v2846_v63  ;;  %v6252_v32 = vld [vmem:[%s8403_s26 + $0x88] sm:$0xff]  ;;  %v6267_v62 = vld [vmem:[%s8381_s8 + $0x80] sm:$0xff]  ;;  %v6262_v63 = vld [vmem:[%s8379_s6 + $0x98] sm:$0xff] }
 0xe49   :  { %v7862_v2 = vadd.f32 %v6242_v0, %v2845_v1 }
 0xe4b   :  { %6917 = vmatprep.mubr.msk.f32.mxu0 %vm84_vm0, %v7862_v2 }
 0xe4c   :  { %6918 = vmatmul.mubr.msk.f32.vlgmr.msra.gmra.mxu0 %vm84_vm0, %v2854_v3 }
 0xe4d   :  { %6940 = vmatpush3.msra.mxu0 %v6254_v57 }
 0xe4e   :  { %6941 = vmatprep.subr.mxu0 %v6253_v29 }
 0xe4f   :  { %6942 = vmatpush3.msra.mxu0 %v6253_v29  ;;  %v6291_v29 = vld [vmem:[%s8379_s6 + $0xa8] sm:$0xff] }
 0xe50   :  { %6943 = vmatprep.subr.mxu0 %v6252_v32 }
 0xe51   :  { %6944 = vmatpush3.msra.mxu0 %v6252_v32  ;;  %v6290_v32 = vld [vmem:[%s8379_s6 + $0xa0] sm:$0xff] }
 0xe52   :  { %6945 = vmatprep.subr.mxu0 %v6251_v61 }
 0xe53   :  { %6946 = vmatpush3.msra.mxu0 %v6251_v61  ;;  %v6301_v61 = vld [vmem:[%s8381_s8 + $0xb8] sm:$0xff] }
 0xe54   :  { %6950 = vmatprep.subr.mxu0 %v6262_v63 }
 0xf0c   :  { %v6919_v12 = vpop.f32.mrf.mxu0 }
 0xf0d   :  { %v2944_v58 = vadd.f32 %v6919_v12, %v6243_v11 }
 0xf0e   :  { %v2938_v13 = vpop.f32.mrf.mxu0 }
 0xf0f   :  { %v2950_v14 = vmul.f32 0.044715, %v2944_v58  ;;  %v2939_v15 = vadd.f32 %v6243_v11, %v2938_v13  ;;  %v2948_v31 = vmul.f32 0.5, %v2944_v58  ;;  %v6250_v11 = vld [vmem:[%s8392_s19] ss:$0 sm:$0xff] }
 0xf11   :  { %v2952_v16 = vmul.f32 %v2950_v14, %v2944_v58  ;;  %v2949_v17 = vmul.f32 0.044715, %v2939_v15  ;;  %v2947_v28 = vmul.f32 0.5, %v2939_v15  ;;  %v6261_v14 = vld [vmem:[%s8379_s6 + $0x90] sm:$0xff] }
 0xf13   :  { %v2954_v18 = vmul.f32 %v2952_v16, %v2944_v58  ;;  %v2951_v19 = vmul.f32 %v2949_v17, %v2939_v15  ;;  %v6259_v16 = vld [vmem:[%s8379_s6 + $0x80] sm:$0xff] }
 0xf15   :  { %v2956_v20 = vadd.f32 %v2954_v18, %v2944_v58  ;;  %v2953_v21 = vmul.f32 %v2951_v19, %v2939_v15  ;;  %v6264_v19 = vld [vmem:[%s8380_s7 + $0x4] ss:$0 sm:$0xff] }
 0xf17   :  { %v2958_v22 = vmul.f32 0.7978846, %v2956_v20  ;;  %v2955_v23 = vadd.f32 %v2953_v21, %v2939_v15  ;;  %v6260_v15 = vld [vmem:[%s8379_s6 + $0x88] sm:$0xff] }
 0xf19   :  { %7246 = vtanh.f32 %v2958_v22  ;;  %v2957_v24 = vmul.f32 0.7978846, %v2955_v23  ;;  %v6256_v22 = vld [vmem:[%s8378_s5 + $0x4] ss:$0 sm:$0xff] }
 0xf1b   :  { %7248 = vtanh.f32 %v2957_v24  ;;  %v6272_v24 = vld [vmem:[%s8382_s9 + $0x4] ss:$0 sm:$0xff] }
 0xf26   :  { %v7247_v25 = vpop.eup %7246 }
 0xf27   :  { %v2962_v27 = vadd.f32 1.0, %v7247_v25 }
 0xf28   :  { %v7249_v26 = vpop.eup %7248 }
 0xf29   :  { %v2961_v30 = vadd.f32 1.0, %v7249_v26  ;;  %v2964_v34 = vmul.f32 %v2962_v27, %v2948_v31 }
 0xf2b   :  { %v2963_v33 = vmul.f32 %v2961_v30, %v2947_v28 }
 0xf2d   :  { %6936 = vmatprep.mubr.msk.f32.mxu1 %vm2980_vm3, %v2963_v33 }
 0xf2e   :  { %6937 = vmatmul.mubr.msk.f32.vlgmr.msra.gmra.mxu1 %vm2980_vm3, %v2964_v34 }
 0xf2f   :  { %6962 = vmatpush3.msra.mxu1 %v6270_v59  ;;  %v6284_v59 = vld [vmem:[%s8403_s26 + $0xb0] sm:$0xff] }
 0xf30   :  { %6963 = vmatprep.subr.mxu1 %v6269_v44 }
 0xf31   :  { %6964 = vmatpush3.msra.mxu1 %v6269_v44  ;;  %v6283_v44 = vld [vmem:[%s8403_s26 + $0xa8] sm:$0xff] }
 0xf32   :  { %6965 = vmatprep.subr.mxu1 %v6268_v45 }
 0xf33   :  { %6966 = vmatpush3.msra.mxu1 %v6268_v45  ;;  %v6282_v45 = vld [vmem:[%s8403_s26 + $0xa0] sm:$0xff] }
 0xf34   :  { %6967 = vmatprep.subr.mxu1 %v6267_v62 }
 0xf35   :  { %6968 = vmatpush3.msra.mxu1 %v6267_v62  ;;  %v6300_v62 = vld [vmem:[%s8381_s8 + $0xb0] sm:$0xff] }
 0xf36   :  { %6977 = vmatprep.subr.mxu1 %v7322_v42 }
 0xfee   :  { %v6938_v37 = vpop.f32.mrf.mxu1 }
 0xfef   :  { %v3059_v39 = vadd.f32 %v6938_v37, %v6246_v36 }
 0xff0   :  { %v3053_v40 = vpop.f32.mrf.mxu1 }
 0xff1   :  { %v3054_v41 = vadd.f32 %v6246_v36, %v3053_v40  ;;  %v3063_v43 = vadd.f32 %v3059_v39, %v2854_v3  ;;  %v7990_v36 = vld [vmem:[%s8406_s22 + $0x1] ss:$0 sm:$0xff] }
 0xff3   :  { %v3069_v46 = vsel %vm84_vm0, %v3063_v43, 0.0  ;;  %v3062_v47 = vadd.f32 %v3054_v41, %v7862_v2  ;;  %v7996_v41 = vld [vmem:[%s8406_s22] ss:$0 sm:$0xff] }
 0xff4   :  { %3070 = vadd.xlane.f32.xlu1 %v3069_v46 }
 0xff5   :  { %v3066_v48 = vsel %vm84_vm0, %v3062_v47, 0.0 }
 0xff6   :  { %3067 = vadd.xlane.f32.xlu0 %v3066_v48 }
0x107d   :  { %v3071_v49 = vpop.xlane.xlu1 %3070 }
0x107e   :  { %v3073_v50 = vmul.f32 0.03125, %v3071_v49  ;;  %v6293_v49 = vld [vmem:[%s8379_s6 + $0xb8] sm:$0xff] }
0x107f   :  { %v3068_v38 = vpop.xlane.xlu0 %3067 }
0x1080   :  { %v3075_v35 = vsub.f32 %v3063_v43, %v3073_v50  ;;  %v3072_v51 = vmul.f32 0.03125, %v3068_v38  ;;  %v6285_v50 = vld [vmem:[%s8403_s26 + $0xb8] sm:$0xff] }
0x1082   :  { %v3074_v52 = vsub.f32 %v3062_v47, %v3072_v51  ;;  %v3077_v53 = vmul.f32 %v3075_v35, %v3075_v35 }
0x1084   :  { %v3081_v54 = vsel %vm84_vm0, %v3077_v53, 0.0  ;;  %v3076_v55 = vmul.f32 %v3074_v52, %v3074_v52 }
0x1085   :  { %3082 = vadd.xlane.f32.xlu1 %v3081_v54 }
0x1086   :  { %v3078_v56 = vsel %vm84_vm0, %v3076_v55, 0.0 }
0x1087   :  { %3079 = vadd.xlane.f32.xlu0 %v3078_v56  ;;  %v6292_v56 = vld [vmem:[%s8379_s6 + $0xb0] sm:$0xff] }
0x110e   :  { %v3083_v0 = vpop.xlane.xlu1 %3082 }
0x110f   :  { %v3085_v1 = vmul.f32 0.03125, %v3083_v0  ;;  %v6298_v0 = vld [vmem:[%s8381_s8 + $0xa0] sm:$0xff] }
0x1110   :  { %v3080_v2 = vpop.xlane.xlu0 %3079 }
0x1111   :  { %v3087_v3 = vadd.f32 1e-12, %v3085_v1  ;;  %v3084_v4 = vmul.f32 0.03125, %v3080_v2 }
0x1113   :  { %7250 = vrsqrt.f32 %v3087_v3  ;;  %v3086_v5 = vadd.f32 1e-12, %v3084_v4 }
0x1115   :  { %7252 = vrsqrt.f32 %v3086_v5 }
0x1120   :  { %v7251_v6 = vpop.eup %7250 }
0x1121   :  { %v3091_v8 = vmul.f32 %v7251_v6, %v3075_v35 }
0x1122   :  { %v7253_v9 = vpop.eup %7252 }
0x1123   :  { %v3090_v10 = vmul.f32 %v7253_v9, %v3074_v52  ;;  %v3099_v60 = vmul.f32 %v6249_v7, %v3091_v8  ;;  %v6287_v9 = vld [vmem:[%s8378_s5 + $0x5] ss:$0 sm:$0xff] }
0x1125   :  { %v3098_v12 = vmul.f32 %v6249_v7, %v3090_v10  ;;  %v7940_v13 = vadd.f32 %v6250_v11, %v3099_v60  ;;  %v6295_v7 = vld [vmem:[%s8380_s7 + $0x5] ss:$0 sm:$0xff] }
0x1127   :  { %v7938_v58 = vadd.f32 %v6250_v11, %v3098_v12 }
0x1129   :  { %6947 = vmatprep.mubr.msk.f32.mxu0 %vm84_vm0, %v7938_v58  ;;  %6969 = vmatprep.mubr.msk.f32.mxu1 %vm84_vm0, %v7938_v58 }
0x112a   :  { %6948 = vmatmul.mubr.msk.f32.vlgmr.msra.gmra.mxu0 %vm84_vm0, %v7940_v13  ;;  %6970 = vmatmul.mubr.msk.f32.vlgmr.msra.gmra.mxu1 %vm84_vm0, %v7940_v13 }
0x112b   :  { %6951 = vmatpush3.msra.mxu0 %v6262_v63  ;;  %6958 = vmatprep.mubr.msk.f32.mxu0 %vm84_vm0, %v7938_v58  ;;  %v6299_v63 = vld [vmem:[%s8381_s8 + $0xa8] sm:$0xff] }
0x112c   :  { %6952 = vmatprep.subr.mxu0 %v6261_v14  ;;  %6979 = vmatprep.mubr.msk.f32.mxu1 %vm7323_vm1, %v7322_v42 }
0x112d   :  { %6953 = vmatpush3.msra.mxu0 %v6261_v14  ;;  %v6303_v14 = vld [vmem:[%s8382_s9 + $0x5] ss:$0 sm:$0xff] }
0x112e   :  { %6954 = vmatprep.subr.mxu0 %v6260_v15 }
0x112f   :  { %6955 = vmatpush3.msra.mxu0 %v6260_v15 }
0x1130   :  { %6956 = vmatprep.subr.mxu0 %v6259_v16 }
0x1131   :  { %6957 = vmatpush3.msra.mxu0 %v6259_v16 }
0x1132   :  { %6959 = vmatmul.mubr.msk.f32.vlgmr.msra.gmra.mxu0 %vm84_vm0, %v7940_v13  ;;  %6972 = vmatprep.subr.mxu0 %v7322_v42 }
0x1133   :  { %6974 = vmatprep.mubr.msk.f32.mxu0 %vm7323_vm1, %v7322_v42 }
0x11ea   :  { %v6949_v17 = vpop.f32.mrf.mxu0  ;;  %v6971_v20 = vpop.f32.mrf.mxu1 }
0x11eb   :  { %v3199_v27 = vadd.f32 %v6949_v17, %v6256_v22  ;;  %v3375_v30 = vadd.f32 %v6971_v20, %v6272_v24 }
0x11ec   :  { %v3193_v18 = vpop.f32.mrf.mxu0  ;;  %v3369_v28 = vpop.f32.mrf.mxu1 }
0x11ed   :  { %v3194_v31 = vadd.f32 %v6256_v22, %v3193_v18  ;;  %v3370_v33 = vadd.f32 %v6272_v24, %v3369_v28 }
0x11f2   :  { %v6960_v21 = vpop.f32.mrf.mxu0 }
0x11f3   :  { %v3287_v23 = vadd.f32 %v6960_v21, %v6264_v19 }
0x11f4   :  { %v3281_v25 = vpop.f32.mrf.mxu0 }
0x11f5   :  { %v3282_v26 = vadd.f32 %v6264_v19, %v3281_v25  ;;  %6978 = vmatpush3.xpose.msk.msra.mxu1 %vm392_vm2, %v3287_v23 }
0x11f6   :  { %6987 = vmatprep.subr.mxu1 %v7322_v42 }
0x11f7   :  { %6973 = vmatpush3.xpose.msk.msra.mxu0 %vm392_vm2, %v3282_v26 }
0x11f8   :  { %6980 = vmatmul.mubr.msk.f32.vlgmr.msra.gmra.mxu1 %vm392_vm2, %v3199_v27  ;;  %6982 = vmatprep.subr.mxu0 %v7322_v42 }
0x11f9   :  { %6988 = vmatpush3.msra.mxu1 %v3375_v30  ;;  %6989 = vmatprep.mubr.msk.f32.mxu1 %vm7323_vm1, %v7322_v42 }
0x11fa   :  { %6975 = vmatmul.mubr.msk.f32.vlgmr.msra.gmra.mxu0 %vm392_vm2, %v3194_v31  ;;  %7003 = vmatprep.subr.mxu1 %v6293_v49  ;;  %v6281_v31 = vld [vmem:[%s8383_s10 + $0x20] sm:$0xff] }
0x11fb   :  { %6983 = vmatpush3.msra.mxu0 %v3370_v33  ;;  %6984 = vmatprep.mubr.msk.f32.mxu0 %vm7323_vm1, %v7322_v42 }
0x11fc   :  { %6992 = vmatprep.subr.mxu0 %v6285_v50 }
0x12b8   :  { %v3526_v34 = vpop.f32.mrf.mxu1 }
0x12b9   :  { %v3527_v37 = vadd.f32 %v7990_v36, %v3526_v34 }
0x12ba   :  { %v3450_v39 = vpop.f32.mrf.mxu0  ;;  %v6981_v40 = vpop.f32.mrf.mxu1 }
0x12bb   :  { %v3451_v43 = vadd.f32 %v7996_v41, %v3450_v39  ;;  %v3533_v46 = vsel %vm392_vm2, %v3527_v37, -inf }
0x12bc   :  { %3534 = vmax.xlane.f32.xlu0 %v3533_v46  ;;  %v6976_v47 = vpop.f32.mrf.mxu0 }
0x12bd   :  { %v3530_v48 = vsel %vm392_vm2, %v3451_v43, -inf }
0x12be   :  { %3531 = vmax.xlane.f32.xlu1 %v3530_v48 }
0x1345   :  { %v3535_v38 = vpop.xlane.xlu0 %3534 }
0x1346   :  { %v3537_v35 = vsub.f32 %v3527_v37, %v3535_v38 }
0x1347   :  { %v3532_v51 = vpop.xlane.xlu1 %3531 }
0x1348   :  { %v3540_v52 = vmul.f32 1.442695, %v3537_v35  ;;  %v3536_v53 = vsub.f32 %v3451_v43, %v3532_v51 }
0x134a   :  { %7254 = vpow2.f32 %v3540_v52  ;;  %v3538_v54 = vmul.f32 1.442695, %v3536_v53  ;;  %v6328_v53 = vld [vmem:[%s8379_s6 + $0xd8] sm:$0xff] }
0x134c   :  { %7256 = vpow2.f32 %v3538_v54 }
0x1357   :  { %v8007_v55 = vpop.eup %7254 }
0x1358   :  { %6990 = vmatmul.mubr.msk.f32.vlgmr.msra.gmra.mxu1 %vm392_vm2, %v8007_v55  ;;  %v3691_v30 = vsel %vm392_vm2, %v8007_v55, 0.0  ;;  %v6327_v55 = vld [vmem:[%s8379_s6 + $0xd0] sm:$0xff] }
0x1359   :  { %v8014_v57 = vpop.eup %7256  ;;  %7004 = vmatpush3.msra.mxu1 %v6293_v49  ;;  %7011 = vmatprep.mubr.msk.f32.mxu1 %vm84_vm0, %v7938_v58 }
0x135a   :  { %7005 = vmatprep.subr.mxu1 %v6292_v56  ;;  %6985 = vmatmul.mubr.msk.f32.vlgmr.msra.gmra.mxu0 %vm392_vm2, %v8014_v57  ;;  %v3688_v27 = vsel %vm392_vm2, %v8014_v57, 0.0  ;;  %v6325_v57 = vld [vmem:[%s8379_s6 + $0xc0] sm:$0xff] }
0x135b   :  { %6993 = vmatpush3.msra.mxu0 %v6285_v50  ;;  %7006 = vmatpush3.msra.mxu1 %v6292_v56  ;;  %v6326_v56 = vld [vmem:[%s8379_s6 + $0xc8] sm:$0xff] }
0x135c   :  { %6994 = vmatprep.subr.mxu0 %v6284_v59  ;;  %7000 = vmatprep.mubr.msk.f32.mxu0 %vm84_vm0, %v7938_v58 }
0x135d   :  { %7007 = vmatprep.subr.mxu1 %v6291_v29  ;;  %6995 = vmatpush3.msra.mxu0 %v6284_v59  ;;  %v6312_v59 = vld [vmem:[%s8383_s10 + $0x28] sm:$0xff] }
0x135e   :  { %7008 = vmatpush3.msra.mxu1 %v6291_v29  ;;  %6996 = vmatprep.subr.mxu0 %v6283_v44  ;;  %v6320_v29 = vld [vmem:[%s8403_s26 + $0xd8] sm:$0xff] }
0x135f   :  { %7009 = vmatprep.subr.mxu1 %v6290_v32  ;;  %6997 = vmatpush3.msra.mxu0 %v6283_v44 }
0x1360   :  { %7010 = vmatpush3.msra.mxu1 %v6290_v32  ;;  %6998 = vmatprep.subr.mxu0 %v6282_v45 }
0x1361   :  { %7012 = vmatmul.mubr.msk.f32.vlgmr.msra.gmra.mxu1 %vm84_vm0, %v7940_v13  ;;  %6999 = vmatpush3.msra.mxu0 %v6282_v45 }
0x1362   :  { %7001 = vmatmul.mubr.msk.f32.vlgmr.msra.gmra.mxu0 %vm84_vm0, %v7940_v13  ;;  %7014 = vmatprep.subr.mxu0 %v6301_v61 }
0x1363   :  { %7015 = vmatpush3.msra.mxu0 %v6301_v61  ;;  %7022 = vmatprep.mubr.msk.f32.mxu0 %vm84_vm0, %v7938_v58 }
0x1364   :  { %7016 = vmatprep.subr.mxu0 %v6300_v62  ;;  %7025 = vmatprep.subr.mxu1 %v7322_v42 }
0x1365   :  { %7017 = vmatpush3.msra.mxu0 %v6300_v62  ;;  %7027 = vmatprep.mubr.msk.f32.mxu1 %vm7323_vm1, %v7322_v42 }
0x1366   :  { %7018 = vmatprep.subr.mxu0 %v6299_v63 }
0x1367   :  { %7019 = vmatpush3.msra.mxu0 %v6299_v63 }
0x1368   :  { %7020 = vmatprep.subr.mxu0 %v6298_v0 }
0x1369   :  { %7021 = vmatpush3.msra.mxu0 %v6298_v0 }
0x136a   :  { %7023 = vmatmul.mubr.msk.f32.vlgmr.msra.gmra.mxu0 %vm84_vm0, %v7940_v13  ;;  %7035 = vmatprep.subr.mxu0 %v7322_v42 }
0x136b   :  { %7037 = vmatprep.mubr.msk.f32.mxu0 %vm7323_vm1, %v7322_v42 }
0x1418   :  { %v8063_v1 = vpop.f32.mrf.mxu1 }
0x141a   :  { %v3611_v2 = vpop.f32.mrf.mxu0  ;;  %v6991_v3 = vpop.f32.mrf.mxu1 }
0x141c   :  { %v6986_v4 = vpop.f32.mrf.mxu0 }
0x141d   :  { %v6319_v4 = vld [vmem:[%s8403_s26 + $0xd0] sm:$0xff] }
0x1421   :  { %v7013_v5 = vpop.f32.mrf.mxu1 }
0x1422   :  { %v7002_v6 = vpop.f32.mrf.mxu0  ;;  %v3873_v12 = vadd.f32 %v7013_v5, %v6295_v7  ;;  %v6318_v5 = vld [vmem:[%s8403_s26 + $0xc8] sm:$0xff] }
0x1423   :  { %v3867_v8 = vpop.f32.mrf.mxu1  ;;  %v3785_v16 = vadd.f32 %v7002_v6, %v6287_v9 }
0x1424   :  { %v3868_v10 = vadd.f32 %v6295_v7, %v3867_v8  ;;  %v3779_v60 = vpop.f32.mrf.mxu0  ;;  %v6317_v7 = vld [vmem:[%s8403_s26 + $0xc0] sm:$0xff]  ;;  %v6336_v8 = vld [vmem:[%s8381_s8 + $0xd8] sm:$0xff] }
0x1425   :  { %v3780_v11 = vadd.f32 %v6287_v9, %v3779_v60  ;;  %v6335_v60 = vld [vmem:[%s8381_s8 + $0xd0] sm:$0xff] }
0x1426   :  { %7026 = vmatpush3.xpose.msk.msra.mxu1 %vm392_vm2, %v3868_v10  ;;  %v6330_v10 = vld [vmem:[%s8380_s7 + $0x6] ss:$0 sm:$0xff] }
0x1427   :  { %7030 = vmatprep.subr.mxu1 %v7322_v42 }
0x1429   :  { %7028 = vmatmul.mubr.msk.f32.vlgmr.msra.gmra.mxu1 %vm392_vm2, %v3780_v11 }
0x142a   :  { %7031 = vmatpush3.xpose.msk.msra.mxu1 %vm392_vm2, %v3873_v12  ;;  %v7024_v15 = vpop.f32.mrf.mxu0  ;;  %7032 = vmatprep.mubr.msk.f32.mxu1 %vm7323_vm1, %v7322_v42  ;;  %v6334_v12 = vld [vmem:[%s8381_s8 + $0xc8] sm:$0xff] }
0x142b   :  { %v3961_v17 = vadd.f32 %v7024_v15, %v6303_v14  ;;  %7040 = vmatprep.subr.mxu1 %v7322_v42 }
0x142c   :  { %v3955_v18 = vpop.f32.mrf.mxu0 }
0x142d   :  { %v3956_v19 = vadd.f32 %v6303_v14, %v3955_v18  ;;  %7033 = vmatmul.mubr.msk.f32.vlgmr.msra.gmra.mxu1 %vm392_vm2, %v3785_v16  ;;  %v6333_v16 = vld [vmem:[%s8381_s8 + $0xc0] sm:$0xff] }
0x142e   :  { %7041 = vmatpush3.msra.mxu1 %v3961_v17  ;;  %7042 = vmatprep.mubr.msk.f32.mxu1 %vm7323_vm1, %v7322_v42 }
0x142f   :  { %7036 = vmatpush3.msra.mxu0 %v3956_v19  ;;  %7050 = vmatprep.subr.mxu1 %v6281_v31 }
0x1430   :  { %7045 = vmatprep.subr.mxu0 %v6312_v59 }
0x14e9   :  { %v4036_v20 = vpop.f32.mrf.mxu1 }
0x14ea   :  { %v4037_v21 = vadd.f32 %v7996_v41, %v4036_v20 }
0x14eb   :  { %v7029_v22 = vpop.f32.mrf.mxu1 }
0x14ec   :  { %v4116_v23 = vsel %vm392_vm2, %v4037_v21, -inf }
0x14ed   :  { %4117 = vmax.xlane.f32.xlu0 %v4116_v23  ;;  %v4112_v24 = vpop.f32.mrf.mxu1 }
0x14ee   :  { %v4113_v25 = vadd.f32 %v7990_v36, %v4112_v24  ;;  %v6338_v24 = vld [vmem:[%s8382_s9 + $0x6] ss:$0 sm:$0xff] }
0x14ef   :  { %v7034_v26 = vpop.f32.mrf.mxu1 }
0x14f0   :  { %v4119_v28 = vsel %vm392_vm2, %v4113_v25, -inf }
0x14f1   :  { %3689 = vadd.xlane.f32.xlu0 %v3688_v27  ;;  %4120 = vmax.xlane.f32.xlu1 %v4119_v28 }
0x14f5   :  { %3692 = vadd.xlane.f32.xlu1 %v3691_v30 }
0x1576   :  { %v4118_v33 = vpop.xlane.xlu0 %4117 }
0x1577   :  { %v4122_v34 = vsub.f32 %v4037_v21, %v4118_v33  ;;  %v6322_v21 = vld [vmem:[%s8378_s5 + $0x6] ss:$0 sm:$0xff] }
0x1579   :  { %v4124_v37 = vmul.f32 1.442695, %v4122_v34 }
0x157a   :  { %v3690_v39 = vpop.xlane.xlu0 %3689  ;;  %v4121_v40 = vpop.xlane.xlu1 %4120 }
0x157b   :  { %7258 = vpow2.f32 %v4124_v37  ;;  %v4123_v43 = vsub.f32 %v4113_v25, %v4121_v40 }
0x157c   :  { %7260 = vrcp.f32 %v3690_v39 }
0x157d   :  { %v4126_v46 = vmul.f32 1.442695, %v4123_v43 }
0x157e   :  { %v3693_v47 = vpop.xlane.xlu1 %3692 }
0x157f   :  { %7262 = vpow2.f32 %v4126_v46 }
0x1580   :  { %7264 = vrcp.f32 %v3693_v47  ;;  %v6353_v47 = vld [vmem:[%s8403_s26 + $0xf8] sm:$0xff] }
0x1588   :  { %v7259_v48 = vpop.eup %7258 }
0x1589   :  { %v7261_v49 = vpop.eup %7260  ;;  %7038 = vmatmul.mubr.msk.f32.vlgmr.msra.gmra.mxu0 %vm392_vm2, %v7259_v48  ;;  %v4274_v50 = vsel %vm392_vm2, %v7259_v48, 0.0 }
0x158a   :  { %4275 = vadd.xlane.f32.xlu0 %v4274_v50  ;;  %v3696_v35 = vmul.f32 %v7261_v49, %v3611_v2  ;;  %7046 = vmatpush3.msra.mxu0 %v6312_v59  ;;  %v6350_v59 = vld [vmem:[%s8403_s26 + $0xe0] sm:$0xff] }
0x158b   :  { %7055 = vmatprep.subr.mxu0 %v6320_v29 }
0x158c   :  { %v7263_v38 = vpop.eup %7262 }
0x158d   :  { %v7265_v51 = vpop.eup %7264  ;;  %7043 = vmatmul.mubr.msk.f32.vlgmr.msra.gmra.mxu1 %vm392_vm2, %v7263_v38  ;;  %v4277_v52 = vsel %vm392_vm2, %v7263_v38, 0.0 }
0x158e   :  { %4278 = vadd.xlane.f32.xlu1 %v4277_v52  ;;  %7052 = vmatprep.mubr.msk.f32.mxu1 %vm392_vm2, %v3696_v35  ;;  %v3697_v54 = vmul.f32 %v7265_v51, %v8063_v1 }
0x158f   :  { %7051 = vmatpush3.msra.mxu1 %v6281_v31 }
0x1590   :  { %7066 = vmatprep.subr.mxu1 %v6328_v53 }
0x1591   :  { %7053 = vmatmul.mubr.msk.f32.vlgmr.msra.gmra.mxu1 %vm392_vm2, %v3697_v54 }
0x1592   :  { %7067 = vmatpush3.msra.mxu1 %v6328_v53  ;;  %7074 = vmatprep.mubr.msk.f32.mxu1 %vm84_vm0, %v7938_v58 }
0x1593   :  { %7068 = vmatprep.subr.mxu1 %v6327_v55 }
0x1594   :  { %7069 = vmatpush3.msra.mxu1 %v6327_v55  ;;  %v6352_v55 = vld [vmem:[%s8403_s26 + $0xf0] sm:$0xff] }
0x1595   :  { %7070 = vmatprep.subr.mxu1 %v6326_v56 }
0x1596   :  { %7071 = vmatpush3.msra.mxu1 %v6326_v56 }
0x1597   :  { %7072 = vmatprep.subr.mxu1 %v6325_v57 }
0x1598   :  { %7073 = vmatpush3.msra.mxu1 %v6325_v57  ;;  %v6351_v57 = vld [vmem:[%s8403_s26 + $0xe8] sm:$0xff] }
0x1599   :  { %7075 = vmatmul.mubr.msk.f32.vlgmr.msra.gmra.mxu1 %vm84_vm0, %v7940_v13  ;;  %7088 = vmatprep.subr.mxu1 %v7322_v42 }
0x159a   :  { %7090 = vmatprep.mubr.msk.f32.mxu1 %vm7323_vm1, %v7322_v42 }
0x1613   :  { %v4276_v44 = vpop.xlane.xlu0 %4275 }
0x1614   :  { %7266 = vrcp.f32 %v4276_v44  ;;  %v6368_v44 = vld [vmem:[%s8381_s8 + $0xf0] sm:$0xff] }
0x1617   :  { %v4279_v32 = vpop.xlane.xlu1 %4278 }
0x1618   :  { %7268 = vrcp.f32 %v4279_v32  ;;  %v6367_v32 = vld [vmem:[%s8381_s8 + $0xe8] sm:$0xff] }
0x1621   :  { %v7267_v45 = vpop.eup %7266 }
0x1625   :  { %v7269_v0 = vpop.eup %7268 }
0x1649   :  { %v4197_v61 = vpop.f32.mrf.mxu0 }
0x164a   :  { %v4282_v62 = vmul.f32 %v7267_v45, %v4197_v61  ;;  %v6366_v45 = vld [vmem:[%s8381_s8 + $0xe0] sm:$0xff]  ;;  %v6347_v61 = vld [vmem:[%s8383_s10 + $0x30] sm:$0xff] }
0x164b   :  { %v7039_v63 = vpop.f32.mrf.mxu0 }
0x164c   :  { %7047 = vmatprep.mubr.msk.f32.mxu0 %vm392_vm2, %v4282_v62  ;;  %v6361_v62 = vld [vmem:[%s8379_s6 + $0xf8] sm:$0xff] }
0x164d   :  { %v4270_v1 = vpop.f32.mrf.mxu1 }
0x164e   :  { %v4283_v2 = vmul.f32 %v7269_v0, %v4270_v1 }
0x164f   :  { %v7044_v3 = vpop.f32.mrf.mxu1 }
0x1650   :  { %7048 = vmatmul.mubr.msk.f32.vlgmr.msra.gmra.mxu0 %vm392_vm2, %v4283_v2 }
0x1651   :  { %7056 = vmatpush3.msra.mxu0 %v6320_v29  ;;  %7063 = vmatprep.mubr.msk.f32.mxu0 %vm84_vm0, %v7938_v58  ;;  %v8137_v6 = vpop.f32.mrf.mxu1  ;;  %v6369_v29 = vld [vmem:[%s8381_s8 + $0xf8] sm:$0xff] }
0x1652   :  { %7057 = vmatprep.subr.mxu0 %v6319_v4 }
0x1653   :  { %7058 = vmatpush3.msra.mxu0 %v6319_v4  ;;  %v8145_v9 = vpop.f32.mrf.mxu1 }
0x1654   :  { %7059 = vmatprep.subr.mxu0 %v6318_v5 }
0x1655   :  { %7060 = vmatpush3.msra.mxu0 %v6318_v5 }
0x1656   :  { %7061 = vmatprep.subr.mxu0 %v6317_v7 }
0x1657   :  { %7062 = vmatpush3.msra.mxu0 %v6317_v7 }
0x1658   :  { %7064 = vmatmul.mubr.msk.f32.vlgmr.msra.gmra.mxu0 %vm84_vm0, %v7940_v13  ;;  %7077 = vmatprep.subr.mxu0 %v6336_v8 }
0x1659   :  { %v7076_v11 = vpop.f32.mrf.mxu1  ;;  %7078 = vmatpush3.msra.mxu0 %v6336_v8  ;;  %7085 = vmatprep.mubr.msk.f32.mxu0 %vm84_vm0, %v7938_v58 }
0x165a   :  { %v4621_v14 = vadd.f32 %v7076_v11, %v6330_v10  ;;  %7079 = vmatprep.subr.mxu0 %v6335_v60  ;;  %v6359_v11 = vld [vmem:[%s8379_s6 + $0xe8] sm:$0xff] }
0x165b   :  { %v4615_v15 = vpop.f32.mrf.mxu1  ;;  %7080 = vmatpush3.msra.mxu0 %v6335_v60  ;;  %v6360_v60 = vld [vmem:[%s8379_s6 + $0xf0] sm:$0xff] }
0x165c   :  { %v4616_v17 = vadd.f32 %v6330_v10, %v4615_v15  ;;  %7081 = vmatprep.subr.mxu0 %v6334_v12 }
0x165d   :  { %7082 = vmatpush3.msra.mxu0 %v6334_v12  ;;  %v6358_v12 = vld [vmem:[%s8379_s6 + $0xe0] sm:$0xff] }
0x165e   :  { %7083 = vmatprep.subr.mxu0 %v6333_v16  ;;  %7089 = vmatpush3.xpose.msk.msra.mxu1 %vm392_vm2, %v4616_v17 }
0x165f   :  { %7084 = vmatpush3.msra.mxu0 %v6333_v16  ;;  %7093 = vmatprep.subr.mxu1 %v7322_v42  ;;  %v6371_v16 = vld [vmem:[%s8382_s9 + $0x7] ss:$0 sm:$0xff] }
0x1660   :  { %7086 = vmatmul.mubr.msk.f32.vlgmr.msra.gmra.mxu0 %vm84_vm0, %v7940_v13  ;;  %7098 = vmatprep.subr.mxu0 %v7322_v42 }
0x1661   :  { %7100 = vmatprep.mubr.msk.f32.mxu0 %vm7323_vm1, %v7322_v42 }
0x1710   :  { %v8170_v18 = vpop.f32.mrf.mxu0 }
0x1712   :  { %v8172_v19 = vpop.f32.mrf.mxu0 }
0x1718   :  { %v7065_v20 = vpop.f32.mrf.mxu0 }
0x1719   :  { %v4533_v25 = vadd.f32 %v7065_v20, %v6322_v21 }
0x171a   :  { %v4527_v22 = vpop.f32.mrf.mxu0 }
0x171b   :  { %v4528_v23 = vadd.f32 %v6322_v21, %v4527_v22 }
0x171d   :  { %7091 = vmatmul.mubr.msk.f32.vlgmr.msra.gmra.mxu1 %vm392_vm2, %v4528_v23  ;;  %v4445_v23 = vadd.f32 %v8137_v6, %v8170_v18  ;;  %v6355_v6 = vld [vmem:[%s8378_s5 + $0x7] ss:$0 sm:$0xff] }
0x171e   :  { %7094 = vmatpush3.xpose.msk.msra.mxu1 %vm392_vm2, %v4621_v14  ;;  %7095 = vmatprep.mubr.msk.f32.mxu1 %vm7323_vm1, %v7322_v42 }
0x171f   :  { %7103 = vmatprep.subr.mxu1 %v7322_v42 }
0x1720   :  { %v7087_v26 = vpop.f32.mrf.mxu0 }
0x1721   :  { %v4709_v27 = vadd.f32 %v7087_v26, %v6338_v24  ;;  %7096 = vmatmul.mubr.msk.f32.vlgmr.msra.gmra.mxu1 %vm392_vm2, %v4533_v25  ;;  %v4440_v25 = vadd.f32 %v8145_v9, %v8172_v19 }
0x1722   :  { %v4703_v28 = vpop.f32.mrf.mxu0  ;;  %7105 = vmatprep.mubr.msk.f32.mxu1 %vm7323_vm1, %v7322_v42 }
0x1723   :  { %v4704_v30 = vadd.f32 %v6338_v24, %v4703_v28  ;;  %7104 = vmatpush3.msra.mxu1 %v4709_v27 }
0x1724   :  { %7113 = vmatprep.subr.mxu1 %v6353_v47 }
0x1725   :  { %7099 = vmatpush3.msra.mxu0 %v4704_v30 }
0x1726   :  { %7108 = vmatprep.subr.mxu0 %v6347_v61 }
0x17dd   :  { %v4784_v31 = vpop.f32.mrf.mxu1 }
0x17de   :  { %v4785_v33 = vadd.f32 %v7996_v41, %v4784_v31  ;;  %v6363_v31 = vld [vmem:[%s8380_s7 + $0x7] ss:$0 sm:$0xff] }
0x17df   :  { %v7092_v34 = vpop.f32.mrf.mxu1 }
0x17e0   :  { %v4864_v37 = vsel %vm392_vm2, %v4785_v33, -inf }
0x17e1   :  { %4865 = vmax.xlane.f32.xlu0 %v4864_v37  ;;  %v4860_v39 = vpop.f32.mrf.mxu1 }
0x17e2   :  { %v4861_v40 = vadd.f32 %v7990_v36, %v4860_v39 }
0x17e3   :  { %v7097_v43 = vpop.f32.mrf.mxu1 }
0x17e4   :  { %v4867_v46 = vsel %vm392_vm2, %v4861_v40, -inf }
0x17e5   :  { %4868 = vmax.xlane.f32.xlu1 %v4867_v46 }
0x186a   :  { %v4866_v48 = vpop.xlane.xlu0 %4865 }
0x186b   :  { %v4870_v49 = vsub.f32 %v4785_v33, %v4866_v48 }
0x186d   :  { %v4872_v50 = vmul.f32 1.442695, %v4870_v49 }
0x186e   :  { %v4869_v38 = vpop.xlane.xlu1 %4868 }
0x186f   :  { %7270 = vpow2.f32 %v4872_v50  ;;  %v4871_v35 = vsub.f32 %v4861_v40, %v4869_v38 }
0x1871   :  { %v4874_v51 = vmul.f32 1.442695, %v4871_v35 }
0x1873   :  { %7272 = vpow2.f32 %v4874_v51 }
0x187c   :  { %v7271_v52 = vpop.eup %7270 }
0x187d   :  { %7101 = vmatmul.mubr.msk.f32.vlgmr.msra.gmra.mxu0 %vm392_vm2, %v7271_v52  ;;  %v5022_v53 = vsel %vm392_vm2, %v7271_v52, 0.0 }
0x187e   :  { %5023 = vadd.xlane.f32.xlu0 %v5022_v53  ;;  %7109 = vmatpush3.msra.mxu0 %v6347_v61 }
0x187f   :  { %7124 = vmatprep.subr.mxu0 %v6361_v62 }
0x1880   :  { %v7273_v54 = vpop.eup %7272 }
0x1881   :  { %7106 = vmatmul.mubr.msk.f32.vlgmr.msra.gmra.mxu1 %vm392_vm2, %v7273_v54  ;;  %v5025_v56 = vsel %vm392_vm2, %v7273_v54, 0.0 }
0x1882   :  { %7114 = vmatpush3.msra.mxu1 %v6353_v47  ;;  %5026 = vadd.xlane.f32.xlu1 %v5025_v56 }
0x1883   :  { %7115 = vmatprep.subr.mxu1 %v6352_v55  ;;  %7121 = vmatprep.mubr.msk.f32.mxu1 %vm84_vm0, %v7938_v58 }
0x1884   :  { %7116 = vmatpush3.msra.mxu1 %v6352_v55  ;;  %v6380_v55 = vld [vmem:[%s8383_s10 + $0x38] sm:$0xff] }
0x1885   :  { %7117 = vmatprep.subr.mxu1 %v6351_v57 }
0x1886   :  { %7118 = vmatpush3.msra.mxu1 %v6351_v57 }
0x1887   :  { %7119 = vmatprep.subr.mxu1 %v6350_v59 }
0x1888   :  { %7120 = vmatpush3.msra.mxu1 %v6350_v59 }
0x1889   :  { %7122 = vmatmul.mubr.msk.f32.vlgmr.msra.gmra.mxu1 %vm84_vm0, %v7940_v13  ;;  %7135 = vmatprep.subr.mxu1 %v6369_v29 }
0x188a   :  { %7136 = vmatpush3.msra.mxu1 %v6369_v29  ;;  %7143 = vmatprep.mubr.msk.f32.mxu1 %vm84_vm0, %v7938_v58 }
0x188b   :  { %7137 = vmatprep.subr.mxu1 %v6368_v44 }
0x188c   :  { %7138 = vmatpush3.msra.mxu1 %v6368_v44 }
0x188d   :  { %7139 = vmatprep.subr.mxu1 %v6367_v32 }
0x188e   :  { %7140 = vmatpush3.msra.mxu1 %v6367_v32 }
0x188f   :  { %7141 = vmatprep.subr.mxu1 %v6366_v45 }
0x1890   :  { %7142 = vmatpush3.msra.mxu1 %v6366_v45 }
0x1891   :  { %7144 = vmatmul.mubr.msk.f32.vlgmr.msra.gmra.mxu1 %vm84_vm0, %v7940_v13  ;;  %7156 = vmatprep.subr.mxu1 %v7322_v42 }
0x1892   :  { %7158 = vmatprep.mubr.msk.f32.mxu1 %vm7323_vm1, %v7322_v42 }
0x1907   :  { %v5024_v63 = vpop.xlane.xlu0 %5023 }
0x1908   :  { %7274 = vrcp.f32 %v5024_v63 }
0x190b   :  { %v5027_v0 = vpop.xlane.xlu1 %5026 }
0x190c   :  { %7276 = vrcp.f32 %v5027_v0 }
0x1915   :  { %v7275_v1 = vpop.eup %7274 }
0x1919   :  { %v7277_v5 = vpop.eup %7276 }
0x193d   :  { %v4945_v2 = vpop.f32.mrf.mxu0 }
0x193e   :  { %v5030_v3 = vmul.f32 %v7275_v1, %v4945_v2  ;;  %v6384_v1 = vld [vmem:[%s8384_s11 + $0x1] ss:$0 sm:$0xff] }
0x193f   :  { %v7102_v4 = vpop.f32.mrf.mxu0 }
0x1940   :  { %7110 = vmatprep.mubr.msk.f32.mxu0 %vm392_vm2, %v5030_v3 }
0x1941   :  { %v5018_v7 = vpop.f32.mrf.mxu1 }
0x1942   :  { %v5031_v8 = vmul.f32 %v7277_v5, %v5018_v7 }
0x1943   :  { %v7107_v10 = vpop.f32.mrf.mxu1 }
0x1944   :  { %7111 = vmatmul.mubr.msk.f32.vlgmr.msra.gmra.mxu0 %vm392_vm2, %v5031_v8 }
0x1945   :  { %7125 = vmatpush3.msra.mxu0 %v6361_v62  ;;  %7132 = vmatprep.mubr.msk.f32.mxu0 %vm84_vm0, %v7938_v58 }
0x1946   :  { %7126 = vmatprep.subr.mxu0 %v6360_v60 }
0x1947   :  { %7127 = vmatpush3.msra.mxu0 %v6360_v60 }
0x1948   :  { %7128 = vmatprep.subr.mxu0 %v6359_v11 }
0x1949   :  { %7129 = vmatpush3.msra.mxu0 %v6359_v11  ;;  %v7123_v14 = vpop.f32.mrf.mxu1 }
0x194a   :  { %7130 = vmatprep.subr.mxu0 %v6358_v12  ;;  %v5202_v19 = vadd.f32 %v7123_v14, %v6355_v6 }
0x194b   :  { %7131 = vmatpush3.msra.mxu0 %v6358_v12  ;;  %v5196_v15 = vpop.f32.mrf.mxu1 }
0x194c   :  { %7133 = vmatmul.mubr.msk.f32.vlgmr.msra.gmra.mxu0 %vm84_vm0, %v7940_v13  ;;  %7146 = vmatprep.subr.mxu0 %v7322_v42  ;;  %v5197_v18 = vadd.f32 %v6355_v6, %v5196_v15 }
0x194d   :  { %7148 = vmatprep.mubr.msk.f32.mxu0 %vm7323_vm1, %v7322_v42 }
0x1951   :  { %v7145_v17 = vpop.f32.mrf.mxu1 }
0x1952   :  { %v5378_v20 = vadd.f32 %v7145_v17, %v6371_v16 }
0x1953   :  { %v5372_v21 = vpop.f32.mrf.mxu1 }
0x1954   :  { %v5373_v22 = vadd.f32 %v6371_v16, %v5372_v21 }
0x1956   :  { %7157 = vmatpush3.msra.mxu1 %v5373_v22 }
0x1957   :  { %7166 = vmatprep.subr.mxu1 %v6380_v55 }
0x1a04   :  { %v7112_v24 = vpop.f32.mrf.mxu0 }
0x1a05   :  { %v8262_v26 = vadd.f32 %v7112_v24, %v4445_v23  ;;  %v6391_v24 = vld [vmem:[%s8387_s14 + $0x30] sm:$0xff] }
0x1a06   :  { %v5106_v27 = vpop.f32.mrf.mxu0 }
0x1a07   :  { %v8264_v28 = vadd.f32 %v5106_v27, %v4440_v25  ;;  %v6390_v25 = vld [vmem:[%s8387_s14 + $0x28] sm:$0xff] }
0x1a0c   :  { %v7134_v30 = vpop.f32.mrf.mxu0 }
0x1a0d   :  { %v5290_v9 = vadd.f32 %v7134_v30, %v6363_v31 }
0x1a0e   :  { %v5284_v33 = vpop.f32.mrf.mxu0 }
0x1a0f   :  { %v5285_v34 = vadd.f32 %v6363_v31, %v5284_v33 }
0x1a11   :  { %7147 = vmatpush3.xpose.msk.msra.mxu0 %vm392_vm2, %v5285_v34 }
0x1a12   :  { %7151 = vmatprep.subr.mxu0 %v7322_v42 }
0x1a14   :  { %7149 = vmatmul.mubr.msk.f32.vlgmr.msra.gmra.mxu0 %vm392_vm2, %v5197_v18  ;;  %v6387_v18 = vld [vmem:[%s8385_s12 + $0x1] ss:$0 sm:$0xff] }
0x1a15   :  { %7152 = vmatpush3.xpose.msk.msra.mxu0 %vm392_vm2, %v5290_v9  ;;  %7153 = vmatprep.mubr.msk.f32.mxu0 %vm7323_vm1, %v7322_v42 }
0x1a16   :  { %7161 = vmatprep.subr.mxu0 %v7322_v42 }
0x1a18   :  { %7154 = vmatmul.mubr.msk.f32.vlgmr.msra.gmra.mxu0 %vm392_vm2, %v5202_v19 }
0x1a19   :  { %7162 = vmatpush3.msra.mxu0 %v5378_v20  ;;  %7163 = vmatprep.mubr.msk.f32.mxu0 %vm7323_vm1, %v7322_v42 }
0x1ad4   :  { %v5453_v37 = vpop.f32.mrf.mxu0 }
0x1ad5   :  { %v5454_v39 = vadd.f32 %v7996_v41, %v5453_v37 }
0x1ad6   :  { %v7150_v40 = vpop.f32.mrf.mxu0 }
0x1ad7   :  { %v5533_v43 = vsel %vm392_vm2, %v5454_v39, -inf  ;;  %v6388_v40 = vld [vmem:[%s8386_s13 + $0x1] ss:$0 sm:$0xff] }
0x1ad8   :  { %5534 = vmax.xlane.f32.xlu0 %v5533_v43  ;;  %v5529_v46 = vpop.f32.mrf.mxu0 }
0x1ad9   :  { %v5530_v47 = vadd.f32 %v7990_v36, %v5529_v46 }
0x1ada   :  { %v7155_v48 = vpop.f32.mrf.mxu0 }
0x1adb   :  { %v5536_v49 = vsel %vm392_vm2, %v5530_v47, -inf  ;;  %v6404_v48 = vld [vmem:[%s8389_s16 + $0x78] sm:$0xff] }
0x1adc   :  { %5537 = vmax.xlane.f32.xlu1 %v5536_v49  ;;  %v6403_v49 = vld [vmem:[%s8389_s16 + $0x70] sm:$0xff] }
0x1b61   :  { %v5535_v50 = vpop.xlane.xlu0 %5534 }
0x1b62   :  { %v5539_v38 = vsub.f32 %v5454_v39, %v5535_v50  ;;  %v6402_v50 = vld [vmem:[%s8389_s16 + $0x68] sm:$0xff] }
0x1b64   :  { %v5541_v35 = vmul.f32 1.442695, %v5539_v38  ;;  %v6401_v38 = vld [vmem:[%s8389_s16 + $0x60] sm:$0xff] }
0x1b65   :  { %v5538_v51 = vpop.xlane.xlu1 %5537 }
0x1b66   :  { %7278 = vpow2.f32 %v5541_v35  ;;  %v5540_v42 = vsub.f32 %v5530_v47, %v5538_v51  ;;  %v6400_v35 = vld [vmem:[%s8389_s16 + $0x58] sm:$0xff]  ;;  %v6399_v51 = vld [vmem:[%s8389_s16 + $0x50] sm:$0xff] }
0x1b68   :  { %v5543_v52 = vmul.f32 1.442695, %v5540_v42  ;;  %v6398_v42 = vld [vmem:[%s8389_s16 + $0x48] sm:$0xff] }
0x1b6a   :  { %7280 = vpow2.f32 %v5543_v52  ;;  %v6397_v52 = vld [vmem:[%s8389_s16 + $0x40] sm:$0xff] }
0x1b73   :  { %v7279_v41 = vpop.eup %7278 }
0x1b74   :  { %7159 = vmatmul.mubr.msk.f32.vlgmr.msra.gmra.mxu1 %vm392_vm2, %v7279_v41  ;;  %v5691_v53 = vsel %vm392_vm2, %v7279_v41, 0.0  ;;  %v6394_v41 = vld [vmem:[%s8388_s15 + $0x1] ss:$0 sm:$0xff] }
0x1b75   :  { %5692 = vadd.xlane.f32.xlu0 %v5691_v53  ;;  %7167 = vmatpush3.msra.mxu1 %v6380_v55 }
0x1b76   :  { %7182 = vmatprep.subr.mxu1 %v6404_v48 }
0x1b77   :  { %v7281_v54 = vpop.eup %7280 }
0x1b78   :  { %7164 = vmatmul.mubr.msk.f32.vlgmr.msra.gmra.mxu0 %vm392_vm2, %v7281_v54  ;;  %v5694_v36 = vsel %vm392_vm2, %v7281_v54, 0.0 }
0x1b79   :  { %5695 = vadd.xlane.f32.xlu1 %v5694_v36 }
0x1bfe   :  { %v5693_v56 = vpop.xlane.xlu0 %5692 }
0x1bff   :  { %7282 = vrcp.f32 %v5693_v56 }
0x1c02   :  { %v5696_v57 = vpop.xlane.xlu1 %5695 }
0x1c03   :  { %7284 = vrcp.f32 %v5696_v57 }
0x1c0c   :  { %v7283_v59 = vpop.eup %7282 }
0x1c10   :  { %v7285_v45 = vpop.eup %7284 }
0x1c34   :  { %v5614_v29 = vpop.f32.mrf.mxu1 }
0x1c35   :  { %v5699_v44 = vmul.f32 %v7283_v59, %v5614_v29 }
0x1c36   :  { %v7160_v32 = vpop.f32.mrf.mxu1 }
0x1c37   :  { %7168 = vmatprep.mubr.msk.f32.mxu1 %vm392_vm2, %v5699_v44 }
0x1c38   :  { %v5687_v61 = vpop.f32.mrf.mxu0 }
0x1c39   :  { %v5700_v62 = vmul.f32 %v7285_v45, %v5687_v61 }
0x1c3a   :  { %v7165_v63 = vpop.f32.mrf.mxu0 }
0x1c3b   :  { %7169 = vmatmul.mubr.msk.f32.vlgmr.msra.gmra.mxu1 %vm392_vm2, %v5700_v62 }
0x1c3c   :  { %7183 = vmatpush3.msra.mxu1 %v6404_v48 }
0x1c3d   :  { %7184 = vmatprep.subr.mxu1 %v6403_v49 }
0x1c3e   :  { %7185 = vmatpush3.msra.mxu1 %v6403_v49 }
0x1c3f   :  { %7186 = vmatprep.subr.mxu1 %v6402_v50 }
0x1c40   :  { %7187 = vmatpush3.msra.mxu1 %v6402_v50 }
0x1c41   :  { %7188 = vmatprep.subr.mxu1 %v6401_v38 }
0x1c42   :  { %7189 = vmatpush3.msra.mxu1 %v6401_v38 }
0x1c43   :  { %7190 = vmatprep.subr.mxu1 %v6400_v35 }
0x1c44   :  { %7191 = vmatpush3.msra.mxu1 %v6400_v35 }
0x1c45   :  { %7192 = vmatprep.subr.mxu1 %v6399_v51 }
0x1c46   :  { %7193 = vmatpush3.msra.mxu1 %v6399_v51 }
0x1c47   :  { %7194 = vmatprep.subr.mxu1 %v6398_v42 }
0x1c48   :  { %7195 = vmatpush3.msra.mxu1 %v6398_v42 }
0x1c49   :  { %7196 = vmatprep.subr.mxu1 %v6397_v52 }
0x1c4a   :  { %7197 = vmatpush3.msra.mxu1 %v6397_v52 }
0x1cfb   :  { %v7170_v0 = vpop.f32.mrf.mxu1 }
0x1cfc   :  { %v5785_v2 = vadd.f32 %v7170_v0, %v8262_v26  ;;  %v6389_v26 = vld [vmem:[%s8387_s14 + $0x20] sm:$0xff] }
0x1cfd   :  { %v5775_v3 = vpop.f32.mrf.mxu1 }
0x1cfe   :  { %v5795_v4 = vadd.f32 %v6384_v1, %v5785_v2  ;;  %v5784_v5 = vadd.f32 %v5775_v3, %v8264_v28 }
0x1d00   :  { %v5794_v7 = vadd.f32 %v6384_v1, %v5784_v5  ;;  %v5797_v8 = vadd.f32 %v5795_v4, %v7940_v13 }
0x1d02   :  { %v5805_v10 = vsel %vm84_vm0, %v5797_v8, 0.0  ;;  %v5796_v60 = vadd.f32 %v5794_v7, %v7938_v58  ;;  %v6392_v58 = vld [vmem:[%s8387_s14 + $0x38] sm:$0xff]  ;;  %s7300_s14 = scalar_lea.vmem %s6110_s3, 256 }
0x1d03   :  { %5806 = vadd.xlane.f32.xlu1 %v5805_v10  ;;  %7171 = vmatprep.subr.mxu0 %v6392_v58  ;;  %v6406_v10 = vld [vmem:[%s8390_s17 + $0x1] ss:$0 sm:$0xff]  ;;  %p7301_p0 = scmp.ne.s32.totalorder %s6110_s3, %s7300_s14  ;;  %p7306_p2 = scmp.lt.s32.totalorder %s7300_s14, %s7300_s14 }
0x1d04   :  { %v5802_v11 = vsel %vm84_vm0, %v5796_v60, 0.0  ;;  %7172 = vmatpush3.msra.mxu0 %v6392_v58 }
0x1d05   :  { %5803 = vadd.xlane.f32.xlu0 %v5802_v11  ;;  %7173 = vmatprep.subr.mxu0 %v6391_v24  ;;  %p7307_p3 = por %p7306_p2, %p7305_p1 }
0x1d06   :  { %7174 = vmatpush3.msra.mxu0 %v6391_v24 }
0x1d07   :  { %7175 = vmatprep.subr.mxu0 %v6390_v25  ;;  %p7308_p4 = pnand %p7307_p3, %p7301_p0 }
0x1d08   :  { %7176 = vmatpush3.msra.mxu0 %v6390_v25 }
0x1d09   :  { %7177 = vmatprep.subr.mxu0 %v6389_v26 }
0x1d0a   :  { %7178 = vmatpush3.msra.mxu0 %v6389_v26 }
0x1d8c   :  { %v5807_v12 = vpop.xlane.xlu1 %5806 }
0x1d8d   :  { %v5809_v14 = vmul.f32 0.03125, %v5807_v12 }
0x1d8e   :  { %v5804_v15 = vpop.xlane.xlu0 %5803 }
0x1d8f   :  { %v5811_v16 = vsub.f32 %v5797_v8, %v5809_v14  ;;  %v5808_v17 = vmul.f32 0.03125, %v5804_v15 }
0x1d91   :  { %v5810_v20 = vsub.f32 %v5796_v60, %v5808_v17  ;;  %v5813_v21 = vmul.f32 %v5811_v16, %v5811_v16 }
0x1d93   :  { %v5817_v22 = vsel %vm84_vm0, %v5813_v21, 0.0  ;;  %v5812_v23 = vmul.f32 %v5810_v20, %v5810_v20 }
0x1d94   :  { %5818 = vadd.xlane.f32.xlu1 %v5817_v22 }
0x1d95   :  { %v5814_v13 = vsel %vm84_vm0, %v5812_v23, 0.0 }
0x1d96   :  { %5815 = vadd.xlane.f32.xlu0 %v5814_v13 }
0x1e1d   :  { %v5819_v27 = vpop.xlane.xlu1 %5818 }
0x1e1e   :  { %v5821_v28 = vmul.f32 0.03125, %v5819_v27 }
0x1e1f   :  { %v5816_v30 = vpop.xlane.xlu0 %5815 }
0x1e20   :  { %v5823_v31 = vadd.f32 1e-12, %v5821_v28  ;;  %v5820_v33 = vmul.f32 0.03125, %v5816_v30 }
0x1e22   :  { %7286 = vrsqrt.f32 %v5823_v31  ;;  %v5822_v34 = vadd.f32 1e-12, %v5820_v33 }
0x1e24   :  { %7288 = vrsqrt.f32 %v5822_v34 }
0x1e2f   :  { %v7287_v6 = vpop.eup %7286 }
0x1e30   :  { %v5827_v9 = vmul.f32 %v7287_v6, %v5811_v16 }
0x1e31   :  { %v7289_v19 = vpop.eup %7288 }
0x1e32   :  { %v5826_v37 = vmul.f32 %v7289_v19, %v5810_v20  ;;  %v5835_v39 = vmul.f32 %v6387_v18, %v5827_v9  ;;  %v6411_v19 = vld [vmem:[%s8391_s18 + $0x1] ss:$0 sm:$0xff] }
0x1e34   :  { %v5834_v43 = vmul.f32 %v6387_v18, %v5826_v37  ;;  %v5843_v47 = vadd.f32 %v6388_v40, %v5835_v39 }
0x1e36   :  { %v5842_v46 = vadd.f32 %v6388_v40, %v5834_v43  ;;  %v6412_v40 = vld [vmem:[%s8392_s19 + $0x1] ss:$0 sm:$0xff] }
0x1e38   :  { %7179 = vmatprep.mubr.msk.f32.mxu0 %vm84_vm0, %v5842_v46 }
0x1e39   :  { %7180 = vmatmul.mubr.msk.f32.vlgmr.msra.gmra.mxu0 %vm84_vm0, %v5843_v47 }
0x1ef9   :  { %v7181_v53 = vpop.f32.mrf.mxu0 }
0x1efa   :  { %v5935_v54 = vadd.f32 %v7181_v53, %v6394_v41 }
0x1efb   :  { %v5929_v36 = vpop.f32.mrf.mxu0 }
0x1efc   :  { %v5941_v55 = vmul.f32 0.044715, %v5935_v54  ;;  %v5930_v56 = vadd.f32 %v6394_v41, %v5929_v36  ;;  %v5939_v5 = vmul.f32 0.5, %v5935_v54 }
0x1efe   :  { %v5943_v57 = vmul.f32 %v5941_v55, %v5935_v54  ;;  %v5940_v59 = vmul.f32 0.044715, %v5930_v56  ;;  %v5938_v3 = vmul.f32 0.5, %v5930_v56 }
0x1f00   :  { %v5945_v29 = vmul.f32 %v5943_v57, %v5935_v54  ;;  %v5942_v44 = vmul.f32 %v5940_v59, %v5930_v56 }
0x1f02   :  { %v5947_v32 = vadd.f32 %v5945_v29, %v5935_v54  ;;  %v5944_v45 = vmul.f32 %v5942_v44, %v5930_v56 }
0x1f04   :  { %v5949_v61 = vmul.f32 0.7978846, %v5947_v32  ;;  %v5946_v62 = vadd.f32 %v5944_v45, %v5930_v56 }
0x1f06   :  { %7290 = vtanh.f32 %v5949_v61  ;;  %v5948_v63 = vmul.f32 0.7978846, %v5946_v62 }
0x1f08   :  { %7292 = vtanh.f32 %v5948_v63 }
0x1f13   :  { %v7291_v0 = vpop.eup %7290 }
0x1f14   :  { %v5953_v2 = vadd.f32 1.0, %v7291_v0 }
0x1f15   :  { %v7293_v1 = vpop.eup %7292 }
0x1f16   :  { %v5952_v4 = vadd.f32 1.0, %v7293_v1  ;;  %v5955_v8 = vmul.f32 %v5953_v2, %v5939_v5 }
0x1f18   :  { %v5954_v7 = vmul.f32 %v5952_v4, %v5938_v3 }
0x1f1a   :  { %7198 = vmatprep.mubr.msk.f32.mxu1 %vm2980_vm3, %v5954_v7 }
0x1f1b   :  { %7199 = vmatmul.mubr.msk.f32.vlgmr.msra.gmra.mxu1 %vm2980_vm3, %v5955_v8 }
0x1fdb   :  { %v7200_v60 = vpop.f32.mrf.mxu1 }
0x1fdc   :  { %v6051_v11 = vadd.f32 %v7200_v60, %v6406_v10 }
0x1fdd   :  { %v6045_v12 = vpop.f32.mrf.mxu1 }
0x1fde   :  { %v6046_v14 = vadd.f32 %v6406_v10, %v6045_v12  ;;  %v6055_v15 = vadd.f32 %v6051_v11, %v5843_v47 }
0x1fe0   :  { %v6063_v16 = vsel %vm84_vm0, %v6055_v15, 0.0  ;;  %v6054_v17 = vadd.f32 %v6046_v14, %v5842_v46 }
0x1fe1   :  { %6064 = vadd.xlane.f32.xlu1 %v6063_v16 }
0x1fe2   :  { %v6060_v20 = vsel %vm84_vm0, %v6054_v17, 0.0 }
0x1fe3   :  { %6061 = vadd.xlane.f32.xlu0 %v6060_v20 }
0x206a   :  { %v6065_v21 = vpop.xlane.xlu1 %6064 }
0x206b   :  { %v6067_v22 = vmul.f32 0.03125, %v6065_v21 }
0x206c   :  { %v6062_v23 = vpop.xlane.xlu0 %6061 }
0x206d   :  { %v6069_v13 = vsub.f32 %v6055_v15, %v6067_v22  ;;  %v6066_v58 = vmul.f32 0.03125, %v6062_v23 }
0x206f   :  { %v6068_v24 = vsub.f32 %v6054_v17, %v6066_v58  ;;  %v6071_v25 = vmul.f32 %v6069_v13, %v6069_v13 }
0x2071   :  { %v6075_v26 = vsel %vm84_vm0, %v6071_v25, 0.0  ;;  %v6070_v27 = vmul.f32 %v6068_v24, %v6068_v24 }
0x2072   :  { %6076 = vadd.xlane.f32.xlu1 %v6075_v26 }
0x2073   :  { %v6072_v28 = vsel %vm84_vm0, %v6070_v27, 0.0 }
0x2074   :  { %6073 = vadd.xlane.f32.xlu0 %v6072_v28 }
0x20fb   :  { %v6077_v30 = vpop.xlane.xlu1 %6076 }
0x20fc   :  { %v6079_v31 = vmul.f32 0.03125, %v6077_v30 }
0x20fd   :  { %v6074_v33 = vpop.xlane.xlu0 %6073 }
0x20fe   :  { %v6081_v34 = vadd.f32 1e-12, %v6079_v31  ;;  %v6078_v6 = vmul.f32 0.03125, %v6074_v33 }
0x2100   :  { %7294 = vrsqrt.f32 %v6081_v34  ;;  %v6080_v18 = vadd.f32 1e-12, %v6078_v6 }
0x2102   :  { %7296 = vrsqrt.f32 %v6080_v18 }
0x210d   :  { %v7295_v9 = vpop.eup %7294 }
0x210e   :  { %v6085_v37 = vmul.f32 %v7295_v9, %v6069_v13 }
0x210f   :  { %v7297_v39 = vpop.eup %7296 }
0x2110   :  { %v6084_v43 = vmul.f32 %v7297_v39, %v6068_v24  ;;  %v6093_v46 = vmul.f32 %v6411_v19, %v6085_v37 }
0x2112   :  { %v6092_v47 = vmul.f32 %v6411_v19, %v6084_v43  ;;  %v6101_v48 = vadd.f32 %v6412_v40, %v6093_v46 }
0x2114   :  { %v6100_v49 = vadd.f32 %v6412_v40, %v6092_v47  ;;  %6103 = vst.msk [vmem:[#allocation2 + $0x8] sm:$0xff] %vm84_vm0, %v6101_v48 }
0x2116   :  { %6102 = vst.msk [vmem:[#allocation2] sm:$0xff] %vm84_vm0, %v6100_v49 }
0x2117   :  { %7311 = shalt.err (!%p7308_p4)
}
0x2118   :  { %s7325_s18 = smov 128   ;;  %s7326_s19 = smov 8  }
0x2119   :  { %6115 = dma.vmem_to_hbm [thread:$0]  %s6110_s3, 256, %s8393_s20, [#allocation3], %s7325_s18, %s7325_s18, %s7326_s19  }
0x211a   :  { %7320 = dma.done.wait [#allocation3], 256  }
0x211b   :  { %7321 = vsyncadd [#allocation3], 4294967040 }
0x211c   :  { %6119 = vsyncpa [#allocation3], 1 }

</bundles_post_ra>
